<compile_context>
chip_gen: v7x
topology: tpu7x:2x2x1
jax: 0.10.0
libtpu: 0.0.40
codegen_flags: <defaults>
</compile_context>

<pallas_src>
from functools import partial

import numpy as np
import jax
import jax.numpy as jnp
from jax.experimental import pallas as pl
from jax.experimental.pallas import tpu as pltpu


# Synthetic stand-in config for F_RandomProj (pretrained backbone not available).
CHANNELS = [8, 16]        # per-scale feature channels
RESOLUTIONS = [16, 8]     # per-scale feature resolutions
NUM_DISCS = 2
CHANNEL_DICT = {4: 512, 8: 512, 16: 256, 32: 128, 64: 64,
                128: 64, 256: 32, 512: 16, 1024: 8}

_VMEM_LIMIT = 32 * 1024 * 1024


def _full_spec(arr):
    nd = arr.ndim
    return pl.BlockSpec(arr.shape, lambda *_: (0,) * nd)


def _leaky(x):
    return jnp.where(x >= 0.0, x, 0.2 * x)


# -----------------------------------------------------------------------------
# interpolation / pooling matrices (numpy, computed once at init)
# -----------------------------------------------------------------------------
def _bilinear_matrix(out_size, in_size):
    # F.interpolate(..., mode='bilinear', align_corners=False), edge-clamped.
    o = np.arange(out_size, dtype=np.float64)
    src = (o + 0.5) * in_size / out_size - 0.5
    src = np.clip(src, 0.0, in_size - 1)
    i0 = np.floor(src).astype(np.int64)
    i1 = np.minimum(i0 + 1, in_size - 1)
    frac = src - i0
    W = np.zeros((out_size, in_size), np.float64)
    W[np.arange(out_size), i0] += 1.0 - frac
    W[np.arange(out_size), i1] += frac
    return W


def _avgpool_matrix(out_size, in_size):
    k = in_size // out_size
    A = np.zeros((out_size, in_size), np.float64)
    for o in range(out_size):
        A[o, o * k:(o + 1) * k] = 1.0 / k
    return A


# -----------------------------------------------------------------------------
# kernel-ready parameter packing (done once at init, never per forward)
# -----------------------------------------------------------------------------
def _pack_kernel_params(raw, in_size):
    cin0, cin1 = CHANNELS
    c_down = CHANNEL_DICT[8]                   # 512
    r16, r8 = RESOLUTIONS

    Wh = _bilinear_matrix(224, in_size)
    Ww = _bilinear_matrix(224, in_size)
    b16h = _avgpool_matrix(r16, 224) @ Wh      # (16, in)  pool(resize) folded
    b16w = _avgpool_matrix(r16, 224) @ Ww
    b8h = _avgpool_matrix(r8, 224) @ Wh        # (8, in)
    b8w = _avgpool_matrix(r8, 224) @ Ww

    # disc1 feature pooling: row = 8x8 output pixel, col = flattened (i, j) input pixel.
    k8 = np.einsum('hi,wj->hwij', b8h, b8w).reshape(r8 * r8, in_size * in_size)

    # disc0: fold interp224 + avgpool(16) + zero-pad(1) + stride-2 4x4 im2col into ONE
    # gather/pool matrix.  Row = (kh*4+kw)*64 + oh*8+ow, col = flattened (i, j).
    b16h_pad = np.zeros((r16 + 2, in_size), np.float64)
    b16h_pad[1:r16 + 1] = b16h
    b16w_pad = np.zeros((r16 + 2, in_size), np.float64)
    b16w_pad[1:r16 + 1] = b16w
    kd0 = np.zeros((16 * 64, in_size * in_size), np.float64)
    for kh in range(4):
        for kw in range(4):
            t = kh * 4 + kw
            rows_h = b16h_pad[2 * np.arange(8) + kh]          # (8, in), zero rows = padding
            rows_w = b16w_pad[2 * np.arange(8) + kw]          # (8, in)
            kd0[t * 64:(t + 1) * 64] = np.einsum('oi,pj->opij', rows_h, rows_w).reshape(64, -1)

    # BatchNorm (eval, running_mean=0, running_var=1) folded with the conv bias.
    scale = raw['gamma'] / jnp.sqrt(1.0 + 1e-5)
    bias = scale * raw['b_down'] + raw['beta']

    return dict(
        kd0=jnp.asarray(kd0, jnp.float32),                                        # (1024, 256)
        k8=jnp.asarray(k8, jnp.float32),                                          # (64, 256)
        p01=jnp.concatenate([raw['P0'], raw['P1']], axis=1).astype(jnp.float32),  # (3, 24)
        w2cat=jnp.transpose(raw['w_down'], (2, 3, 1, 0))
                 .reshape(4 * 4 * cin0, c_down).astype(jnp.bfloat16),             # (128, 512)
        bn_scale=scale.reshape(1, c_down).astype(jnp.float32),
        bn_bias=bias.reshape(1, c_down).astype(jnp.float32),
        wf0=raw['wf0'].reshape(c_down, 16).astype(jnp.bfloat16),                  # (512, 16)
        wf1=raw['wf1'].reshape(cin1, 16).astype(jnp.float32),                     # (16, 16)
    )


def init_params(key, in_size=16):
    cin0, cin1 = CHANNELS
    c_down = CHANNEL_DICT[8]
    k = jax.random.split(key, 8)
    raw = dict(
        # synthetic 1x1 feature projections (3 -> CHANNELS[i]), stand-in for F_RandomProj
        P0=0.2 * jax.random.normal(k[0], (3, cin0), jnp.float32),
        P1=0.2 * jax.random.normal(k[1], (3, cin1), jnp.float32),
        # disc0 DownBlock: conv 4x4 s2 p1 (+bias) -> BatchNorm (eval) -> LeakyReLU(0.2)
        w_down=0.05 * jax.random.normal(k[2], (c_down, cin0, 4, 4), jnp.float32),
        b_down=0.05 * jax.random.normal(k[3], (c_down,), jnp.float32),
        gamma=1.0 + 0.1 * jax.random.normal(k[4], (c_down,), jnp.float32),
        beta=0.05 * jax.random.normal(k[5], (c_down,), jnp.float32),
        # final 4x4 convs, Cout=1, no bias (one per mini-disc)
        wf0=0.05 * jax.random.normal(k[6], (1, c_down, 4, 4), jnp.float32),
        wf1=0.05 * jax.random.normal(k[7], (1, cin1, 4, 4), jnp.float32),
    )
    return raw, _pack_kernel_params(raw, in_size)


# -----------------------------------------------------------------------------
# the single fused kernel: backbone pooling+projection -> disc0 + disc1 -> logits
# -----------------------------------------------------------------------------
def _fused_disc_kernel(x_ref, kd0_ref, k8_ref, p01_ref, w2_ref, sc_ref, bi_ref,
                       wf0_ref, wf1_ref, out_ref, m_ref):
    f32 = jnp.float32
    bf16 = jnp.bfloat16
    cin0 = CHANNELS[0]                                     # 8

    x = x_ref[0]                                           # (256, 3) f32 HWC-flattened image
    # synthetic backbone: 1x1 channel projections of the raw image.  The 1x1 projection
    # commutes with the (linear) resize+pool, so project first and pool after.
    xp = jnp.dot(x, p01_ref[...], preferred_element_type=f32)       # (256, 24)
    xp0 = xp[:, :cin0]                                     # (256, 8)  disc-0 channels
    xp1 = xp[:, cin0:]                                     # (256, 16) disc-1 channels

    # ---------------- disc 0: proj -> DownBlock(conv4x4/s2 + BN + LeakyReLU) -> 4x4 head --
    # kd0 folds interp224 + avgpool(16) + zero-pad(1) + stride-2 im2col.  Row
    # (kh*4+kw)*64 + oh*8+ow of `pr0` is the pooled feature tap of output pixel (oh, ow)
    # at kernel offset (kh, kw); padded taps are exact zeros (projection has no bias and
    # leaky(0) == 0, so padding before/after the projection is identical).
    pr0 = _leaky(jnp.dot(kd0_ref[...], xp0, preferred_element_type=f32))     # (1024, 8)
    # assemble the (64, 128) im2col matrix (col = (kh,kw,cin)) in a VMEM scratch.
    for t in range(16):
        m_ref[:, t * cin0:(t + 1) * cin0] = pr0[t * 64:(t + 1) * 64, :]
    im2col = m_ref[...].astype(bf16)                                         # (64, 128)
    acc = jnp.dot(im2col, w2_ref[...], preferred_element_type=f32)           # (64, 512) f32
    h = _leaky(acc * sc_ref[...] + bi_ref[...])            # conv-bias + BN folded, LeakyReLU
    g0 = jnp.dot(h.astype(bf16), wf0_ref[...], preferred_element_type=f32)   # (64, 16)
    g0 = g0.reshape(8, 8, 16)
    o0 = jnp.zeros((5, 5, 1), f32)
    for t in range(16):                                    # Cout=1 head: 16 static-slice adds
        dh, dw = divmod(t, 4)
        o0 = o0 + g0[dh:dh + 5, dw:dw + 5, t:t + 1]

    # ---------------- disc 1: proj -> 4x4 head (start_sz == end_sz == 8) ------------------
    f1 = _leaky(jnp.dot(k8_ref[...], xp1, preferred_element_type=f32))       # (64, 16)
    g1 = jnp.dot(f1, wf1_ref[...], preferred_element_type=f32)               # (64, 16)
    g1 = g1.reshape(8, 8, 16)
    o1 = jnp.zeros((5, 5, 1), f32)
    for t in range(16):
        dh, dw = divmod(t, 4)
        o1 = o1 + g1[dh:dh + 5, dw:dw + 5, t:t + 1]

    out_ref[0] = jnp.concatenate([o0[None], o1[None]], axis=0)               # (2, 5, 5, 1)


# -----------------------------------------------------------------------------
# ProjectedDiscriminator forward (CAM='tow', patchout=False path)
# -----------------------------------------------------------------------------
def projected_discriminator_forward(x_nchw, kparams, CAM='tow', pooling=False):
    # DiffAugment skipped (see TODO); forgary_aware_tag=False -> forgaryNet is None.
    # interp224 + backbone pooling are folded into kd0/k8, so no 224x224 tensor exists.
    N, C, H, W = x_nchw.shape
    x_hwc = jnp.transpose(x_nchw, (0, 2, 3, 1)).reshape(N, H * W, C).astype(jnp.float32)

    out = pl.pallas_call(
        _fused_disc_kernel,
        out_shape=jax.ShapeDtypeStruct((N, NUM_DISCS, 5, 5, 1), jnp.float32),
        grid=(N,),
        in_specs=[
            pl.BlockSpec((1, H * W, C), lambda i: (i, 0, 0)),
            _full_spec(kparams['kd0']), _full_spec(kparams['k8']),
            _full_spec(kparams['p01']), _full_spec(kparams['w2cat']),
            _full_spec(kparams['bn_scale']), _full_spec(kparams['bn_bias']),
            _full_spec(kparams['wf0']), _full_spec(kparams['wf1']),
        ],
        out_specs=pl.BlockSpec((1, NUM_DISCS, 5, 5, 1), lambda i: (i, 0, 0, 0, 0)),
        scratch_shapes=[pltpu.VMEM((64, 128), jnp.float32)],
        compiler_params=pltpu.CompilerParams(
            dimension_semantics=("parallel",), vmem_limit_bytes=_VMEM_LIMIT),
    )(x_hwc, kparams['kd0'], kparams['k8'], kparams['p01'], kparams['w2cat'],
      kparams['bn_scale'], kparams['bn_bias'], kparams['wf0'], kparams['wf1'])

    # MultiScaleD with CAM not in ('one','two') and patchout=False: flatten each disc's
    # (1,5,5) map and cat on dim=1 -- with the packed kernel layout this is a free reshape.
    logits = out.reshape(N, NUM_DISCS * 25)
    if pooling:
        logits = logits.mean(-1)
    return logits


# -----------------------------------------------------------------------------
# pure-JAX reference (original module structure) used to validate the kernel
# -----------------------------------------------------------------------------
def _reference_forward(x_nchw, raw):
    f32 = jnp.float32
    hp = jax.lax.Precision.HIGHEST
    N, C, H, W = x_nchw.shape
    r16, r8 = RESOLUTIONS
    x = x_nchw.astype(f32)
    Wh = jnp.asarray(_bilinear_matrix(224, H), f32)
    Ww = jnp.asarray(_bilinear_matrix(224, W), f32)
    y224 = jnp.einsum('Hi,ncij,Vj->ncHV', Wh, x, Ww, precision=hp)   # F.interpolate(224)
    p16 = y224.reshape(N, C, r16, 224 // r16, r16, 224 // r16).mean(axis=(3, 5))
    p8 = y224.reshape(N, C, r8, 224 // r8, r8, 224 // r8).mean(axis=(3, 5))
    f0 = _leaky(jnp.einsum('nchw,ck->nhwk', p16, raw['P0'], precision=hp))   # (N,16,16,8)
    f1 = _leaky(jnp.einsum('nchw,ck->nhwk', p8, raw['P1'], precision=hp))    # (N,8,8,16)

    dn = ('NHWC', 'HWIO', 'NHWC')
    # disc0: DownBlock = conv4x4 s2 p1 (+bias) -> BN(eval) -> LeakyReLU; then conv4x4 valid.
    f0b = f0.astype(jnp.bfloat16).astype(f32)              # mirror kernel's bf16 MXU inputs
    wd = raw['w_down'].astype(jnp.bfloat16).astype(f32)
    h = jax.lax.conv_general_dilated(f0b, jnp.transpose(wd, (2, 3, 1, 0)), (2, 2),
                                     ((1, 1), (1, 1)), dimension_numbers=dn,
                                     precision=hp) + raw['b_down']
    scale = raw['gamma'] / jnp.sqrt(1.0 + 1e-5)
    h = _leaky(h * scale + raw['beta'])
    hb = h.astype(jnp.bfloat16).astype(f32)
    wf0 = raw['wf0'].astype(jnp.bfloat16).astype(f32)
    o0 = jax.lax.conv_general_dilated(hb, jnp.transpose(wf0, (2, 3, 1, 0)), (1, 1),
                                      'VALID', dimension_numbers=dn, precision=hp)
    # disc1: start_sz == end_sz == 8 -> only the final conv4x4 valid, Cout=1.
    o1 = jax.lax.conv_general_dilated(f1, jnp.transpose(raw['wf1'], (2, 3, 1, 0)), (1, 1),
                                      'VALID', dimension_numbers=dn, precision=hp)
    return jnp.concatenate([o0.reshape(N, 25), o1.reshape(N, 25)], axis=1)


if __name__ == "__main__":
    key = jax.random.PRNGKey(0)
    kx, kp = jax.random.split(key)
    # PyTorch-convention NCHW image input (small synthetic shape)
    x = jax.random.normal(kx, (2, 3, 16, 16), dtype=jnp.float32)
    raw, kparams = init_params(kp, in_size=16)

    fwd = jax.jit(partial(projected_discriminator_forward, CAM='tow'))
    logits = jax.block_until_ready(fwd(x, kparams))

    # 2 mini-discs, each final conv gives (B,1,5,5) -> (B,25); cat dim=1 -> (B,50)
    assert logits.shape == (2, NUM_DISCS * 25), logits.shape
    assert bool(jnp.all(jnp.isfinite(logits)))

    # Validate the folded pool/pad/im2col restructuring against a plain lax.conv reference.
    ref = _reference_forward(x, raw)
    err = float(jnp.max(jnp.abs(logits - ref)))
    assert err < 1e-2, f"kernel vs reference max abs err {err}"
    print("KERNEL_OK")
</pallas_src>

<mosaic_0001>
module attributes {stable_mosaic.version = 11 : i64} {
  func.func @_fused_disc_kernel(%arg0: i32, %arg1: memref<1x256x3xf32, #tpu.memory_space<vmem>>, %arg2: memref<1024x256xf32, #tpu.memory_space<vmem>>, %arg3: memref<64x256xf32, #tpu.memory_space<vmem>>, %arg4: memref<3x24xf32, #tpu.memory_space<vmem>>, %arg5: memref<128x512xbf16, #tpu.memory_space<vmem>>, %arg6: memref<1x512xf32, #tpu.memory_space<vmem>>, %arg7: memref<1x512xf32, #tpu.memory_space<vmem>>, %arg8: memref<512x16xbf16, #tpu.memory_space<vmem>>, %arg9: memref<16x16xf32, #tpu.memory_space<vmem>>, %arg10: memref<1x2x5x5x1xf32, #tpu.memory_space<vmem>>, %arg11: memref<64x128xf32, #tpu.memory_space<vmem>>) attributes {dimension_semantics = [#tpu.dimension_semantics<parallel>], iteration_bounds = array<i64: 2>, scalar_prefetch = 0 : i64, scratch_operands = 1 : i64, tpu.core_type = #tpu.core_type<tc>, window_params = [{transform_indices = @transform_0, window_bounds = array<i64: 1, 256, 3>}, {pipeline_mode = #tpu.pipeline_mode<synchronous>, transform_indices = @transform_1, window_bounds = array<i64: 1024, 256>}, {pipeline_mode = #tpu.pipeline_mode<synchronous>, transform_indices = @transform_2, window_bounds = array<i64: 64, 256>}, {pipeline_mode = #tpu.pipeline_mode<synchronous>, transform_indices = @transform_3, window_bounds = array<i64: 3, 24>}, {pipeline_mode = #tpu.pipeline_mode<synchronous>, transform_indices = @transform_4, window_bounds = array<i64: 128, 512>}, {pipeline_mode = #tpu.pipeline_mode<synchronous>, transform_indices = @transform_5, window_bounds = array<i64: 1, 512>}, {pipeline_mode = #tpu.pipeline_mode<synchronous>, transform_indices = @transform_6, window_bounds = array<i64: 1, 512>}, {pipeline_mode = #tpu.pipeline_mode<synchronous>, transform_indices = @transform_7, window_bounds = array<i64: 512, 16>}, {pipeline_mode = #tpu.pipeline_mode<synchronous>, transform_indices = @transform_8, window_bounds = array<i64: 16, 16>}, {transform_indices = @transform_9, window_bounds = array<i64: 1, 2, 5, 5, 1>}]} {
    %c0 = arith.constant 0 : index
    %c0_0 = arith.constant 0 : index
    %c0_1 = arith.constant 0 : index
    %0 = vector.load %arg1[%c0, %c0_0, %c0_1] : memref<1x256x3xf32, #tpu.memory_space<vmem>>, vector<1x256x3xf32>
    %1 = vector.shape_cast %0 : vector<1x256x3xf32> to vector<256x3xf32>
    %c0_2 = arith.constant 0 : index
    %c0_3 = arith.constant 0 : index
    %2 = vector.load %arg4[%c0_2, %c0_3] : memref<3x24xf32, #tpu.memory_space<vmem>>, vector<3x24xf32>
    %cst = arith.constant dense<0.000000e+00> : vector<256x24xf32>
    %3 = tpu.matmul %1, %2, %cst {dimension_numbers = #tpu.dot_dimension_numbers<[1], [0], [0], [1], [0, 0, 1, 1], [], []>} : vector<256x3xf32>, vector<3x24xf32>, vector<256x24xf32> -> vector<256x24xf32>
    %4 = vector.extract_strided_slice %3 {offsets = [0, 0], sizes = [256, 8], strides = [1, 1]} : vector<256x24xf32> to vector<256x8xf32>
    %5 = vector.extract_strided_slice %3 {offsets = [0, 8], sizes = [256, 16], strides = [1, 1]} : vector<256x24xf32> to vector<256x16xf32>
    %c0_4 = arith.constant 0 : index
    %c0_5 = arith.constant 0 : index
    %6 = vector.load %arg2[%c0_4, %c0_5] : memref<1024x256xf32, #tpu.memory_space<vmem>>, vector<1024x256xf32>
    %cst_6 = arith.constant dense<0.000000e+00> : vector<1024x8xf32>
    %7 = tpu.matmul %6, %4, %cst_6 {dimension_numbers = #tpu.dot_dimension_numbers<[1], [0], [0], [1], [0, 0, 1, 1], [], []>} : vector<1024x256xf32>, vector<256x8xf32>, vector<1024x8xf32> -> vector<1024x8xf32>
    %cst_7 = arith.constant 0.000000e+00 : f32
    %8 = vector.broadcast %cst_7 : f32 to vector<1024x8xf32>
    %9 = arith.cmpf oge, %7, %8 : vector<1024x8xf32>
    %cst_8 = arith.constant 2.000000e-01 : f32
    %10 = vector.broadcast %cst_8 : f32 to vector<1024x8xf32>
    %11 = arith.mulf %10, %7 : vector<1024x8xf32>
    %12 = arith.select %9, %7, %11 : vector<1024x8xi1>, vector<1024x8xf32>
    %13 = vector.extract_strided_slice %12 {offsets = [0, 0], sizes = [64, 8], strides = [1, 1]} : vector<1024x8xf32> to vector<64x8xf32>
    %c0_9 = arith.constant 0 : index
    %c0_10 = arith.constant 0 : index
    %14 = vector.load %arg11[%c0_9, %c0_10] : memref<64x128xf32, #tpu.memory_space<vmem>>, vector<64x8xf32>
    tpu.vector_store %arg11[%c0_9, %c0_10], %13 {strides = array<i32>} : memref<64x128xf32, #tpu.memory_space<vmem>>, vector<64x8xf32>,
    %15 = vector.extract_strided_slice %12 {offsets = [64, 0], sizes = [64, 8], strides = [1, 1]} : vector<1024x8xf32> to vector<64x8xf32>
    %c0_11 = arith.constant 0 : index
    %c8 = arith.constant 8 : index
    %16 = vector.load %arg11[%c0_11, %c8] : memref<64x128xf32, #tpu.memory_space<vmem>>, vector<64x8xf32>
    tpu.vector_store %arg11[%c0_11, %c8], %15 {strides = array<i32>} : memref<64x128xf32, #tpu.memory_space<vmem>>, vector<64x8xf32>,
    %17 = vector.extract_strided_slice %12 {offsets = [128, 0], sizes = [64, 8], strides = [1, 1]} : vector<1024x8xf32> to vector<64x8xf32>
    %c0_12 = arith.constant 0 : index
    %c16 = arith.constant 16 : index
    %18 = vector.load %arg11[%c0_12, %c16] : memref<64x128xf32, #tpu.memory_space<vmem>>, vector<64x8xf32>
    tpu.vector_store %arg11[%c0_12, %c16], %17 {strides = array<i32>} : memref<64x128xf32, #tpu.memory_space<vmem>>, vector<64x8xf32>,
    %19 = vector.extract_strided_slice %12 {offsets = [192, 0], sizes = [64, 8], strides = [1, 1]} : vector<1024x8xf32> to vector<64x8xf32>
    %c0_13 = arith.constant 0 : index
    %c24 = arith.constant 24 : index
    %20 = vector.load %arg11[%c0_13, %c24] : memref<64x128xf32, #tpu.memory_space<vmem>>, vector<64x8xf32>
    tpu.vector_store %arg11[%c0_13, %c24], %19 {strides = array<i32>} : memref<64x128xf32, #tpu.memory_space<vmem>>, vector<64x8xf32>,
    %21 = vector.extract_strided_slice %12 {offsets = [256, 0], sizes = [64, 8], strides = [1, 1]} : vector<1024x8xf32> to vector<64x8xf32>
    %c0_14 = arith.constant 0 : index
    %c32 = arith.constant 32 : index
    %22 = vector.load %arg11[%c0_14, %c32] : memref<64x128xf32, #tpu.memory_space<vmem>>, vector<64x8xf32>
    tpu.vector_store %arg11[%c0_14, %c32], %21 {strides = array<i32>} : memref<64x128xf32, #tpu.memory_space<vmem>>, vector<64x8xf32>,
    %23 = vector.extract_strided_slice %12 {offsets = [320, 0], sizes = [64, 8], strides = [1, 1]} : vector<1024x8xf32> to vector<64x8xf32>
    %c0_15 = arith.constant 0 : index
    %c40 = arith.constant 40 : index
    %24 = vector.load %arg11[%c0_15, %c40] : memref<64x128xf32, #tpu.memory_space<vmem>>, vector<64x8xf32>
    tpu.vector_store %arg11[%c0_15, %c40], %23 {strides = array<i32>} : memref<64x128xf32, #tpu.memory_space<vmem>>, vector<64x8xf32>,
    %25 = vector.extract_strided_slice %12 {offsets = [384, 0], sizes = [64, 8], strides = [1, 1]} : vector<1024x8xf32> to vector<64x8xf32>
    %c0_16 = arith.constant 0 : index
    %c48 = arith.constant 48 : index
    %26 = vector.load %arg11[%c0_16, %c48] : memref<64x128xf32, #tpu.memory_space<vmem>>, vector<64x8xf32>
    tpu.vector_store %arg11[%c0_16, %c48], %25 {strides = array<i32>} : memref<64x128xf32, #tpu.memory_space<vmem>>, vector<64x8xf32>,
    %27 = vector.extract_strided_slice %12 {offsets = [448, 0], sizes = [64, 8], strides = [1, 1]} : vector<1024x8xf32> to vector<64x8xf32>
    %c0_17 = arith.constant 0 : index
    %c56 = arith.constant 56 : index
    %28 = vector.load %arg11[%c0_17, %c56] : memref<64x128xf32, #tpu.memory_space<vmem>>, vector<64x8xf32>
    tpu.vector_store %arg11[%c0_17, %c56], %27 {strides = array<i32>} : memref<64x128xf32, #tpu.memory_space<vmem>>, vector<64x8xf32>,
    %29 = vector.extract_strided_slice %12 {offsets = [512, 0], sizes = [64, 8], strides = [1, 1]} : vector<1024x8xf32> to vector<64x8xf32>
    %c0_18 = arith.constant 0 : index
    %c64 = arith.constant 64 : index
    %30 = vector.load %arg11[%c0_18, %c64] : memref<64x128xf32, #tpu.memory_space<vmem>>, vector<64x8xf32>
    tpu.vector_store %arg11[%c0_18, %c64], %29 {strides = array<i32>} : memref<64x128xf32, #tpu.memory_space<vmem>>, vector<64x8xf32>,
    %31 = vector.extract_strided_slice %12 {offsets = [576, 0], sizes = [64, 8], strides = [1, 1]} : vector<1024x8xf32> to vector<64x8xf32>
    %c0_19 = arith.constant 0 : index
    %c72 = arith.constant 72 : index
    %32 = vector.load %arg11[%c0_19, %c72] : memref<64x128xf32, #tpu.memory_space<vmem>>, vector<64x8xf32>
    tpu.vector_store %arg11[%c0_19, %c72], %31 {strides = array<i32>} : memref<64x128xf32, #tpu.memory_space<vmem>>, vector<64x8xf32>,
    %33 = vector.extract_strided_slice %12 {offsets = [640, 0], sizes = [64, 8], strides = [1, 1]} : vector<1024x8xf32> to vector<64x8xf32>
    %c0_20 = arith.constant 0 : index
    %c80 = arith.constant 80 : index
    %34 = vector.load %arg11[%c0_20, %c80] : memref<64x128xf32, #tpu.memory_space<vmem>>, vector<64x8xf32>
    tpu.vector_store %arg11[%c0_20, %c80], %33 {strides = array<i32>} : memref<64x128xf32, #tpu.memory_space<vmem>>, vector<64x8xf32>,
    %35 = vector.extract_strided_slice %12 {offsets = [704, 0], sizes = [64, 8], strides = [1, 1]} : vector<1024x8xf32> to vector<64x8xf32>
    %c0_21 = arith.constant 0 : index
    %c88 = arith.constant 88 : index
    %36 = vector.load %arg11[%c0_21, %c88] : memref<64x128xf32, #tpu.memory_space<vmem>>, vector<64x8xf32>
    tpu.vector_store %arg11[%c0_21, %c88], %35 {strides = array<i32>} : memref<64x128xf32, #tpu.memory_space<vmem>>, vector<64x8xf32>,
    %37 = vector.extract_strided_slice %12 {offsets = [768, 0], sizes = [64, 8], strides = [1, 1]} : vector<1024x8xf32> to vector<64x8xf32>
    %c0_22 = arith.constant 0 : index
    %c96 = arith.constant 96 : index
    %38 = vector.load %arg11[%c0_22, %c96] : memref<64x128xf32, #tpu.memory_space<vmem>>, vector<64x8xf32>
    tpu.vector_store %arg11[%c0_22, %c96], %37 {strides = array<i32>} : memref<64x128xf32, #tpu.memory_space<vmem>>, vector<64x8xf32>,
    %39 = vector.extract_strided_slice %12 {offsets = [832, 0], sizes = [64, 8], strides = [1, 1]} : vector<1024x8xf32> to vector<64x8xf32>
    %c0_23 = arith.constant 0 : index
    %c104 = arith.constant 104 : index
    %40 = vector.load %arg11[%c0_23, %c104] : memref<64x128xf32, #tpu.memory_space<vmem>>, vector<64x8xf32>
    tpu.vector_store %arg11[%c0_23, %c104], %39 {strides = array<i32>} : memref<64x128xf32, #tpu.memory_space<vmem>>, vector<64x8xf32>,
    %41 = vector.extract_strided_slice %12 {offsets = [896, 0], sizes = [64, 8], strides = [1, 1]} : vector<1024x8xf32> to vector<64x8xf32>
    %c0_24 = arith.constant 0 : index
    %c112 = arith.constant 112 : index
    %42 = vector.load %arg11[%c0_24, %c112] : memref<64x128xf32, #tpu.memory_space<vmem>>, vector<64x8xf32>
    tpu.vector_store %arg11[%c0_24, %c112], %41 {strides = array<i32>} : memref<64x128xf32, #tpu.memory_space<vmem>>, vector<64x8xf32>,
    %43 = vector.extract_strided_slice %12 {offsets = [960, 0], sizes = [64, 8], strides = [1, 1]} : vector<1024x8xf32> to vector<64x8xf32>
    %c0_25 = arith.constant 0 : index
    %c120 = arith.constant 120 : index
    %44 = vector.load %arg11[%c0_25, %c120] : memref<64x128xf32, #tpu.memory_space<vmem>>, vector<64x8xf32>
    tpu.vector_store %arg11[%c0_25, %c120], %43 {strides = array<i32>} : memref<64x128xf32, #tpu.memory_space<vmem>>, vector<64x8xf32>,
    %c0_26 = arith.constant 0 : index
    %c0_27 = arith.constant 0 : index
    %45 = vector.load %arg11[%c0_26, %c0_27] : memref<64x128xf32, #tpu.memory_space<vmem>>, vector<64x128xf32>
    %46 = arith.truncf %45 : vector<64x128xf32> to vector<64x128xbf16>
    %c0_28 = arith.constant 0 : index
    %c0_29 = arith.constant 0 : index
    %47 = vector.load %arg5[%c0_28, %c0_29] : memref<128x512xbf16, #tpu.memory_space<vmem>>, vector<128x512xbf16>
    %cst_30 = arith.constant dense<0.000000e+00> : vector<64x512xf32>
    %48 = tpu.matmul %46, %47, %cst_30 {dimension_numbers = #tpu.dot_dimension_numbers<[1], [0], [0], [1], [0, 0, 1, 1], [], []>} : vector<64x128xbf16>, vector<128x512xbf16>, vector<64x512xf32> -> vector<64x512xf32>
    %c0_31 = arith.constant 0 : index
    %c0_32 = arith.constant 0 : index
    %49 = vector.load %arg6[%c0_31, %c0_32] : memref<1x512xf32, #tpu.memory_space<vmem>>, vector<1x512xf32>
    %50 = vector.broadcast %49 : vector<1x512xf32> to vector<64x512xf32>
    %51 = arith.mulf %48, %50 : vector<64x512xf32>
    %c0_33 = arith.constant 0 : index
    %c0_34 = arith.constant 0 : index
    %52 = vector.load %arg7[%c0_33, %c0_34] : memref<1x512xf32, #tpu.memory_space<vmem>>, vector<1x512xf32>
    %53 = vector.broadcast %52 : vector<1x512xf32> to vector<64x512xf32>
    %54 = arith.addf %51, %53 : vector<64x512xf32>
    %cst_35 = arith.constant 0.000000e+00 : f32
    %55 = vector.broadcast %cst_35 : f32 to vector<64x512xf32>
    %56 = arith.cmpf oge, %54, %55 : vector<64x512xf32>
    %cst_36 = arith.constant 2.000000e-01 : f32
    %57 = vector.broadcast %cst_36 : f32 to vector<64x512xf32>
    %58 = arith.mulf %57, %54 : vector<64x512xf32>
    %59 = arith.select %56, %54, %58 : vector<64x512xi1>, vector<64x512xf32>
    %60 = arith.truncf %59 : vector<64x512xf32> to vector<64x512xbf16>
    %c0_37 = arith.constant 0 : index
    %c0_38 = arith.constant 0 : index
    %61 = vector.load %arg8[%c0_37, %c0_38] : memref<512x16xbf16, #tpu.memory_space<vmem>>, vector<512x16xbf16>
    %cst_39 = arith.constant dense<0.000000e+00> : vector<64x16xf32>
    %62 = tpu.matmul %60, %61, %cst_39 {dimension_numbers = #tpu.dot_dimension_numbers<[1], [0], [0], [1], [0, 0, 1, 1], [], []>} : vector<64x512xbf16>, vector<512x16xbf16>, vector<64x16xf32> -> vector<64x16xf32>
    %63 = vector.shape_cast %62 : vector<64x16xf32> to vector<8x8x16xf32>
    %cst_40 = arith.constant 0.000000e+00 : f32
    %64 = vector.broadcast %cst_40 : f32 to vector<5x5x1xf32>
    %65 = vector.extract_strided_slice %63 {offsets = [0, 0, 0], sizes = [5, 5, 1], strides = [1, 1, 1]} : vector<8x8x16xf32> to vector<5x5x1xf32>
    %66 = arith.addf %64, %65 : vector<5x5x1xf32>
    %67 = vector.extract_strided_slice %63 {offsets = [0, 1, 1], sizes = [5, 5, 1], strides = [1, 1, 1]} : vector<8x8x16xf32> to vector<5x5x1xf32>
    %68 = arith.addf %66, %67 : vector<5x5x1xf32>
    %69 = vector.extract_strided_slice %63 {offsets = [0, 2, 2], sizes = [5, 5, 1], strides = [1, 1, 1]} : vector<8x8x16xf32> to vector<5x5x1xf32>
    %70 = arith.addf %68, %69 : vector<5x5x1xf32>
    %71 = vector.extract_strided_slice %63 {offsets = [0, 3, 3], sizes = [5, 5, 1], strides = [1, 1, 1]} : vector<8x8x16xf32> to vector<5x5x1xf32>
    %72 = arith.addf %70, %71 : vector<5x5x1xf32>
    %73 = vector.extract_strided_slice %63 {offsets = [1, 0, 4], sizes = [5, 5, 1], strides = [1, 1, 1]} : vector<8x8x16xf32> to vector<5x5x1xf32>
    %74 = arith.addf %72, %73 : vector<5x5x1xf32>
    %75 = vector.extract_strided_slice %63 {offsets = [1, 1, 5], sizes = [5, 5, 1], strides = [1, 1, 1]} : vector<8x8x16xf32> to vector<5x5x1xf32>
    %76 = arith.addf %74, %75 : vector<5x5x1xf32>
    %77 = vector.extract_strided_slice %63 {offsets = [1, 2, 6], sizes = [5, 5, 1], strides = [1, 1, 1]} : vector<8x8x16xf32> to vector<5x5x1xf32>
    %78 = arith.addf %76, %77 : vector<5x5x1xf32>
    %79 = vector.extract_strided_slice %63 {offsets = [1, 3, 7], sizes = [5, 5, 1], strides = [1, 1, 1]} : vector<8x8x16xf32> to vector<5x5x1xf32>
    %80 = arith.addf %78, %79 : vector<5x5x1xf32>
    %81 = vector.extract_strided_slice %63 {offsets = [2, 0, 8], sizes = [5, 5, 1], strides = [1, 1, 1]} : vector<8x8x16xf32> to vector<5x5x1xf32>
    %82 = arith.addf %80, %81 : vector<5x5x1xf32>
    %83 = vector.extract_strided_slice %63 {offsets = [2, 1, 9], sizes = [5, 5, 1], strides = [1, 1, 1]} : vector<8x8x16xf32> to vector<5x5x1xf32>
    %84 = arith.addf %82, %83 : vector<5x5x1xf32>
    %85 = vector.extract_strided_slice %63 {offsets = [2, 2, 10], sizes = [5, 5, 1], strides = [1, 1, 1]} : vector<8x8x16xf32> to vector<5x5x1xf32>
    %86 = arith.addf %84, %85 : vector<5x5x1xf32>
    %87 = vector.extract_strided_slice %63 {offsets = [2, 3, 11], sizes = [5, 5, 1], strides = [1, 1, 1]} : vector<8x8x16xf32> to vector<5x5x1xf32>
    %88 = arith.addf %86, %87 : vector<5x5x1xf32>
    %89 = vector.extract_strided_slice %63 {offsets = [3, 0, 12], sizes = [5, 5, 1], strides = [1, 1, 1]} : vector<8x8x16xf32> to vector<5x5x1xf32>
    %90 = arith.addf %88, %89 : vector<5x5x1xf32>
    %91 = vector.extract_strided_slice %63 {offsets = [3, 1, 13], sizes = [5, 5, 1], strides = [1, 1, 1]} : vector<8x8x16xf32> to vector<5x5x1xf32>
    %92 = arith.addf %90, %91 : vector<5x5x1xf32>
    %93 = vector.extract_strided_slice %63 {offsets = [3, 2, 14], sizes = [5, 5, 1], strides = [1, 1, 1]} : vector<8x8x16xf32> to vector<5x5x1xf32>
    %94 = arith.addf %92, %93 : vector<5x5x1xf32>
    %95 = vector.extract_strided_slice %63 {offsets = [3, 3, 15], sizes = [5, 5, 1], strides = [1, 1, 1]} : vector<8x8x16xf32> to vector<5x5x1xf32>
    %96 = arith.addf %94, %95 : vector<5x5x1xf32>
    %c0_41 = arith.constant 0 : index
    %c0_42 = arith.constant 0 : index
    %97 = vector.load %arg3[%c0_41, %c0_42] : memref<64x256xf32, #tpu.memory_space<vmem>>, vector<64x256xf32>
    %cst_43 = arith.constant dense<0.000000e+00> : vector<64x16xf32>
    %98 = tpu.matmul %97, %5, %cst_43 {dimension_numbers = #tpu.dot_dimension_numbers<[1], [0], [0], [1], [0, 0, 1, 1], [], []>} : vector<64x256xf32>, vector<256x16xf32>, vector<64x16xf32> -> vector<64x16xf32>
    %cst_44 = arith.constant 0.000000e+00 : f32
    %99 = vector.broadcast %cst_44 : f32 to vector<64x16xf32>
    %100 = arith.cmpf oge, %98, %99 : vector<64x16xf32>
    %cst_45 = arith.constant 2.000000e-01 : f32
    %101 = vector.broadcast %cst_45 : f32 to vector<64x16xf32>
    %102 = arith.mulf %101, %98 : vector<64x16xf32>
    %103 = arith.select %100, %98, %102 : vector<64x16xi1>, vector<64x16xf32>
    %c0_46 = arith.constant 0 : index
    %c0_47 = arith.constant 0 : index
    %104 = vector.load %arg9[%c0_46, %c0_47] : memref<16x16xf32, #tpu.memory_space<vmem>>, vector<16x16xf32>
    %cst_48 = arith.constant dense<0.000000e+00> : vector<64x16xf32>
    %105 = tpu.matmul %103, %104, %cst_48 {dimension_numbers = #tpu.dot_dimension_numbers<[1], [0], [0], [1], [0, 0, 1, 1], [], []>} : vector<64x16xf32>, vector<16x16xf32>, vector<64x16xf32> -> vector<64x16xf32>
    %106 = vector.shape_cast %105 : vector<64x16xf32> to vector<8x8x16xf32>
    %cst_49 = arith.constant 0.000000e+00 : f32
    %107 = vector.broadcast %cst_49 : f32 to vector<5x5x1xf32>
    %108 = vector.extract_strided_slice %106 {offsets = [0, 0, 0], sizes = [5, 5, 1], strides = [1, 1, 1]} : vector<8x8x16xf32> to vector<5x5x1xf32>
    %109 = arith.addf %107, %108 : vector<5x5x1xf32>
    %110 = vector.extract_strided_slice %106 {offsets = [0, 1, 1], sizes = [5, 5, 1], strides = [1, 1, 1]} : vector<8x8x16xf32> to vector<5x5x1xf32>
    %111 = arith.addf %109, %110 : vector<5x5x1xf32>
    %112 = vector.extract_strided_slice %106 {offsets = [0, 2, 2], sizes = [5, 5, 1], strides = [1, 1, 1]} : vector<8x8x16xf32> to vector<5x5x1xf32>
    %113 = arith.addf %111, %112 : vector<5x5x1xf32>
    %114 = vector.extract_strided_slice %106 {offsets = [0, 3, 3], sizes = [5, 5, 1], strides = [1, 1, 1]} : vector<8x8x16xf32> to vector<5x5x1xf32>
    %115 = arith.addf %113, %114 : vector<5x5x1xf32>
    %116 = vector.extract_strided_slice %106 {offsets = [1, 0, 4], sizes = [5, 5, 1], strides = [1, 1, 1]} : vector<8x8x16xf32> to vector<5x5x1xf32>
    %117 = arith.addf %115, %116 : vector<5x5x1xf32>
    %118 = vector.extract_strided_slice %106 {offsets = [1, 1, 5], sizes = [5, 5, 1], strides = [1, 1, 1]} : vector<8x8x16xf32> to vector<5x5x1xf32>
    %119 = arith.addf %117, %118 : vector<5x5x1xf32>
    %120 = vector.extract_strided_slice %106 {offsets = [1, 2, 6], sizes = [5, 5, 1], strides = [1, 1, 1]} : vector<8x8x16xf32> to vector<5x5x1xf32>
    %121 = arith.addf %119, %120 : vector<5x5x1xf32>
    %122 = vector.extract_strided_slice %106 {offsets = [1, 3, 7], sizes = [5, 5, 1], strides = [1, 1, 1]} : vector<8x8x16xf32> to vector<5x5x1xf32>
    %123 = arith.addf %121, %122 : vector<5x5x1xf32>
    %124 = vector.extract_strided_slice %106 {offsets = [2, 0, 8], sizes = [5, 5, 1], strides = [1, 1, 1]} : vector<8x8x16xf32> to vector<5x5x1xf32>
    %125 = arith.addf %123, %124 : vector<5x5x1xf32>
    %126 = vector.extract_strided_slice %106 {offsets = [2, 1, 9], sizes = [5, 5, 1], strides = [1, 1, 1]} : vector<8x8x16xf32> to vector<5x5x1xf32>
    %127 = arith.addf %125, %126 : vector<5x5x1xf32>
    %128 = vector.extract_strided_slice %106 {offsets = [2, 2, 10], sizes = [5, 5, 1], strides = [1, 1, 1]} : vector<8x8x16xf32> to vector<5x5x1xf32>
    %129 = arith.addf %127, %128 : vector<5x5x1xf32>
    %130 = vector.extract_strided_slice %106 {offsets = [2, 3, 11], sizes = [5, 5, 1], strides = [1, 1, 1]} : vector<8x8x16xf32> to vector<5x5x1xf32>
    %131 = arith.addf %129, %130 : vector<5x5x1xf32>
    %132 = vector.extract_strided_slice %106 {offsets = [3, 0, 12], sizes = [5, 5, 1], strides = [1, 1, 1]} : vector<8x8x16xf32> to vector<5x5x1xf32>
    %133 = arith.addf %131, %132 : vector<5x5x1xf32>
    %134 = vector.extract_strided_slice %106 {offsets = [3, 1, 13], sizes = [5, 5, 1], strides = [1, 1, 1]} : vector<8x8x16xf32> to vector<5x5x1xf32>
    %135 = arith.addf %133, %134 : vector<5x5x1xf32>
    %136 = vector.extract_strided_slice %106 {offsets = [3, 2, 14], sizes = [5, 5, 1], strides = [1, 1, 1]} : vector<8x8x16xf32> to vector<5x5x1xf32>
    %137 = arith.addf %135, %136 : vector<5x5x1xf32>
    %138 = vector.extract_strided_slice %106 {offsets = [3, 3, 15], sizes = [5, 5, 1], strides = [1, 1, 1]} : vector<8x8x16xf32> to vector<5x5x1xf32>
    %139 = arith.addf %137, %138 : vector<5x5x1xf32>
    %140 = vector.shape_cast %96 : vector<5x5x1xf32> to vector<1x5x5x1xf32>
    %141 = vector.shape_cast %139 : vector<5x5x1xf32> to vector<1x5x5x1xf32>
    %142 = tpu.concatenate %140, %141 in 0 : vector<1x5x5x1xf32>, vector<1x5x5x1xf32> -> vector<2x5x5x1xf32>
    %c0_50 = arith.constant 0 : index
    %c0_51 = arith.constant 0 : index
    %c0_52 = arith.constant 0 : index
    %c0_53 = arith.constant 0 : index
    %c0_54 = arith.constant 0 : index
    %143 = vector.load %arg10[%c0_50, %c0_51, %c0_52, %c0_53, %c0_54] : memref<1x2x5x5x1xf32, #tpu.memory_space<vmem>>, vector<1x2x5x5x1xf32>
    %144 = vector.shape_cast %143 : vector<1x2x5x5x1xf32> to vector<2x5x5x1xf32>
    %145 = vector.shape_cast %142 : vector<2x5x5x1xf32> to vector<1x2x5x5x1xf32>
    tpu.vector_store %arg10[%c0_50, %c0_51, %c0_52, %c0_53, %c0_54], %145 {strides = array<i32>} : memref<1x2x5x5x1xf32, #tpu.memory_space<vmem>>, vector<1x2x5x5x1xf32>,
    return
  }
  func.func @transform_0(%arg0: i32) -> (i32, i32, i32) {
    %c0_i32 = arith.constant 0 : i32
    %c0_i32_0 = arith.constant 0 : i32
    %c0_i32_1 = arith.constant 0 : i32
    return %arg0, %c0_i32, %c0_i32_0 : i32, i32, i32
  }
  func.func @transform_1(%arg0: i32) -> (i32, i32) {
    %c0_i32 = arith.constant 0 : i32
    %c0_i32_0 = arith.constant 0 : i32
    %c0_i32_1 = arith.constant 0 : i32
    return %c0_i32, %c0_i32_0 : i32, i32
  }
  func.func @transform_2(%arg0: i32) -> (i32, i32) {
    %c0_i32 = arith.constant 0 : i32
    %c0_i32_0 = arith.constant 0 : i32
    %c0_i32_1 = arith.constant 0 : i32
    return %c0_i32, %c0_i32_0 : i32, i32
  }
  func.func @transform_3(%arg0: i32) -> (i32, i32) {
    %c0_i32 = arith.constant 0 : i32
    %c0_i32_0 = arith.constant 0 : i32
    %c0_i32_1 = arith.constant 0 : i32
    return %c0_i32, %c0_i32_0 : i32, i32
  }
  func.func @transform_4(%arg0: i32) -> (i32, i32) {
    %c0_i32 = arith.constant 0 : i32
    %c0_i32_0 = arith.constant 0 : i32
    %c0_i32_1 = arith.constant 0 : i32
    return %c0_i32, %c0_i32_0 : i32, i32
  }
  func.func @transform_5(%arg0: i32) -> (i32, i32) {
    %c0_i32 = arith.constant 0 : i32
    %c0_i32_0 = arith.constant 0 : i32
    %c0_i32_1 = arith.constant 0 : i32
    return %c0_i32, %c0_i32_0 : i32, i32
  }
  func.func @transform_6(%arg0: i32) -> (i32, i32) {
    %c0_i32 = arith.constant 0 : i32
    %c0_i32_0 = arith.constant 0 : i32
    %c0_i32_1 = arith.constant 0 : i32
    return %c0_i32, %c0_i32_0 : i32, i32
  }
  func.func @transform_7(%arg0: i32) -> (i32, i32) {
    %c0_i32 = arith.constant 0 : i32
    %c0_i32_0 = arith.constant 0 : i32
    %c0_i32_1 = arith.constant 0 : i32
    return %c0_i32, %c0_i32_0 : i32, i32
  }
  func.func @transform_8(%arg0: i32) -> (i32, i32) {
    %c0_i32 = arith.constant 0 : i32
    %c0_i32_0 = arith.constant 0 : i32
    %c0_i32_1 = arith.constant 0 : i32
    return %c0_i32, %c0_i32_0 : i32, i32
  }
  func.func @transform_9(%arg0: i32) -> (i32, i32, i32, i32, i32) {
    %c0_i32 = arith.constant 0 : i32
    %c0_i32_0 = arith.constant 0 : i32
    %c0_i32_1 = arith.constant 0 : i32
    %c0_i32_2 = arith.constant 0 : i32
    %c0_i32_3 = arith.constant 0 : i32
    return %arg0, %c0_i32, %c0_i32_0, %c0_i32_1, %c0_i32_2 : i32, i32, i32, i32, i32
  }
}

</mosaic_0001>

<bundles_post_ra>
// kernel: projected_discriminator_forward.1
= control target key start
LH: loop header
LB: loop body
LE: loop exit
PB: predicated region body
PF: predicated region fallthrough
CT: control target
= control target key end

     0   :  { %14 = vsyncpa [#allocation4], 0  ;;  %s5606_s30 = smov 0   ;;  %s7064_s0 = inlined_call_operand.vmem [shape: f32[2,256,3], index: 0, kind: input, shape index: {}]   ;;  %s7065_s1 = inlined_call_operand.hbm [shape: f32[1024,256], index: 1, kind: input, shape index: {}]   ;;  %s7066_s2 = inlined_call_operand.vmem [shape: f32[64,256], index: 2, kind: input, shape index: {}]   ;;  %s7067_s3 = inlined_call_operand.vmem [shape: f32[3,24], index: 3, kind: input, shape index: {}]   ;;  %s7068_s4 = inlined_call_operand.vmem [shape: bf16[128,512], index: 4, kind: input, shape index: {}]   ;;  %s7069_s5 = inlined_call_operand.vmem [shape: f32[1,512], index: 5, kind: input, shape index: {}]   ;;  %s7070_s6 = inlined_call_operand.vmem [shape: f32[1,512], index: 6, kind: input, shape index: {}]   ;;  %s7071_s7 = inlined_call_operand.vmem [shape: bf16[512,16], index: 7, kind: input, shape index: {}]   ;;  %s7072_s8 = inlined_call_operand.vmem [shape: f32[16,16], index: 8, kind: input, shape index: {}]   ;;  %s7073_s9 = inlined_call_operand.vmem [shape: f32[2,2,5,5,1], index: 9, kind: output, shape index: {}]  }
   0x1 LB: > { %s5612_s10 = sadd.s32 4294967295, %s5520_s30   ;;  %p4792_p0 = scmp.ge.s32.totalorder %s5520_s30, 1  ;;  %s5520_s30 = sphi %s5606_s30, %s20_s30  }
   0x2   : > { %p245_p1 = scmp.lt.s32.totalorder %s5520_s30, 3  ;;  %s5522_s11 = smov [#allocation3]  }
   0x3   : > { %s257_s12 = sshll.u32 %s5522_s11, 4  ;;  %p7074_p3 = scmp.eq.s32.totalorder %s5612_s10, 0  ;;  %s258_s12 = int_to_ptr.vmem [resolvable:$true] %s257_s12 }
   0x4   : > { %p5616_p2 = pnand %p4792_p0, %p245_p1  ;;  %s5482_s17 = scalar_lea.hbm %s7065_s1, 32768 }
   0x5   : > { %p5483_p6 = scmp.ne.s32.totalorder %s7065_s1, %s5482_s17  ;;  %p5489_p10 = scmp.lt.u32.totalorder %s5482_s17, %s7065_s1 }
   0x6   : > { %s7089_s13 = scalar_select %p5616_p2, 1, 0 }
   0x7   : > { %p5274_p4 = pneg %p5616_p2 }
   0x9   : > { %p5625_p5 = pnand %p7074_p3, %p5274_p4 }
   0xb   : > { %p5484_p7 = pneg %p5625_p5 }
   0xd   : > { %p5485_p8 = pnand %p5484_p7, %p5483_p6 }
   0xf   : > { %p5486_p9 = pneg %p5485_p8 }
  0x11   : > { %p5491_p11 = pnand %p5489_p10, %p5486_p9 }
  0x13   : > { %5494 = shalt.err (!%p5491_p11)
}
  0x14   : > { %s5495_s22 = scalar_lea.vmem %s258_s12, 32768  ;;  %p5503_p1 = scmp.lt.s32.totalorder %s258_s12, %s258_s12 }
  0x15   : > { %p5496_p12 = scmp.ne.s32.totalorder %s258_s12, %s5495_s22  ;;  %p5504_p4 = scmp.lt.s32.totalorder %s5495_s22, %s5495_s22 }
  0x17   : > { %p5498_p13 = pnand %p5496_p12, %p5484_p7  ;;  %p5505_p3 = por %p5504_p4, %p5503_p1 }
  0x19   : > { %p5499_p0 = pneg %p5498_p13 }
  0x1b   : > { %p5506_p2 = pnand %p5505_p3, %p5499_p0 }
  0x1d   : > { %5509 = shalt.err (!%p5506_p2)
}
  0x1e   : > { %s5523_s23 = smov 256   ;;  %s5524_s24 = smov 16  }
  0x1f   : > { %5277 = dma.hbm_to_vmem [thread:$0]  (!%p5625_p5), %s7065_s1, 32768, %s258_s12, [#allocation4], %s5523_s23, %s5523_s23, %s5524_s24  }
  0x20   : > { %p7091_p6 = scmp.ne.s32.totalorder %s7089_s13, 0 }
  0x22   : > { %302 = sbr.rel (%p7091_p6) target bundleno = 1980 (0x7bc), region = 56 }
  0x29   : > { %p7092_p8 = scmp.eq.s32.totalorder %s5612_s10, 0 }
  0x2b   : > { %5515 = dma.done.wait (%p7092_p8), [#allocation4], 32768   ;;  %p7093_p7 = pmov %p7092_p8 }
  0x2c   : > { %p338_p2 = scmp.lt.s32.totalorder %s5612_s10, 1  ;;  %vm479_vm0 = vcmask 1042432   ;;  %vm382_vm1 = vcmask 23552   ;;  %v381_v0 = vld [vmem:[%s7067_s3] sm:$0x7]  ;;  %v5525_v33 = vmov 0.0|0.0  }
  0x2d   : > { %5517 = vsyncadd (%p7093_p7), [#allocation4], 4294934528  ;;  %5087 = vmatprep.subr.msk.mxu0 %vm479_vm0, %v381_v0  ;;  %5237 = vmatprep.subr.bf16.mxu1 %v5525_v33  ;;  %v709_v34 = vld [vmem:[#allocation3 + $0x8] sm:$0xff]  ;;  %v791_v35 = vld [vmem:[#allocation3 + $0x298] sm:$0xff]  ;;  %vm2053_vm4 = vcmask 64512   ;;  %s5526_s14 = smov 40  }
  0x2e   : > { %s7137_s10 = smov (!%p338_p2, %s5612_s10), 1  ;;  %5088 = vmatpush3.msk.msra.mxu0 %vm479_vm0, %v381_v0  ;;  %1233 = vmatprep.mubr.f32.mxu1 %v791_v35  ;;  %s5527_s15 = smov 48  }
  0x2f   : > { %s4907_s27 = sshll.u32 %s7137_s10, 8  ;;  %5153 = vmatprep.subr.bf16.mxu0 %v5525_v33  ;;  %s5528_s16 = smov 8  }
  0x30   : > { %s5659_s11 = scalar_lea.vmem %s7064_s0, %s4907_s27  ;;  %s5529_s17 = smov 56  }
  0x31   : > { %v349_v1 = vld [vmem:[%s5659_s11] sm:$0xff]  ;;  %v350_v2 = vld [vmem:[%s5659_s11 + $0x8] sm:$0xff]  ;;  %v351_v3 = vld [vmem:[%s5659_s11 + $0x10] sm:$0xff]  ;;  %s5530_s18 = smov 16   ;;  %s5531_s19 = smov 64  }
  0x32   : > { %5089 = vmatprep.mubr.msk.f32.mxu0 %vm382_vm1, %v349_v1  ;;  %v352_v4 = vld [vmem:[%s5659_s11 + $0x18] sm:$0xff]  ;;  %v353_v5 = vld [vmem:[%s5659_s11 + $0x20] sm:$0xff]  ;;  %v354_v6 = vld [vmem:[%s5659_s11 + $0x28] sm:$0xff]  ;;  %s5532_s20 = smov 24   ;;  %s5533_s21 = smov 72  }
  0x33   : > { %5090 = vmatmul.mubr.msk.f32.vlgmr.msra.gmra.mrb[0].mxu0 %vm382_vm1, %v350_v2  ;;  %v355_v7 = vld [vmem:[%s5659_s11 + $0x30] sm:$0xff]  ;;  %v356_v8 = vld [vmem:[%s5659_s11 + $0x38] sm:$0xff]  ;;  %v357_v9 = vld [vmem:[%s5659_s11 + $0x40] sm:$0xff]  ;;  %s5534_s22 = smov 32   ;;  %s5535_s27 = smov 80  }
  0x34   : > { %5092 = vmatprep.mubr.msk.f32.mxu0 %vm382_vm1, %v351_v3  ;;  %v358_v10 = vld [vmem:[%s5659_s11 + $0x48] sm:$0xff]  ;;  %v359_v11 = vld [vmem:[%s5659_s11 + $0x50] sm:$0xff]  ;;  %v360_v12 = vld [vmem:[%s5659_s11 + $0x58] sm:$0xff]  ;;  %s5536_s13 = smov 88   ;;  %s5540_s25 = smov 120  }
  0x35   : > { %v361_v13 = vld [vmem:[%s5659_s11 + $0x60] sm:$0xff]  ;;  %v362_v14 = vld [vmem:[%s5659_s11 + $0x68] sm:$0xff]  ;;  %v363_v15 = vld [vmem:[%s5659_s11 + $0x70] sm:$0xff]  ;;  %s5550_s23 = smov 119   ;;  %s5551_s24 = smov 116  }
  0x36   : > { %v364_v16 = vld [vmem:[%s5659_s11 + $0x78] sm:$0xff]  ;;  %v365_v17 = vld [vmem:[%s5659_s11 + $0x80] sm:$0xff]  ;;  %v366_v18 = vld [vmem:[%s5659_s11 + $0x88] sm:$0xff]  ;;  %s5553_s26 = smov 115   ;;  %s5555_s28 = smov 113  }
  0x37   : > { %5093 = vmatmul.mubr.msk.f32.gmra.mrb[2].mxu0 %vm382_vm1, %v352_v4  ;;  %v367_v19 = vld [vmem:[%s5659_s11 + $0x90] sm:$0xff]  ;;  %v368_v20 = vld [vmem:[%s5659_s11 + $0x98] sm:$0xff]  ;;  %v369_v21 = vld [vmem:[%s5659_s11 + $0xa0] sm:$0xff]  ;;  %s5269_s29 = smul.u32 80, %s7137_s10 }
  0x38   : > { %5095 = vmatprep.mubr.msk.f32.mxu0 %vm382_vm1, %v353_v5  ;;  %v370_v22 = vld [vmem:[%s5659_s11 + $0xa8] sm:$0xff]  ;;  %v371_v23 = vld [vmem:[%s5659_s11 + $0xb0] sm:$0xff]  ;;  %v372_v24 = vld [vmem:[%s5659_s11 + $0xb8] sm:$0xff] }
  0x39   : > { %v373_v25 = vld [vmem:[%s5659_s11 + $0xc0] sm:$0xff]  ;;  %v374_v26 = vld [vmem:[%s5659_s11 + $0xc8] sm:$0xff]  ;;  %v375_v27 = vld [vmem:[%s5659_s11 + $0xd0] sm:$0xff] }
  0x3a   : > { %v376_v28 = vld [vmem:[%s5659_s11 + $0xd8] sm:$0xff]  ;;  %v377_v29 = vld [vmem:[%s5659_s11 + $0xe0] sm:$0xff]  ;;  %v378_v30 = vld [vmem:[%s5659_s11 + $0xe8] sm:$0xff] }
  0x3b   : > { %5096 = vmatmul.mubr.msk.f32.gmra.mrb[4].mxu0 %vm382_vm1, %v354_v6  ;;  %v379_v31 = vld [vmem:[%s5659_s11 + $0xf0] sm:$0xff]  ;;  %v380_v32 = vld [vmem:[%s5659_s11 + $0xf8] sm:$0xff] }
  0x3c   : > { %5098 = vmatprep.mubr.msk.f32.mxu0 %vm382_vm1, %v355_v7 }
  0x3f   : > { %5099 = vmatmul.mubr.msk.f32.gmra.mrb[6].mxu0 %vm382_vm1, %v356_v8 }
  0x40   : > { %5101 = vmatprep.mubr.msk.f32.mxu0 %vm382_vm1, %v357_v9 }
  0x43   : > { %5102 = vmatmul.mubr.msk.f32.gmra.mrb[8].mxu0 %vm382_vm1, %v358_v10 }
  0x44   : > { %5104 = vmatprep.mubr.msk.f32.mxu0 %vm382_vm1, %v359_v11 }
  0x47   : > { %5105 = vmatmul.mubr.msk.f32.gmra.mrb[10].mxu0 %vm382_vm1, %v360_v12 }
  0x48   : > { %5107 = vmatprep.mubr.msk.f32.mxu0 %vm382_vm1, %v361_v13 }
  0x4b   : > { %5108 = vmatmul.mubr.msk.f32.gmra.mrb[12].mxu0 %vm382_vm1, %v362_v14 }
  0x4c   : > { %5110 = vmatprep.mubr.msk.f32.mxu0 %vm382_vm1, %v363_v15 }
  0x4f   : > { %5111 = vmatmul.mubr.msk.f32.gmra.mrb[14].mxu0 %vm382_vm1, %v364_v16 }
  0x50   : > { %5113 = vmatprep.mubr.msk.f32.mxu0 %vm382_vm1, %v365_v17 }
  0x53   : > { %5114 = vmatmul.mubr.msk.f32.gmra.mrb[16].mxu0 %vm382_vm1, %v366_v18 }
  0x54   : > { %5116 = vmatprep.mubr.msk.f32.mxu0 %vm382_vm1, %v367_v19 }
  0x57   : > { %5117 = vmatmul.mubr.msk.f32.gmra.mrb[18].mxu0 %vm382_vm1, %v368_v20 }
  0x58   : > { %5119 = vmatprep.mubr.msk.f32.mxu0 %vm382_vm1, %v369_v21 }
  0x5b   : > { %5120 = vmatmul.mubr.msk.f32.gmra.mrb[20].mxu0 %vm382_vm1, %v370_v22 }
  0x5c   : > { %5122 = vmatprep.mubr.msk.f32.mxu0 %vm382_vm1, %v371_v23 }
  0x5f   : > { %5123 = vmatmul.mubr.msk.f32.gmra.mrb[22].mxu0 %vm382_vm1, %v372_v24 }
  0x60   : > { %5125 = vmatprep.mubr.msk.f32.mxu0 %vm382_vm1, %v373_v25 }
  0x63   : > { %5126 = vmatmul.mubr.msk.f32.gmra.mrb[24].mxu0 %vm382_vm1, %v374_v26 }
  0x64   : > { %5128 = vmatprep.mubr.msk.f32.mxu0 %vm382_vm1, %v375_v27 }
  0x67   : > { %5129 = vmatmul.mubr.msk.f32.gmra.mrb[26].mxu0 %vm382_vm1, %v376_v28 }
  0x68   : > { %5131 = vmatprep.mubr.msk.f32.mxu0 %vm382_vm1, %v377_v29 }
  0x6b   : > { %5132 = vmatmul.mubr.msk.f32.gmra.mrb[28].mxu0 %vm382_vm1, %v378_v30  ;;  %v923_v30 = vld [vmem:[#allocation3 + $0x6b8] sm:$0xff] }
  0x6c   : > { %5134 = vmatprep.mubr.msk.f32.mxu0 %vm382_vm1, %v379_v31 }
  0x6f   : > { %5135 = vmatmul.mubr.msk.f32.gmra.mrb[30].mxu0 %vm382_vm1, %v380_v32 }
  0x70   : > { %1028 = vmatprep.mubr.f32.mxu0 %v709_v34 }
 0x106   : > { %v5730_v36 = vpop.f32.mrb[0].mxu0 }
 0x107   : > { %v5732_v37 = vpop.f32.mrb[1].mxu0 }
 0x108   : > { %v5154_v39 = vpack.c.bf16 %v5730_v36, %v5732_v37 }
 0x10a   : > { %v5738_v40 = vpop.f32.mrb[2].mxu0  ;;  %5155 = vmatpush1.bf16.msra.mxu0 %v5154_v39  ;;  %5253 = vmatpush1.bf16.msra.mxu1 %v5154_v39 }
 0x10b   : > { %v5740_v41 = vpop.f32.mrb[3].mxu0  ;;  %5156 = vmatprep.subr.bf16.mxu0 %v5525_v33  ;;  %5238 = vmatprep.subr.bf16.mxu1 %v5525_v33 }
 0x10c   : > { %v5157_v43 = vpack.c.bf16 %v5738_v40, %v5740_v41 }
 0x10e   : > { %v5748_v44 = vpop.f32.mrb[4].mxu0  ;;  %5158 = vmatpush1.bf16.msra.mxu0 %v5157_v43  ;;  %5254 = vmatpush1.bf16.msra.mxu1 %v5157_v43  ;;  %v708_v43 = vld [vmem:[#allocation3] sm:$0xff] }
 0x10f   : > { %v5750_v45 = vpop.f32.mrb[5].mxu0  ;;  %5159 = vmatprep.subr.bf16.mxu0 %v5525_v33  ;;  %5239 = vmatprep.subr.bf16.mxu1 %v5525_v33 }
 0x110   : > { %v5160_v47 = vpack.c.bf16 %v5748_v44, %v5750_v45 }
 0x112   : > { %v5758_v48 = vpop.f32.mrb[6].mxu0  ;;  %5161 = vmatpush1.bf16.msra.mxu0 %v5160_v47  ;;  %5255 = vmatpush1.bf16.msra.mxu1 %v5160_v47  ;;  %v790_v47 = vld [vmem:[#allocation3 + $0x290] sm:$0xff] }
 0x113   : > { %v5760_v49 = vpop.f32.mrb[7].mxu0  ;;  %5162 = vmatprep.subr.bf16.mxu0 %v5525_v33  ;;  %5240 = vmatprep.subr.bf16.mxu1 %v5525_v33 }
 0x114   : > { %v5163_v51 = vpack.c.bf16 %v5758_v48, %v5760_v49 }
 0x116   : > { %v5768_v52 = vpop.f32.mrb[8].mxu0  ;;  %5164 = vmatpush1.bf16.msra.mxu0 %v5163_v51  ;;  %5256 = vmatpush1.bf16.msra.mxu1 %v5163_v51  ;;  %v711_v51 = vld [vmem:[#allocation3 + $0x18] sm:$0xff] }
 0x117   : > { %v5770_v53 = vpop.f32.mrb[9].mxu0  ;;  %5165 = vmatprep.subr.bf16.mxu0 %v5525_v33  ;;  %5241 = vmatprep.subr.bf16.mxu1 %v5525_v33 }
 0x118   : > { %7094 = vst [vmem:[#allocation6_spill] sm:$0xff] %v5770_v53  ;;  %v5166_v55 = vpack.c.bf16 %v5768_v52, %v5770_v53 }
 0x11a   : > { %v5778_v56 = vpop.f32.mrb[10].mxu0  ;;  %5167 = vmatpush1.bf16.msra.mxu0 %v5166_v55  ;;  %5257 = vmatpush1.bf16.msra.mxu1 %v5166_v55  ;;  %v793_v55 = vld [vmem:[#allocation3 + $0x2a8] sm:$0xff] }
 0x11b   : > { %7095 = vst [vmem:[#allocation7_spill] sm:$0xff] %v5778_v56  ;;  %v5780_v57 = vpop.f32.mrb[11].mxu0  ;;  %5168 = vmatprep.subr.bf16.mxu0 %v5525_v33  ;;  %5242 = vmatprep.subr.bf16.mxu1 %v5525_v33 }
 0x11c   : > { %7096 = vst [vmem:[#allocation8_spill] sm:$0xff] %v5780_v57  ;;  %v5169_v59 = vpack.c.bf16 %v5778_v56, %v5780_v57 }
 0x11e   : > { %v5788_v60 = vpop.f32.mrb[12].mxu0  ;;  %5170 = vmatpush1.bf16.msra.mxu0 %v5169_v59  ;;  %5258 = vmatpush1.bf16.msra.mxu1 %v5169_v59  ;;  %v710_v59 = vld [vmem:[#allocation3 + $0x10] sm:$0xff] }
 0x11f   : > { %7097 = vst [vmem:[#allocation9_spill] sm:$0xff] %v5788_v60  ;;  %v5790_v61 = vpop.f32.mrb[13].mxu0  ;;  %5171 = vmatprep.subr.bf16.mxu0 %v5525_v33  ;;  %5243 = vmatprep.subr.bf16.mxu1 %v5525_v33 }
 0x120   : > { %7098 = vst [vmem:[#allocation10_spill] sm:$0xff] %v5790_v61  ;;  %v5172_v63 = vpack.c.bf16 %v5788_v60, %v5790_v61 }
 0x122   : > { %v5798_v0 = vpop.f32.mrb[14].mxu0  ;;  %5173 = vmatpush1.bf16.msra.mxu0 %v5172_v63  ;;  %5259 = vmatpush1.bf16.msra.mxu1 %v5172_v63  ;;  %v792_v63 = vld [vmem:[#allocation3 + $0x2a0] sm:$0xff] }
 0x123   : > { %7099 = vst [vmem:[#allocation11_spill] sm:$0xff] %v5798_v0  ;;  %v5800_v1 = vpop.f32.mrb[15].mxu0  ;;  %5174 = vmatprep.subr.bf16.mxu0 %v5525_v33  ;;  %5244 = vmatprep.subr.bf16.mxu1 %v5525_v33 }
 0x124   : > { %7100 = vst [vmem:[#allocation12_spill] sm:$0xff] %v5800_v1  ;;  %v5175_v3 = vpack.c.bf16 %v5798_v0, %v5800_v1 }
 0x126   : > { %v5808_v4 = vpop.f32.mrb[16].mxu0  ;;  %5176 = vmatpush1.bf16.msra.mxu0 %v5175_v3  ;;  %5260 = vmatpush1.bf16.msra.mxu1 %v5175_v3  ;;  %v713_v3 = vld [vmem:[#allocation3 + $0x28] sm:$0xff] }
 0x127   : > { %v5810_v5 = vpop.f32.mrb[17].mxu0  ;;  %5177 = vmatprep.subr.bf16.mxu0 %v5525_v33  ;;  %5245 = vmatprep.subr.bf16.mxu1 %v5525_v33 }
 0x128   : > { %v5178_v7 = vpack.c.bf16 %v5808_v4, %v5810_v5 }
 0x12a   : > { %v5818_v8 = vpop.f32.mrb[18].mxu0  ;;  %5179 = vmatpush1.bf16.msra.mxu0 %v5178_v7  ;;  %5261 = vmatpush1.bf16.msra.mxu1 %v5178_v7  ;;  %v712_v7 = vld [vmem:[#allocation3 + $0x20] sm:$0xff] }
 0x12b   : > { %v5820_v9 = vpop.f32.mrb[19].mxu0  ;;  %5180 = vmatprep.subr.bf16.mxu0 %v5525_v33  ;;  %5246 = vmatprep.subr.bf16.mxu1 %v5525_v33 }
 0x12c   : > { %v5181_v11 = vpack.c.bf16 %v5818_v8, %v5820_v9 }
 0x12e   : > { %v5828_v12 = vpop.f32.mrb[20].mxu0  ;;  %5182 = vmatpush1.bf16.msra.mxu0 %v5181_v11  ;;  %5262 = vmatpush1.bf16.msra.mxu1 %v5181_v11  ;;  %v794_v11 = vld [vmem:[#allocation3 + $0x2b0] sm:$0xff] }
 0x12f   : > { %v5830_v13 = vpop.f32.mrb[21].mxu0  ;;  %5183 = vmatprep.subr.bf16.mxu0 %v5525_v33  ;;  %5247 = vmatprep.subr.bf16.mxu1 %v5525_v33 }
 0x130   : > { %v5184_v15 = vpack.c.bf16 %v5828_v12, %v5830_v13 }
 0x132   : > { %v5838_v16 = vpop.f32.mrb[22].mxu0  ;;  %5185 = vmatpush1.bf16.msra.mxu0 %v5184_v15  ;;  %5263 = vmatpush1.bf16.msra.mxu1 %v5184_v15  ;;  %v715_v15 = vld [vmem:[#allocation3 + $0x38] sm:$0xff] }
 0x133   : > { %v5840_v17 = vpop.f32.mrb[23].mxu0  ;;  %5186 = vmatprep.subr.bf16.mxu0 %v5525_v33  ;;  %5248 = vmatprep.subr.bf16.mxu1 %v5525_v33 }
 0x134   : > { %v5187_v19 = vpack.c.bf16 %v5838_v16, %v5840_v17 }
 0x136   : > { %v5848_v20 = vpop.f32.mrb[24].mxu0  ;;  %5188 = vmatpush1.bf16.msra.mxu0 %v5187_v19  ;;  %5264 = vmatpush1.bf16.msra.mxu1 %v5187_v19  ;;  %v797_v19 = vld [vmem:[#allocation3 + $0x2c8] sm:$0xff] }
 0x137   : > { %v5850_v21 = vpop.f32.mrb[25].mxu0  ;;  %5189 = vmatprep.subr.bf16.mxu0 %v5525_v33  ;;  %5249 = vmatprep.subr.bf16.mxu1 %v5525_v33 }
 0x138   : > { %v5190_v23 = vpack.c.bf16 %v5848_v20, %v5850_v21 }
 0x13a   : > { %v5858_v24 = vpop.f32.mrb[26].mxu0  ;;  %5191 = vmatpush1.bf16.msra.mxu0 %v5190_v23  ;;  %5265 = vmatpush1.bf16.msra.mxu1 %v5190_v23  ;;  %v714_v23 = vld [vmem:[#allocation3 + $0x30] sm:$0xff] }
 0x13b   : > { %7101 = vst [vmem:[#allocation13_spill] sm:$0xff] %v5858_v24  ;;  %v5860_v25 = vpop.f32.mrb[27].mxu0  ;;  %5192 = vmatprep.subr.bf16.mxu0 %v5525_v33  ;;  %5250 = vmatprep.subr.bf16.mxu1 %v5525_v33 }
 0x13c   : > { %7102 = vst [vmem:[#allocation14_spill] sm:$0xff] %v5860_v25  ;;  %v5193_v27 = vpack.c.bf16 %v5858_v24, %v5860_v25 }
 0x13e   : > { %v5868_v28 = vpop.f32.mrb[28].mxu0  ;;  %5194 = vmatpush1.bf16.msra.mxu0 %v5193_v27  ;;  %5266 = vmatpush1.bf16.msra.mxu1 %v5193_v27  ;;  %v796_v27 = vld [vmem:[#allocation3 + $0x2c0] sm:$0xff] }
 0x13f   : > { %7103 = vst [vmem:[#allocation15_spill] sm:$0xff] %v5868_v28  ;;  %v5870_v29 = vpop.f32.mrb[29].mxu0  ;;  %5195 = vmatprep.subr.bf16.mxu0 %v5525_v33  ;;  %5251 = vmatprep.subr.bf16.mxu1 %v5525_v33 }
 0x140   : > { %7104 = vst [vmem:[#allocation16_spill] sm:$0xff] %v5870_v29  ;;  %v5196_v31 = vpack.c.bf16 %v5868_v28, %v5870_v29 }
 0x142   : > { %v5878_v32 = vpop.f32.mrb[30].mxu0  ;;  %5197 = vmatpush1.bf16.msra.mxu0 %v5196_v31  ;;  %5267 = vmatpush1.bf16.msra.mxu1 %v5196_v31  ;;  %v717_v31 = vld [vmem:[#allocation3 + $0x48] sm:$0xff] }
 0x143   : > { %7105 = vst [vmem:[#allocation17_spill] sm:$0xff] %v5878_v32  ;;  %v5880_v34 = vpop.f32.mrb[31].mxu0  ;;  %5198 = vmatprep.subr.bf16.mxu0 %v5525_v33  ;;  %5252 = vmatprep.subr.bf16.mxu1 %v5525_v33  ;;  %v795_v33 = vld [vmem:[#allocation3 + $0x2b8] sm:$0xff] }
 0x144   : > { %7106 = vst [vmem:[#allocation18_spill] sm:$0xff] %v5880_v34  ;;  %v5199_v39 = vpack.c.bf16 %v5878_v32, %v5880_v34 }
 0x146   : > { %5200 = vmatpush1.bf16.msra.mxu0 %v5199_v39  ;;  %5268 = vmatpush1.bf16.msra.mxu1 %v5199_v39  ;;  %v799_v39 = vld [vmem:[#allocation3 + $0x2d8] sm:$0xff] }
 0x149   : > { %1029 = vmatmul.mubr.f32.vlgmr.msra.gmra.mrb[32].mxu0 %v708_v43  ;;  %1234 = vmatmul.mubr.f32.vlgmr.msra.gmra.mrb[0].mxu1 %v790_v47  ;;  %v716_v43 = vld [vmem:[#allocation3 + $0x40] sm:$0xff]  ;;  %v798_v47 = vld [vmem:[#allocation3 + $0x2d0] sm:$0xff] }
 0x14a   : > { %1033 = vmatprep.mubr.f32.mxu0 %v711_v51  ;;  %1238 = vmatprep.mubr.f32.mxu1 %v793_v55  ;;  %v719_v51 = vld [vmem:[#allocation3 + $0x58] sm:$0xff]  ;;  %v801_v55 = vld [vmem:[#allocation3 + $0x2e8] sm:$0xff] }
 0x14d   : > { %1034 = vmatmul.mubr.f32.gmra.mrb[34].mxu0 %v710_v59  ;;  %1239 = vmatmul.mubr.f32.gmra.mrb[2].mxu1 %v792_v63  ;;  %v718_v59 = vld [vmem:[#allocation3 + $0x50] sm:$0xff]  ;;  %v800_v63 = vld [vmem:[#allocation3 + $0x2e0] sm:$0xff] }
 0x14e   : > { %1038 = vmatprep.mubr.f32.mxu0 %v713_v3  ;;  %1243 = vmatprep.mubr.f32.mxu1 %v795_v33  ;;  %v721_v3 = vld [vmem:[#allocation3 + $0x68] sm:$0xff]  ;;  %v803_v33 = vld [vmem:[#allocation3 + $0x2f8] sm:$0xff] }
 0x151   : > { %1039 = vmatmul.mubr.f32.gmra.mrb[36].mxu0 %v712_v7  ;;  %1244 = vmatmul.mubr.f32.gmra.mrb[4].mxu1 %v794_v11  ;;  %v720_v7 = vld [vmem:[#allocation3 + $0x60] sm:$0xff]  ;;  %v802_v11 = vld [vmem:[#allocation3 + $0x2f0] sm:$0xff] }
 0x152   : > { %1043 = vmatprep.mubr.f32.mxu0 %v715_v15  ;;  %1248 = vmatprep.mubr.f32.mxu1 %v797_v19  ;;  %v723_v15 = vld [vmem:[#allocation3 + $0x78] sm:$0xff]  ;;  %v805_v19 = vld [vmem:[#allocation3 + $0x308] sm:$0xff] }
 0x155   : > { %1044 = vmatmul.mubr.f32.gmra.mrb[38].mxu0 %v714_v23  ;;  %1249 = vmatmul.mubr.f32.gmra.mrb[6].mxu1 %v796_v27  ;;  %v722_v23 = vld [vmem:[#allocation3 + $0x70] sm:$0xff]  ;;  %v804_v27 = vld [vmem:[#allocation3 + $0x300] sm:$0xff] }
 0x156   : > { %1048 = vmatprep.mubr.f32.mxu0 %v717_v31  ;;  %1253 = vmatprep.mubr.f32.mxu1 %v799_v39  ;;  %v725_v31 = vld [vmem:[#allocation3 + $0x88] sm:$0xff]  ;;  %v807_v39 = vld [vmem:[#allocation3 + $0x318] sm:$0xff] }
 0x159   : > { %1049 = vmatmul.mubr.f32.gmra.mrb[40].mxu0 %v716_v43  ;;  %1254 = vmatmul.mubr.f32.gmra.mrb[8].mxu1 %v798_v47  ;;  %v724_v43 = vld [vmem:[#allocation3 + $0x80] sm:$0xff]  ;;  %v806_v47 = vld [vmem:[#allocation3 + $0x310] sm:$0xff] }
 0x15a   : > { %1053 = vmatprep.mubr.f32.mxu0 %v719_v51  ;;  %1258 = vmatprep.mubr.f32.mxu1 %v801_v55  ;;  %v727_v51 = vld [vmem:[#allocation3 + $0x98] sm:$0xff]  ;;  %v809_v55 = vld [vmem:[#allocation3 + $0x328] sm:$0xff] }
 0x15d   : > { %1054 = vmatmul.mubr.f32.gmra.mrb[42].mxu0 %v718_v59  ;;  %1259 = vmatmul.mubr.f32.gmra.mrb[10].mxu1 %v800_v63  ;;  %v726_v59 = vld [vmem:[#allocation3 + $0x90] sm:$0xff]  ;;  %v808_v63 = vld [vmem:[#allocation3 + $0x320] sm:$0xff] }
 0x15e   : > { %1058 = vmatprep.mubr.f32.mxu0 %v721_v3  ;;  %1263 = vmatprep.mubr.f32.mxu1 %v803_v33  ;;  %v729_v3 = vld [vmem:[#allocation3 + $0xa8] sm:$0xff]  ;;  %v811_v33 = vld [vmem:[#allocation3 + $0x338] sm:$0xff] }
 0x161   : > { %1059 = vmatmul.mubr.f32.gmra.mrb[44].mxu0 %v720_v7  ;;  %1264 = vmatmul.mubr.f32.gmra.mrb[12].mxu1 %v802_v11  ;;  %v728_v7 = vld [vmem:[#allocation3 + $0xa0] sm:$0xff]  ;;  %v810_v11 = vld [vmem:[#allocation3 + $0x330] sm:$0xff] }
 0x162   : > { %1063 = vmatprep.mubr.f32.mxu0 %v723_v15  ;;  %1268 = vmatprep.mubr.f32.mxu1 %v805_v19  ;;  %v731_v15 = vld [vmem:[#allocation3 + $0xb8] sm:$0xff]  ;;  %v813_v19 = vld [vmem:[#allocation3 + $0x348] sm:$0xff] }
 0x165   : > { %1064 = vmatmul.mubr.f32.gmra.mrb[46].mxu0 %v722_v23  ;;  %1269 = vmatmul.mubr.f32.gmra.mrb[14].mxu1 %v804_v27  ;;  %v730_v23 = vld [vmem:[#allocation3 + $0xb0] sm:$0xff]  ;;  %v812_v27 = vld [vmem:[#allocation3 + $0x340] sm:$0xff] }
 0x166   : > { %1068 = vmatprep.mubr.f32.mxu0 %v725_v31  ;;  %1273 = vmatprep.mubr.f32.mxu1 %v807_v39  ;;  %v733_v31 = vld [vmem:[#allocation3 + $0xc8] sm:$0xff]  ;;  %v815_v39 = vld [vmem:[#allocation3 + $0x358] sm:$0xff] }
 0x169   : > { %1069 = vmatmul.mubr.f32.gmra.mrb[48].mxu0 %v724_v43  ;;  %1274 = vmatmul.mubr.f32.gmra.mrb[16].mxu1 %v806_v47  ;;  %v732_v43 = vld [vmem:[#allocation3 + $0xc0] sm:$0xff]  ;;  %v814_v47 = vld [vmem:[#allocation3 + $0x350] sm:$0xff] }
 0x16a   : > { %1073 = vmatprep.mubr.f32.mxu0 %v727_v51  ;;  %1278 = vmatprep.mubr.f32.mxu1 %v809_v55  ;;  %v735_v51 = vld [vmem:[#allocation3 + $0xd8] sm:$0xff]  ;;  %v817_v55 = vld [vmem:[#allocation3 + $0x368] sm:$0xff] }
 0x16d   : > { %1074 = vmatmul.mubr.f32.gmra.mrb[50].mxu0 %v726_v59  ;;  %1279 = vmatmul.mubr.f32.gmra.mrb[18].mxu1 %v808_v63  ;;  %v734_v59 = vld [vmem:[#allocation3 + $0xd0] sm:$0xff]  ;;  %v816_v63 = vld [vmem:[#allocation3 + $0x360] sm:$0xff] }
 0x16e   : > { %1078 = vmatprep.mubr.f32.mxu0 %v729_v3  ;;  %1283 = vmatprep.mubr.f32.mxu1 %v811_v33  ;;  %v737_v3 = vld [vmem:[#allocation3 + $0xe8] sm:$0xff]  ;;  %v819_v33 = vld [vmem:[#allocation3 + $0x378] sm:$0xff] }
 0x171   : > { %1079 = vmatmul.mubr.f32.gmra.mrb[52].mxu0 %v728_v7  ;;  %1284 = vmatmul.mubr.f32.gmra.mrb[20].mxu1 %v810_v11  ;;  %v736_v7 = vld [vmem:[#allocation3 + $0xe0] sm:$0xff]  ;;  %v818_v11 = vld [vmem:[#allocation3 + $0x370] sm:$0xff] }
 0x172   : > { %1083 = vmatprep.mubr.f32.mxu0 %v731_v15  ;;  %1288 = vmatprep.mubr.f32.mxu1 %v813_v19  ;;  %v739_v15 = vld [vmem:[#allocation3 + $0xf8] sm:$0xff]  ;;  %v821_v19 = vld [vmem:[#allocation3 + $0x388] sm:$0xff] }
 0x175   : > { %1084 = vmatmul.mubr.f32.gmra.mrb[54].mxu0 %v730_v23  ;;  %1289 = vmatmul.mubr.f32.gmra.mrb[22].mxu1 %v812_v27  ;;  %v738_v23 = vld [vmem:[#allocation3 + $0xf0] sm:$0xff]  ;;  %v820_v27 = vld [vmem:[#allocation3 + $0x380] sm:$0xff] }
 0x176   : > { %1088 = vmatprep.mubr.f32.mxu0 %v733_v31  ;;  %1293 = vmatprep.mubr.f32.mxu1 %v815_v39  ;;  %v741_v31 = vld [vmem:[#allocation3 + $0x108] sm:$0xff]  ;;  %v823_v39 = vld [vmem:[#allocation3 + $0x398] sm:$0xff] }
 0x179   : > { %1089 = vmatmul.mubr.f32.gmra.mrb[56].mxu0 %v732_v43  ;;  %1294 = vmatmul.mubr.f32.gmra.mrb[24].mxu1 %v814_v47  ;;  %v740_v43 = vld [vmem:[#allocation3 + $0x100] sm:$0xff]  ;;  %v822_v47 = vld [vmem:[#allocation3 + $0x390] sm:$0xff] }
 0x17a   : > { %1093 = vmatprep.mubr.f32.mxu0 %v735_v51  ;;  %1298 = vmatprep.mubr.f32.mxu1 %v817_v55  ;;  %v743_v51 = vld [vmem:[#allocation3 + $0x118] sm:$0xff]  ;;  %v825_v55 = vld [vmem:[#allocation3 + $0x3a8] sm:$0xff] }
 0x17d   : > { %1094 = vmatmul.mubr.f32.gmra.mrb[58].mxu0 %v734_v59  ;;  %1299 = vmatmul.mubr.f32.gmra.mrb[26].mxu1 %v816_v63  ;;  %v742_v59 = vld [vmem:[#allocation3 + $0x110] sm:$0xff]  ;;  %v824_v63 = vld [vmem:[#allocation3 + $0x3a0] sm:$0xff] }
 0x17e   : > { %1098 = vmatprep.mubr.f32.mxu0 %v737_v3  ;;  %1303 = vmatprep.mubr.f32.mxu1 %v819_v33  ;;  %v745_v3 = vld [vmem:[#allocation3 + $0x128] sm:$0xff]  ;;  %v827_v33 = vld [vmem:[#allocation3 + $0x3b8] sm:$0xff] }
 0x181   : > { %1099 = vmatmul.mubr.f32.gmra.mrb[60].mxu0 %v736_v7  ;;  %1304 = vmatmul.mubr.f32.gmra.mrb[28].mxu1 %v818_v11  ;;  %v744_v7 = vld [vmem:[#allocation3 + $0x120] sm:$0xff]  ;;  %v826_v11 = vld [vmem:[#allocation3 + $0x3b0] sm:$0xff] }
 0x182   : > { %1103 = vmatprep.mubr.f32.mxu0 %v739_v15  ;;  %1308 = vmatprep.mubr.f32.mxu1 %v821_v19  ;;  %v747_v15 = vld [vmem:[#allocation3 + $0x138] sm:$0xff]  ;;  %v829_v19 = vld [vmem:[#allocation3 + $0x3c8] sm:$0xff] }
 0x185   : > { %1104 = vmatmul.mubr.f32.gmra.mrb[62].mxu0 %v738_v23  ;;  %1309 = vmatmul.mubr.f32.gmra.mrb[30].mxu1 %v820_v27  ;;  %v746_v23 = vld [vmem:[#allocation3 + $0x130] sm:$0xff]  ;;  %v828_v27 = vld [vmem:[#allocation3 + $0x3c0] sm:$0xff] }
 0x186   : > { %1108 = vmatprep.mubr.f32.mxu0 %v741_v31  ;;  %1313 = vmatprep.mubr.f32.mxu1 %v823_v39  ;;  %v749_v31 = vld [vmem:[#allocation3 + $0x148] sm:$0xff]  ;;  %v831_v39 = vld [vmem:[#allocation3 + $0x3d8] sm:$0xff] }
 0x189   : > { %1109 = vmatmul.mubr.f32.gmra.mrb[64].mxu0 %v740_v43  ;;  %1314 = vmatmul.mubr.f32.gmra.mrb[32].mxu1 %v822_v47  ;;  %v748_v43 = vld [vmem:[#allocation3 + $0x140] sm:$0xff]  ;;  %v830_v47 = vld [vmem:[#allocation3 + $0x3d0] sm:$0xff] }
 0x18a   : > { %1113 = vmatprep.mubr.f32.mxu0 %v743_v51  ;;  %1318 = vmatprep.mubr.f32.mxu1 %v825_v55  ;;  %v751_v51 = vld [vmem:[#allocation3 + $0x158] sm:$0xff]  ;;  %v833_v55 = vld [vmem:[#allocation3 + $0x3e8] sm:$0xff] }
 0x18d   : > { %1114 = vmatmul.mubr.f32.gmra.mrb[66].mxu0 %v742_v59  ;;  %1319 = vmatmul.mubr.f32.gmra.mrb[34].mxu1 %v824_v63  ;;  %v750_v59 = vld [vmem:[#allocation3 + $0x150] sm:$0xff]  ;;  %v832_v63 = vld [vmem:[#allocation3 + $0x3e0] sm:$0xff] }
 0x18e   : > { %1118 = vmatprep.mubr.f32.mxu0 %v745_v3  ;;  %1323 = vmatprep.mubr.f32.mxu1 %v827_v33  ;;  %v753_v3 = vld [vmem:[#allocation3 + $0x168] sm:$0xff]  ;;  %v835_v33 = vld [vmem:[#allocation3 + $0x3f8] sm:$0xff] }
 0x191   : > { %1119 = vmatmul.mubr.f32.gmra.mrb[68].mxu0 %v744_v7  ;;  %1324 = vmatmul.mubr.f32.gmra.mrb[36].mxu1 %v826_v11  ;;  %v752_v7 = vld [vmem:[#allocation3 + $0x160] sm:$0xff]  ;;  %v834_v11 = vld [vmem:[#allocation3 + $0x3f0] sm:$0xff] }
 0x192   : > { %1123 = vmatprep.mubr.f32.mxu0 %v747_v15  ;;  %1328 = vmatprep.mubr.f32.mxu1 %v829_v19  ;;  %v755_v15 = vld [vmem:[#allocation3 + $0x178] sm:$0xff]  ;;  %v837_v19 = vld [vmem:[#allocation3 + $0x408] sm:$0xff] }
 0x195   : > { %1124 = vmatmul.mubr.f32.gmra.mrb[70].mxu0 %v746_v23  ;;  %1329 = vmatmul.mubr.f32.gmra.mrb[38].mxu1 %v828_v27  ;;  %v754_v23 = vld [vmem:[#allocation3 + $0x170] sm:$0xff]  ;;  %v836_v27 = vld [vmem:[#allocation3 + $0x400] sm:$0xff] }
 0x196   : > { %1128 = vmatprep.mubr.f32.mxu0 %v749_v31  ;;  %1333 = vmatprep.mubr.f32.mxu1 %v831_v39  ;;  %v757_v31 = vld [vmem:[#allocation3 + $0x188] sm:$0xff]  ;;  %v839_v39 = vld [vmem:[#allocation3 + $0x418] sm:$0xff] }
 0x199   : > { %1129 = vmatmul.mubr.f32.gmra.mrb[72].mxu0 %v748_v43  ;;  %1334 = vmatmul.mubr.f32.gmra.mrb[40].mxu1 %v830_v47  ;;  %v756_v43 = vld [vmem:[#allocation3 + $0x180] sm:$0xff]  ;;  %v838_v47 = vld [vmem:[#allocation3 + $0x410] sm:$0xff] }
 0x19a   : > { %1133 = vmatprep.mubr.f32.mxu0 %v751_v51  ;;  %1338 = vmatprep.mubr.f32.mxu1 %v833_v55  ;;  %v759_v51 = vld [vmem:[#allocation3 + $0x198] sm:$0xff]  ;;  %v841_v55 = vld [vmem:[#allocation3 + $0x428] sm:$0xff] }
 0x19d   : > { %1134 = vmatmul.mubr.f32.gmra.mrb[74].mxu0 %v750_v59  ;;  %1339 = vmatmul.mubr.f32.gmra.mrb[42].mxu1 %v832_v63  ;;  %v758_v59 = vld [vmem:[#allocation3 + $0x190] sm:$0xff]  ;;  %v840_v63 = vld [vmem:[#allocation3 + $0x420] sm:$0xff] }
 0x19e   : > { %1138 = vmatprep.mubr.f32.mxu0 %v753_v3  ;;  %1343 = vmatprep.mubr.f32.mxu1 %v835_v33  ;;  %v761_v3 = vld [vmem:[#allocation3 + $0x1a8] sm:$0xff]  ;;  %v843_v33 = vld [vmem:[#allocation3 + $0x438] sm:$0xff] }
 0x1a1   : > { %1139 = vmatmul.mubr.f32.gmra.mrb[76].mxu0 %v752_v7  ;;  %1344 = vmatmul.mubr.f32.gmra.mrb[44].mxu1 %v834_v11  ;;  %v760_v7 = vld [vmem:[#allocation3 + $0x1a0] sm:$0xff]  ;;  %v842_v11 = vld [vmem:[#allocation3 + $0x430] sm:$0xff] }
 0x1a2   : > { %1143 = vmatprep.mubr.f32.mxu0 %v755_v15  ;;  %1348 = vmatprep.mubr.f32.mxu1 %v837_v19  ;;  %v763_v15 = vld [vmem:[#allocation3 + $0x1b8] sm:$0xff]  ;;  %v845_v19 = vld [vmem:[#allocation3 + $0x448] sm:$0xff] }
 0x1a5   : > { %1144 = vmatmul.mubr.f32.gmra.mrb[78].mxu0 %v754_v23  ;;  %1349 = vmatmul.mubr.f32.gmra.mrb[46].mxu1 %v836_v27  ;;  %v762_v23 = vld [vmem:[#allocation3 + $0x1b0] sm:$0xff]  ;;  %v844_v27 = vld [vmem:[#allocation3 + $0x440] sm:$0xff] }
 0x1a6   : > { %1148 = vmatprep.mubr.f32.mxu0 %v757_v31  ;;  %1353 = vmatprep.mubr.f32.mxu1 %v839_v39  ;;  %v765_v31 = vld [vmem:[#allocation3 + $0x1c8] sm:$0xff]  ;;  %v847_v39 = vld [vmem:[#allocation3 + $0x458] sm:$0xff] }
 0x1a9   : > { %1149 = vmatmul.mubr.f32.gmra.mrb[80].mxu0 %v756_v43  ;;  %1354 = vmatmul.mubr.f32.gmra.mrb[48].mxu1 %v838_v47  ;;  %v764_v43 = vld [vmem:[#allocation3 + $0x1c0] sm:$0xff]  ;;  %v846_v47 = vld [vmem:[#allocation3 + $0x450] sm:$0xff] }
 0x1aa   : > { %1153 = vmatprep.mubr.f32.mxu0 %v759_v51  ;;  %1358 = vmatprep.mubr.f32.mxu1 %v841_v55  ;;  %v767_v51 = vld [vmem:[#allocation3 + $0x1d8] sm:$0xff]  ;;  %v849_v55 = vld [vmem:[#allocation3 + $0x468] sm:$0xff] }
 0x1ad   : > { %1154 = vmatmul.mubr.f32.gmra.mrb[82].mxu0 %v758_v59  ;;  %1359 = vmatmul.mubr.f32.gmra.mrb[50].mxu1 %v840_v63  ;;  %v766_v59 = vld [vmem:[#allocation3 + $0x1d0] sm:$0xff]  ;;  %v848_v63 = vld [vmem:[#allocation3 + $0x460] sm:$0xff] }
 0x1ae   : > { %1158 = vmatprep.mubr.f32.mxu0 %v761_v3  ;;  %1363 = vmatprep.mubr.f32.mxu1 %v843_v33  ;;  %v769_v3 = vld [vmem:[#allocation3 + $0x1e8] sm:$0xff]  ;;  %v851_v33 = vld [vmem:[#allocation3 + $0x478] sm:$0xff] }
 0x1b1   : > { %1159 = vmatmul.mubr.f32.gmra.mrb[84].mxu0 %v760_v7  ;;  %1364 = vmatmul.mubr.f32.gmra.mrb[52].mxu1 %v842_v11  ;;  %v768_v7 = vld [vmem:[#allocation3 + $0x1e0] sm:$0xff]  ;;  %v850_v11 = vld [vmem:[#allocation3 + $0x470] sm:$0xff] }
 0x1b2   : > { %1163 = vmatprep.mubr.f32.mxu0 %v763_v15  ;;  %1368 = vmatprep.mubr.f32.mxu1 %v845_v19  ;;  %v771_v15 = vld [vmem:[#allocation3 + $0x1f8] sm:$0xff]  ;;  %v853_v19 = vld [vmem:[#allocation3 + $0x488] sm:$0xff] }
 0x1b5   : > { %1164 = vmatmul.mubr.f32.gmra.mrb[86].mxu0 %v762_v23  ;;  %1369 = vmatmul.mubr.f32.gmra.mrb[54].mxu1 %v844_v27  ;;  %v770_v23 = vld [vmem:[#allocation3 + $0x1f0] sm:$0xff]  ;;  %v852_v27 = vld [vmem:[#allocation3 + $0x480] sm:$0xff] }
 0x1b6   : > { %1168 = vmatprep.mubr.f32.mxu0 %v765_v31  ;;  %1373 = vmatprep.mubr.f32.mxu1 %v847_v39  ;;  %v773_v31 = vld [vmem:[#allocation3 + $0x208] sm:$0xff]  ;;  %v855_v39 = vld [vmem:[#allocation3 + $0x498] sm:$0xff] }
 0x1b9   : > { %1169 = vmatmul.mubr.f32.gmra.mrb[88].mxu0 %v764_v43  ;;  %1374 = vmatmul.mubr.f32.gmra.mrb[56].mxu1 %v846_v47  ;;  %v772_v43 = vld [vmem:[#allocation3 + $0x200] sm:$0xff]  ;;  %v854_v47 = vld [vmem:[#allocation3 + $0x490] sm:$0xff] }
 0x1ba   : > { %1173 = vmatprep.mubr.f32.mxu0 %v767_v51  ;;  %1378 = vmatprep.mubr.f32.mxu1 %v849_v55  ;;  %v775_v51 = vld [vmem:[#allocation3 + $0x218] sm:$0xff]  ;;  %v857_v55 = vld [vmem:[#allocation3 + $0x4a8] sm:$0xff] }
 0x1bd   : > { %1174 = vmatmul.mubr.f32.gmra.mrb[90].mxu0 %v766_v59  ;;  %1379 = vmatmul.mubr.f32.gmra.mrb[58].mxu1 %v848_v63  ;;  %v774_v59 = vld [vmem:[#allocation3 + $0x210] sm:$0xff]  ;;  %v856_v63 = vld [vmem:[#allocation3 + $0x4a0] sm:$0xff] }
 0x1be   : > { %1178 = vmatprep.mubr.f32.mxu0 %v769_v3  ;;  %1383 = vmatprep.mubr.f32.mxu1 %v851_v33  ;;  %v777_v3 = vld [vmem:[#allocation3 + $0x228] sm:$0xff]  ;;  %v859_v33 = vld [vmem:[#allocation3 + $0x4b8] sm:$0xff] }
 0x1c1   : > { %1179 = vmatmul.mubr.f32.gmra.mrb[92].mxu0 %v768_v7  ;;  %1384 = vmatmul.mubr.f32.gmra.mrb[60].mxu1 %v850_v11  ;;  %v776_v7 = vld [vmem:[#allocation3 + $0x220] sm:$0xff]  ;;  %v858_v11 = vld [vmem:[#allocation3 + $0x4b0] sm:$0xff] }
 0x1c2   : > { %1183 = vmatprep.mubr.f32.mxu0 %v771_v15  ;;  %1388 = vmatprep.mubr.f32.mxu1 %v853_v19  ;;  %v779_v15 = vld [vmem:[#allocation3 + $0x238] sm:$0xff]  ;;  %v861_v19 = vld [vmem:[#allocation3 + $0x4c8] sm:$0xff] }
 0x1c5   : > { %1184 = vmatmul.mubr.f32.gmra.mrb[94].mxu0 %v770_v23  ;;  %1389 = vmatmul.mubr.f32.gmra.mrb[62].mxu1 %v852_v27  ;;  %v778_v23 = vld [vmem:[#allocation3 + $0x230] sm:$0xff]  ;;  %v860_v27 = vld [vmem:[#allocation3 + $0x4c0] sm:$0xff] }
 0x1c6   : > { %1188 = vmatprep.mubr.f32.mxu0 %v773_v31  ;;  %1393 = vmatprep.mubr.f32.mxu1 %v855_v39  ;;  %v781_v31 = vld [vmem:[#allocation3 + $0x248] sm:$0xff]  ;;  %v863_v39 = vld [vmem:[#allocation3 + $0x4d8] sm:$0xff] }
 0x1c9   : > { %1189 = vmatmul.mubr.f32.gmra.mrb[96].mxu0 %v772_v43  ;;  %1394 = vmatmul.mubr.f32.gmra.mrb[64].mxu1 %v854_v47  ;;  %v780_v43 = vld [vmem:[#allocation3 + $0x240] sm:$0xff]  ;;  %v862_v47 = vld [vmem:[#allocation3 + $0x4d0] sm:$0xff] }
 0x1ca   : > { %1193 = vmatprep.mubr.f32.mxu0 %v775_v51  ;;  %1398 = vmatprep.mubr.f32.mxu1 %v857_v55  ;;  %v783_v51 = vld [vmem:[#allocation3 + $0x258] sm:$0xff]  ;;  %v865_v55 = vld [vmem:[#allocation3 + $0x4e8] sm:$0xff] }
 0x1cd   : > { %1194 = vmatmul.mubr.f32.gmra.mrb[98].mxu0 %v774_v59  ;;  %1399 = vmatmul.mubr.f32.gmra.mrb[66].mxu1 %v856_v63  ;;  %v782_v59 = vld [vmem:[#allocation3 + $0x250] sm:$0xff]  ;;  %v864_v63 = vld [vmem:[#allocation3 + $0x4e0] sm:$0xff] }
 0x1ce   : > { %1198 = vmatprep.mubr.f32.mxu0 %v777_v3  ;;  %1403 = vmatprep.mubr.f32.mxu1 %v859_v33  ;;  %v785_v3 = vld [vmem:[#allocation3 + $0x268] sm:$0xff]  ;;  %v867_v33 = vld [vmem:[#allocation3 + $0x4f8] sm:$0xff] }
 0x1d1   : > { %1199 = vmatmul.mubr.f32.gmra.mrb[100].mxu0 %v776_v7  ;;  %1404 = vmatmul.mubr.f32.gmra.mrb[68].mxu1 %v858_v11  ;;  %v784_v7 = vld [vmem:[#allocation3 + $0x260] sm:$0xff]  ;;  %v866_v11 = vld [vmem:[#allocation3 + $0x4f0] sm:$0xff] }
 0x1d2   : > { %1203 = vmatprep.mubr.f32.mxu0 %v779_v15  ;;  %1408 = vmatprep.mubr.f32.mxu1 %v861_v19  ;;  %v787_v15 = vld [vmem:[#allocation3 + $0x278] sm:$0xff]  ;;  %v869_v19 = vld [vmem:[#allocation3 + $0x508] sm:$0xff] }
 0x1d5   : > { %1204 = vmatmul.mubr.f32.gmra.mrb[102].mxu0 %v778_v23  ;;  %1409 = vmatmul.mubr.f32.gmra.mrb[70].mxu1 %v860_v27  ;;  %v786_v23 = vld [vmem:[#allocation3 + $0x270] sm:$0xff]  ;;  %v868_v27 = vld [vmem:[#allocation3 + $0x500] sm:$0xff] }
 0x1d6   : > { %1208 = vmatprep.mubr.f32.mxu0 %v781_v31  ;;  %1413 = vmatprep.mubr.f32.mxu1 %v863_v39  ;;  %v789_v31 = vld [vmem:[#allocation3 + $0x288] sm:$0xff]  ;;  %v871_v39 = vld [vmem:[#allocation3 + $0x518] sm:$0xff] }
 0x1d9   : > { %1209 = vmatmul.mubr.f32.gmra.mrb[104].mxu0 %v780_v43  ;;  %1414 = vmatmul.mubr.f32.gmra.mrb[72].mxu1 %v862_v47  ;;  %v788_v43 = vld [vmem:[#allocation3 + $0x280] sm:$0xff]  ;;  %v870_v47 = vld [vmem:[#allocation3 + $0x510] sm:$0xff] }
 0x1da   : > { %1213 = vmatprep.mubr.f32.mxu0 %v783_v51  ;;  %1418 = vmatprep.mubr.f32.mxu1 %v865_v55  ;;  %v873_v51 = vld [vmem:[#allocation3 + $0x528] sm:$0xff]  ;;  %v872_v55 = vld [vmem:[#allocation3 + $0x520] sm:$0xff] }
 0x1dd   : > { %1214 = vmatmul.mubr.f32.gmra.mrb[106].mxu0 %v782_v59  ;;  %1419 = vmatmul.mubr.f32.gmra.mrb[74].mxu1 %v864_v63  ;;  %v875_v59 = vld [vmem:[#allocation3 + $0x538] sm:$0xff]  ;;  %v874_v63 = vld [vmem:[#allocation3 + $0x530] sm:$0xff] }
 0x1de   : > { %1218 = vmatprep.mubr.f32.mxu0 %v785_v3  ;;  %1423 = vmatprep.mubr.f32.mxu1 %v867_v33  ;;  %v877_v3 = vld [vmem:[#allocation3 + $0x548] sm:$0xff]  ;;  %v876_v33 = vld [vmem:[#allocation3 + $0x540] sm:$0xff] }
 0x1e1   : > { %1219 = vmatmul.mubr.f32.gmra.mrb[108].mxu0 %v784_v7  ;;  %1424 = vmatmul.mubr.f32.gmra.mrb[76].mxu1 %v866_v11  ;;  %v879_v7 = vld [vmem:[#allocation3 + $0x558] sm:$0xff]  ;;  %v878_v11 = vld [vmem:[#allocation3 + $0x550] sm:$0xff] }
 0x1e2   : > { %1223 = vmatprep.mubr.f32.mxu0 %v787_v15  ;;  %1428 = vmatprep.mubr.f32.mxu1 %v869_v19  ;;  %v881_v15 = vld [vmem:[#allocation3 + $0x568] sm:$0xff]  ;;  %v880_v19 = vld [vmem:[#allocation3 + $0x560] sm:$0xff] }
 0x1e5   : > { %1224 = vmatmul.mubr.f32.gmra.mrb[110].mxu0 %v786_v23  ;;  %1429 = vmatmul.mubr.f32.gmra.mrb[78].mxu1 %v868_v27  ;;  %v883_v23 = vld [vmem:[#allocation3 + $0x578] sm:$0xff]  ;;  %v882_v27 = vld [vmem:[#allocation3 + $0x570] sm:$0xff] }
 0x1e6   : > { %1228 = vmatprep.mubr.f32.mxu0 %v789_v31  ;;  %1433 = vmatprep.mubr.f32.mxu1 %v871_v39  ;;  %v885_v31 = vld [vmem:[#allocation3 + $0x588] sm:$0xff]  ;;  %v884_v39 = vld [vmem:[#allocation3 + $0x580] sm:$0xff] }
 0x1e9   : > { %1229 = vmatmul.mubr.f32.gmra.mrb[112].mxu0 %v788_v43  ;;  %1434 = vmatmul.mubr.f32.gmra.mrb[80].mxu1 %v870_v47  ;;  %v887_v43 = vld [vmem:[#allocation3 + $0x598] sm:$0xff]  ;;  %v886_v47 = vld [vmem:[#allocation3 + $0x590] sm:$0xff] }
 0x1ea   : > { %1438 = vmatprep.mubr.f32.mxu1 %v873_v51  ;;  %v889_v51 = vld [vmem:[#allocation3 + $0x5a8] sm:$0xff] }
 0x1ed   : > { %1439 = vmatmul.mubr.f32.gmra.mrb[82].mxu1 %v872_v55  ;;  %v888_v55 = vld [vmem:[#allocation3 + $0x5a0] sm:$0xff] }
 0x1ee   : > { %1443 = vmatprep.mubr.f32.mxu1 %v875_v59  ;;  %v891_v59 = vld [vmem:[#allocation3 + $0x5b8] sm:$0xff] }
 0x1f1   : > { %1444 = vmatmul.mubr.f32.gmra.mrb[84].mxu1 %v874_v63  ;;  %v890_v63 = vld [vmem:[#allocation3 + $0x5b0] sm:$0xff] }
 0x1f2   : > { %1448 = vmatprep.mubr.f32.mxu1 %v877_v3  ;;  %v893_v3 = vld [vmem:[#allocation3 + $0x5c8] sm:$0xff] }
 0x1f5   : > { %1449 = vmatmul.mubr.f32.gmra.mrb[86].mxu1 %v876_v33  ;;  %v892_v33 = vld [vmem:[#allocation3 + $0x5c0] sm:$0xff] }
 0x1f6   : > { %1453 = vmatprep.mubr.f32.mxu1 %v879_v7  ;;  %v895_v7 = vld [vmem:[#allocation3 + $0x5d8] sm:$0xff] }
 0x1f9   : > { %1454 = vmatmul.mubr.f32.gmra.mrb[88].mxu1 %v878_v11  ;;  %v894_v11 = vld [vmem:[#allocation3 + $0x5d0] sm:$0xff] }
 0x1fa   : > { %1458 = vmatprep.mubr.f32.mxu1 %v881_v15  ;;  %v897_v15 = vld [vmem:[#allocation3 + $0x5e8] sm:$0xff] }
 0x1fd   : > { %1459 = vmatmul.mubr.f32.gmra.mrb[90].mxu1 %v880_v19  ;;  %v896_v19 = vld [vmem:[#allocation3 + $0x5e0] sm:$0xff] }
 0x1fe   : > { %1463 = vmatprep.mubr.f32.mxu1 %v883_v23  ;;  %v899_v23 = vld [vmem:[#allocation3 + $0x5f8] sm:$0xff] }
 0x201   : > { %1464 = vmatmul.mubr.f32.gmra.mrb[92].mxu1 %v882_v27 }
 0x202   : > { %1468 = vmatprep.mubr.f32.mxu1 %v885_v31 }
 0x205   : > { %1469 = vmatmul.mubr.f32.gmra.mrb[94].mxu1 %v884_v39 }
 0x206   : > { %1473 = vmatprep.mubr.f32.mxu1 %v887_v43 }
 0x209   : > { %1474 = vmatmul.mubr.f32.gmra.mrb[96].mxu1 %v886_v47 }
 0x20a   : > { %1478 = vmatprep.mubr.f32.mxu1 %v889_v51  ;;  %v898_v51 = vld [vmem:[#allocation3 + $0x5f0] sm:$0xff] }
 0x20d   : > { %1479 = vmatmul.mubr.f32.gmra.mrb[98].mxu1 %v888_v55 }
 0x20e   : > { %1483 = vmatprep.mubr.f32.mxu1 %v891_v59 }
 0x211   : > { %1484 = vmatmul.mubr.f32.gmra.mrb[100].mxu1 %v890_v63  ;;  %v901_v63 = vld [vmem:[#allocation3 + $0x608] sm:$0xff] }
 0x212   : > { %1488 = vmatprep.mubr.f32.mxu1 %v893_v3 }
 0x215   : > { %1489 = vmatmul.mubr.f32.gmra.mrb[102].mxu1 %v892_v33 }
 0x216   : > { %1493 = vmatprep.mubr.f32.mxu1 %v895_v7 }
 0x219   : > { %1494 = vmatmul.mubr.f32.gmra.mrb[104].mxu1 %v894_v11 }
 0x21a   : > { %1498 = vmatprep.mubr.f32.mxu1 %v897_v15 }
 0x21c   : > { %v1235_v27 = vpop.f32.mrb[0].mxu1  ;;  %v1030_v31 = vpop.f32.mrb[32].mxu0 }
 0x21d   : > { %v1838_v39 = vmul.f32 0.2, %v1235_v27  ;;  %v1237_v43 = vpop.f32.mrb[1].mxu1  ;;  %1499 = vmatmul.mubr.f32.gmra.mrb[106].mxu1 %v896_v19  ;;  %vm1710_vm2 = vcmp.ge.f32.partialorder %v1235_v27, 0.0  ;;  %vm1669_vm3 = vcmp.ge.f32.partialorder %v1030_v31, 0.0  ;;  %v1032_v47 = vpop.f32.mrb[33].mxu0 }
 0x21e   : > { %1503 = vmatprep.mubr.f32.mxu1 %v899_v23  ;;  %v1797_v55 = vmul.f32 0.2, %v1030_v31  ;;  %v900_v23 = vld [vmem:[#allocation3 + $0x600] sm:$0xff] }
 0x21f   : > { %v1966_v59 = vsel %vm1710_vm2, %v1235_v27, %v1838_v39  ;;  %v903_v27 = vld [vmem:[#allocation3 + $0x618] sm:$0xff] }
 0x220   : > { %2236 = vrot.lane.b32.xlu1 %v1966_v59, %s5526_s14  ;;  %v1240_v3 = vpop.f32.mrb[2].mxu1  ;;  %v1925_v33 = vsel %vm1669_vm3, %v1030_v31, %v1797_v55  ;;  %v1035_v7 = vpop.f32.mrb[34].mxu0 }
 0x221   : > { %v1839_v11 = vmul.f32 0.2, %v1240_v3  ;;  %v1242_v15 = vpop.f32.mrb[3].mxu1  ;;  %1504 = vmatmul.mubr.f32.gmra.mrb[108].mxu1 %v898_v51  ;;  %vm1711_vm5 = vcmp.ge.f32.partialorder %v1240_v3, 0.0  ;;  %2054 = vst.msk [vmem:[#allocation2] sm:$0xff] %vm2053_vm4, %v1925_v33  ;;  %vm1670_vm6 = vcmp.ge.f32.partialorder %v1035_v7, 0.0 }
 0x222   : > { %v1037_v19 = vpop.f32.mrb[35].mxu0  ;;  %1508 = vmatprep.mubr.f32.mxu1 %v901_v63  ;;  %v1798_v43 = vmul.f32 0.2, %v1035_v7  ;;  %v902_v33 = vld [vmem:[#allocation3 + $0x610] sm:$0xff] }
 0x223   : > { %v1967_v47 = vsel %vm1711_vm5, %v1240_v3, %v1839_v11  ;;  %v905_v19 = vld [vmem:[#allocation3 + $0x628] sm:$0xff] }
 0x224   : > { %2238 = vrot.lane.b32.xlu0 %v1967_v47, %s5526_s14  ;;  %v1245_v39 = vpop.f32.mrb[4].mxu1  ;;  %v1926_v59 = vsel %vm1670_vm6, %v1035_v7, %v1798_v43  ;;  %v1040_v2 = vpop.f32.mrb[36].mxu0 }
 0x225   : > { %vm1712_vm7 = vcmp.ge.f32.partialorder %v1245_v39, 0.0  ;;  %v1840_v31 = vmul.f32 0.2, %v1245_v39  ;;  %v1247_v55 = vpop.f32.mrb[5].mxu1  ;;  %1509 = vmatmul.mubr.f32.gmra.mrb[110].mxu1 %v900_v23  ;;  %2055 = vst.msk [vmem:[#allocation2 + $0x8] sm:$0xff] %vm2053_vm4, %v1926_v59  ;;  %vm1671_vm8 = vcmp.ge.f32.partialorder %v1040_v2, 0.0 }
 0x226   : > { %v1042_v51 = vpop.f32.mrb[37].mxu0  ;;  %1513 = vmatprep.mubr.f32.mxu1 %v903_v27  ;;  %v1799_v63 = vmul.f32 0.2, %v1040_v2  ;;  %v904_v59 = vld [vmem:[#allocation3 + $0x620] sm:$0xff] }
 0x227   : > { %v1968_v15 = vsel %vm1712_vm7, %v1245_v39, %v1840_v31  ;;  %v907_v51 = vld [vmem:[#allocation3 + $0x638] sm:$0xff] }
 0x228   : > { %2240 = vrot.lane.b32.xlu1 %v1968_v15, %s5526_s14  ;;  %v1250_v3 = vpop.f32.mrb[6].mxu1  ;;  %v1927_v11 = vsel %vm1671_vm8, %v1040_v2, %v1799_v63  ;;  %v1045_v47 = vpop.f32.mrb[38].mxu0 }
 0x229   : > { %vm1713_vm9 = vcmp.ge.f32.partialorder %v1250_v3, 0.0  ;;  %v1841_v7 = vmul.f32 0.2, %v1250_v3  ;;  %v1252_v43 = vpop.f32.mrb[7].mxu1  ;;  %1514 = vmatmul.mubr.f32.gmra.mrb[112].mxu1 %v902_v33  ;;  %2056 = vst.msk [vmem:[#allocation2 + $0x10] sm:$0xff] %vm2053_vm4, %v1927_v11  ;;  %vm1672_vm10 = vcmp.ge.f32.partialorder %v1045_v47, 0.0 }
 0x22a   : > { %v1047_v23 = vpop.f32.mrb[39].mxu0  ;;  %1518 = vmatprep.mubr.f32.mxu1 %v905_v19  ;;  %v1800_v27 = vmul.f32 0.2, %v1045_v47  ;;  %v906_v11 = vld [vmem:[#allocation3 + $0x630] sm:$0xff] }
 0x22b   : > { %v1969_v55 = vsel %vm1713_vm9, %v1250_v3, %v1841_v7  ;;  %v909_v23 = vld [vmem:[#allocation3 + $0x648] sm:$0xff] }
 0x22c   : > { %2242 = vrot.lane.b32.xlu0 %v1969_v55, %s5526_s14  ;;  %v1255_v39 = vpop.f32.mrb[8].mxu1  ;;  %v1928_v31 = vsel %vm1672_vm10, %v1045_v47, %v1800_v27  ;;  %v1050_v15 = vpop.f32.mrb[40].mxu0 }
 0x22d   : > { %vm1714_vm11 = vcmp.ge.f32.partialorder %v1255_v39, 0.0  ;;  %v1842_v2 = vmul.f32 0.2, %v1255_v39  ;;  %v1257_v63 = vpop.f32.mrb[9].mxu1  ;;  %1519 = vmatmul.mubr.f32.gmra.mrb[114].mxu1 %v904_v59  ;;  %2057 = vst.msk [vmem:[#allocation2 + $0x18] sm:$0xff] %vm2053_vm4, %v1928_v31  ;;  %vm1673_vm12 = vcmp.ge.f32.partialorder %v1050_v15, 0.0 }
 0x22e   : > { %v1052_v33 = vpop.f32.mrb[41].mxu0  ;;  %1523 = vmatprep.mubr.f32.mxu1 %v907_v51  ;;  %v1801_v19 = vmul.f32 0.2, %v1050_v15  ;;  %v908_v31 = vld [vmem:[#allocation3 + $0x640] sm:$0xff] }
 0x22f   : > { %v1970_v43 = vsel %vm1714_vm11, %v1255_v39, %v1842_v2  ;;  %v911_v33 = vld [vmem:[#allocation3 + $0x658] sm:$0xff] }
 0x230   : > { %2244 = vrot.lane.b32.xlu1 %v1970_v43, %s5526_s14  ;;  %v1260_v3 = vpop.f32.mrb[10].mxu1  ;;  %v1929_v7 = vsel %vm1673_vm12, %v1050_v15, %v1801_v19  ;;  %v1055_v55 = vpop.f32.mrb[42].mxu0 }
 0x231   : > { %vm1715_vm13 = vcmp.ge.f32.partialorder %v1260_v3, 0.0  ;;  %v1843_v47 = vmul.f32 0.2, %v1260_v3  ;;  %v1262_v27 = vpop.f32.mrb[11].mxu1  ;;  %1524 = vmatmul.mubr.f32.gmra.mrb[116].mxu1 %v906_v11  ;;  %2058 = vst.msk [vmem:[#allocation2 + $0x20] sm:$0xff] %vm2053_vm4, %v1929_v7  ;;  %vm1674_vm14 = vcmp.ge.f32.partialorder %v1055_v55, 0.0 }
 0x232   : > { %v1057_v59 = vpop.f32.mrb[43].mxu0  ;;  %1528 = vmatprep.mubr.f32.mxu1 %v909_v23  ;;  %v1802_v51 = vmul.f32 0.2, %v1055_v55  ;;  %v910_v23 = vld [vmem:[#allocation3 + $0x650] sm:$0xff] }
 0x233   : > { %v1971_v63 = vsel %vm1715_vm13, %v1260_v3, %v1843_v47  ;;  %v913_v59 = vld [vmem:[#allocation3 + $0x668] sm:$0xff] }
 0x234   : > { %2246 = vrot.lane.b32.xlu0 %v1971_v63, %s5526_s14  ;;  %v1265_v39 = vpop.f32.mrb[12].mxu1  ;;  %v1930_v2 = vsel %vm1674_vm14, %v1055_v55, %v1802_v51  ;;  %v1060_v43 = vpop.f32.mrb[44].mxu0 }
 0x235   : > { %vm1716_vm15 = vcmp.ge.f32.partialorder %v1265_v39, 0.0  ;;  %v1844_v15 = vmul.f32 0.2, %v1265_v39  ;;  %v1267_v19 = vpop.f32.mrb[13].mxu1  ;;  %1529 = vmatmul.mubr.f32.gmra.mrb[118].mxu1 %v908_v31  ;;  %2059 = vst.msk [vmem:[#allocation2 + $0x28] sm:$0xff] %vm2053_vm4, %v1930_v2  ;;  %vm1675_vm0 = vcmp.ge.f32.partialorder %v1060_v43, 0.0 }
 0x236   : > { %v1062_v11 = vpop.f32.mrb[45].mxu0  ;;  %1533 = vmatprep.mubr.f32.mxu1 %v911_v33  ;;  %v1803_v7 = vmul.f32 0.2, %v1060_v43  ;;  %v912_v33 = vld [vmem:[#allocation3 + $0x660] sm:$0xff] }
 0x237   : > { %v1972_v27 = vsel %vm1716_vm15, %v1265_v39, %v1844_v15  ;;  %v915_v11 = vld [vmem:[#allocation3 + $0x678] sm:$0xff] }
 0x238   : > { %2248 = vrot.lane.b32.xlu1 %v1972_v27, %s5526_s14  ;;  %v1931_v3 = vsel %vm1675_vm0, %v1060_v43, %v1803_v7  ;;  %v1270_v47 = vpop.f32.mrb[14].mxu1  ;;  %v1065_v63 = vpop.f32.mrb[46].mxu0 }
 0x239   : > { %2060 = vst.msk [vmem:[#allocation2 + $0x30] sm:$0xff] %vm2053_vm4, %v1931_v3  ;;  %vm1717_vm1 = vcmp.ge.f32.partialorder %v1270_v47, 0.0  ;;  %v1845_v55 = vmul.f32 0.2, %v1270_v47  ;;  %v1272_v51 = vpop.f32.mrb[15].mxu1  ;;  %1534 = vmatmul.mubr.f32.gmra.mrb[120].mxu1 %v910_v23  ;;  %vm1676_vm2 = vcmp.ge.f32.partialorder %v1065_v63, 0.0 }
 0x23a   : > { %v1067_v31 = vpop.f32.mrb[47].mxu0  ;;  %v1804_v2 = vmul.f32 0.2, %v1065_v63  ;;  %1538 = vmatprep.mubr.f32.mxu1 %v913_v59  ;;  %v914_v59 = vld [vmem:[#allocation3 + $0x670] sm:$0xff] }
 0x23b   : > { %v1973_v19 = vsel %vm1717_vm1, %v1270_v47, %v1845_v55  ;;  %v917_v55 = vld [vmem:[#allocation3 + $0x688] sm:$0xff] }
 0x23c   : > { %v1932_v39 = vsel %vm1676_vm2, %v1065_v63, %v1804_v2  ;;  %2275 = vrot.lane.b32.xlu0 %v1973_v19, %s5527_s15  ;;  %v1070_v43 = vpop.f32.mrb[48].mxu0  ;;  %v1275_v15 = vpop.f32.mrb[16].mxu1 }
 0x23d   : > { %2061 = vst.msk [vmem:[#allocation2 + $0x38] sm:$0xff] %vm2053_vm4, %v1932_v39  ;;  %vm1677_vm3 = vcmp.ge.f32.partialorder %v1070_v43, 0.0  ;;  %v1805_v7 = vmul.f32 0.2, %v1070_v43  ;;  %vm1718_vm5 = vcmp.ge.f32.partialorder %v1275_v15, 0.0  ;;  %1539 = vmatmul.mubr.f32.gmra.mrb[122].mxu1 %v912_v33  ;;  %v1277_v23 = vpop.f32.mrb[17].mxu1 }
 0x23e   : > { %v1846_v27 = vmul.f32 0.2, %v1275_v15  ;;  %v1072_v3 = vpop.f32.mrb[49].mxu0  ;;  %1543 = vmatprep.mubr.f32.mxu1 %v915_v11  ;;  %v916_v39 = vld [vmem:[#allocation3 + $0x680] sm:$0xff] }
 0x23f   : > { %v1933_v47 = vsel %vm1677_vm3, %v1070_v43, %v1805_v7  ;;  %v919_v3 = vld [vmem:[#allocation3 + $0x698] sm:$0xff] }
 0x240   : > { %v1974_v51 = vsel %vm1718_vm5, %v1275_v15, %v1846_v27  ;;  %v1280_v63 = vpop.f32.mrb[18].mxu1  ;;  %2070 = vrot.lane.b32.xlu0 %v1933_v47, %s5528_s16  ;;  %v1075_v31 = vpop.f32.mrb[50].mxu0 }
 0x241   : > { %2277 = vrot.lane.b32.xlu1 %v1974_v51, %s5527_s15  ;;  %vm1678_vm4 = vcmp.ge.f32.partialorder %v1075_v31, 0.0  ;;  %v1806_v2 = vmul.f32 0.2, %v1075_v31  ;;  %1544 = vmatmul.mubr.f32.gmra.mrb[124].mxu1 %v914_v59  ;;  %v1282_v19 = vpop.f32.mrb[19].mxu1  ;;  %v1077_v33 = vpop.f32.mrb[51].mxu0  ;;  %vm1719_vm6 = vcmp.ge.f32.partialorder %v1280_v63, 0.0 }
 0x242   : > { %1548 = vmatprep.mubr.f32.mxu1 %v917_v55  ;;  %v1847_v23 = vmul.f32 0.2, %v1280_v63  ;;  %v918_v59 = vld [vmem:[#allocation3 + $0x690] sm:$0xff]  ;;  %v921_v33 = vld [vmem:[#allocation3 + $0x6a8] sm:$0xff] }
 0x243   : > { %v1934_v11 = vsel %vm1678_vm4, %v1075_v31, %v1806_v2 }
 0x244   : > { %v1285_v43 = vpop.f32.mrb[20].mxu1  ;;  %2072 = vrot.lane.b32.xlu0 %v1934_v11, %s5528_s16  ;;  %v1080_v15 = vpop.f32.mrb[52].mxu0  ;;  %v1975_v19 = vsel %vm1719_vm6, %v1280_v63, %v1847_v23 }
 0x245   : > { %vm1720_vm7 = vcmp.ge.f32.partialorder %v1285_v43, 0.0  ;;  %v1848_v7 = vmul.f32 0.2, %v1285_v43  ;;  %v1287_v27 = vpop.f32.mrb[21].mxu1  ;;  %1549 = vmatmul.mubr.f32.gmra.mrb[126].mxu1 %v916_v39  ;;  %v1082_v51 = vpop.f32.mrb[53].mxu0  ;;  %vm1679_vm8 = vcmp.ge.f32.partialorder %v1080_v15, 0.0 }
 0x246   : > { %v1807_v47 = vmul.f32 0.2, %v1080_v15  ;;  %1553 = vmatprep.mubr.f32.mxu1 %v919_v3  ;;  %v920_v51 = vld [vmem:[#allocation3 + $0x6a0] sm:$0xff] }
 0x247   : > { %v1976_v55 = vsel %vm1720_vm7, %v1285_v43, %v1848_v7 }
 0x248   : > { %2281 = vrot.lane.b32.xlu1 %v1976_v55, %s5527_s15  ;;  %v1290_v31 = vpop.f32.mrb[22].mxu1  ;;  %2279 = vrot.lane.b32.xlu0 %v1975_v19, %s5527_s15  ;;  %v1085_v2 = vpop.f32.mrb[54].mxu0  ;;  %v1935_v35 = vsel %vm1679_vm8, %v1080_v15, %v1807_v47  ;;  %v922_v47 = vld [vmem:[#allocation3 + $0x6b0] sm:$0xff] }
 0x249   : > { %vm1680_vm9 = vcmp.ge.f32.partialorder %v1085_v2, 0.0  ;;  %v1808_v11 = vmul.f32 0.2, %v1085_v2  ;;  %1554 = vmatmul.mubr.f32.gmra.mrb[128].mxu1 %v918_v59  ;;  %v1292_v27 = vpop.f32.mrb[23].mxu1  ;;  %v1087_v39 = vpop.f32.mrb[55].mxu0  ;;  %vm1721_vm10 = vcmp.ge.f32.partialorder %v1290_v31, 0.0 }
 0x24a   : > { %1558 = vmatprep.mubr.f32.mxu1 %v921_v33  ;;  %v1849_v62 = vmul.f32 0.2, %v1290_v31  ;;  %v925_v33 = vld [vmem:[#allocation3 + $0x6c8] sm:$0xff] }
 0x24b   : > { %v1936_v3 = vsel %vm1680_vm9, %v1085_v2, %v1808_v11 }
 0x24c   : > { %v1295_v63 = vpop.f32.mrb[24].mxu1  ;;  %2074 = vrot.lane.b32.xlu0 %v1935_v35, %s5528_s16  ;;  %2076 = vrot.lane.b32.xlu1 %v1936_v3, %s5528_s16  ;;  %v1090_v23 = vpop.f32.mrb[56].mxu0  ;;  %v1977_v55 = vsel %vm1721_vm10, %v1290_v31, %v1849_v62  ;;  %v924_v3 = vld [vmem:[#allocation3 + $0x6c0] sm:$0xff] }
 0x24d   : > { %vm1722_vm11 = vcmp.ge.f32.partialorder %v1295_v63, 0.0  ;;  %v1850_v43 = vmul.f32 0.2, %v1295_v63  ;;  %v1297_v7 = vpop.f32.mrb[25].mxu1  ;;  %1559 = vmatmul.mubr.f32.gmra.mrb[130].mxu1 %v920_v51  ;;  %v1092_v59 = vpop.f32.mrb[57].mxu0  ;;  %vm1681_vm12 = vcmp.ge.f32.partialorder %v1090_v23, 0.0 }
 0x24e   : > { %v1809_v15 = vmul.f32 0.2, %v1090_v23  ;;  %1563 = vmatprep.mubr.f32.mxu1 %v923_v30  ;;  %v927_v59 = vld [vmem:[#allocation3 + $0x6d8] sm:$0xff] }
 0x24f   : > { %v1978_v19 = vsel %vm1722_vm11, %v1295_v63, %v1850_v43 }
 0x250   : > { %v1300_v2 = vpop.f32.mrb[26].mxu1  ;;  %2283 = vrot.lane.b32.xlu0 %v1977_v55, %s5527_s15  ;;  %2285 = vrot.lane.b32.xlu1 %v1978_v19, %s5527_s15  ;;  %v1095_v35 = vpop.f32.mrb[58].mxu0  ;;  %v1937_v27 = vsel %vm1681_vm12, %v1090_v23, %v1809_v15  ;;  %v926_v15 = vld [vmem:[#allocation3 + $0x6d0] sm:$0xff] }
 0x251   : > { %vm1682_vm13 = vcmp.ge.f32.partialorder %v1095_v35, 0.0  ;;  %v1810_v11 = vmul.f32 0.2, %v1095_v35  ;;  %1564 = vmatmul.mubr.f32.gmra.mrb[132].mxu1 %v922_v47  ;;  %v1302_v39 = vpop.f32.mrb[27].mxu1  ;;  %v1097_v51 = vpop.f32.mrb[59].mxu0  ;;  %vm1723_vm14 = vcmp.ge.f32.partialorder %v1300_v2, 0.0 }
 0x252   : > { %1568 = vmatprep.mubr.f32.mxu1 %v925_v33  ;;  %v1851_v7 = vmul.f32 0.2, %v1300_v2  ;;  %v929_v33 = vld [vmem:[#allocation3 + $0x6e8] sm:$0xff] }
 0x253   : > { %v1938_v30 = vsel %vm1682_vm13, %v1095_v35, %v1810_v11 }
 0x254   : > { %v1305_v62 = vpop.f32.mrb[28].mxu1  ;;  %2078 = vrot.lane.b32.xlu0 %v1937_v27, %s5528_s16  ;;  %2080 = vrot.lane.b32.xlu1 %v1938_v30, %s5528_s16  ;;  %v1100_v31 = vpop.f32.mrb[60].mxu0  ;;  %v1979_v55 = vsel %vm1723_vm14, %v1300_v2, %v1851_v7  ;;  %v928_v30 = vld [vmem:[#allocation3 + $0x6e0] sm:$0xff] }
 0x255   : > { %vm1724_vm15 = vcmp.ge.f32.partialorder %v1305_v62, 0.0  ;;  %v1852_v63 = vmul.f32 0.2, %v1305_v62  ;;  %v1307_v43 = vpop.f32.mrb[29].mxu1  ;;  %1569 = vmatmul.mubr.f32.gmra.mrb[134].mxu1 %v924_v3  ;;  %v1102_v47 = vpop.f32.mrb[61].mxu0  ;;  %vm1683_vm0 = vcmp.ge.f32.partialorder %v1100_v31, 0.0 }
 0x256   : > { %v1811_v23 = vmul.f32 0.2, %v1100_v31  ;;  %1573 = vmatprep.mubr.f32.mxu1 %v927_v59  ;;  %v931_v47 = vld [vmem:[#allocation3 + $0x6f8] sm:$0xff] }
 0x257   : > { %v1980_v19 = vsel %vm1724_vm15, %v1305_v62, %v1852_v63 }
 0x258   : > { %v1310_v35 = vpop.f32.mrb[30].mxu1  ;;  %2287 = vrot.lane.b32.xlu0 %v1979_v55, %s5527_s15  ;;  %2289 = vrot.lane.b32.xlu1 %v1980_v19, %s5527_s15  ;;  %v1105_v11 = vpop.f32.mrb[62].mxu0  ;;  %v1939_v39 = vsel %vm1683_vm0, %v1100_v31, %v1811_v23  ;;  %v930_v23 = vld [vmem:[#allocation3 + $0x6f0] sm:$0xff]  ;;  %s5543_s15 = smov 127  }
 0x259   : > { %vm1684_vm1 = vcmp.ge.f32.partialorder %v1105_v11, 0.0  ;;  %v1812_v27 = vmul.f32 0.2, %v1105_v11  ;;  %1574 = vmatmul.mubr.f32.gmra.mrb[136].mxu1 %v926_v15  ;;  %v1312_v51 = vpop.f32.mrb[31].mxu1  ;;  %v1107_v3 = vpop.f32.mrb[63].mxu0  ;;  %vm1725_vm2 = vcmp.ge.f32.partialorder %v1310_v35, 0.0 }
 0x25a   : > { %1578 = vmatprep.mubr.f32.mxu1 %v929_v33  ;;  %v1853_v43 = vmul.f32 0.2, %v1310_v35  ;;  %v933_v33 = vld [vmem:[#allocation3 + $0x708] sm:$0xff] }
 0x25b   : > { %v1940_v59 = vsel %vm1684_vm1, %v1105_v11, %v1812_v27 }
 0x25c   : > { %v1315_v2 = vpop.f32.mrb[32].mxu1  ;;  %2082 = vrot.lane.b32.xlu0 %v1939_v39, %s5528_s16  ;;  %2084 = vrot.lane.b32.xlu1 %v1940_v59, %s5528_s16  ;;  %v1110_v7 = vpop.f32.mrb[64].mxu0  ;;  %v1981_v55 = vsel %vm1725_vm2, %v1310_v35, %v1853_v43  ;;  %v932_v35 = vld [vmem:[#allocation3 + $0x700] sm:$0xff]  ;;  %s5544_s16 = smov 124  }
 0x25d   : > { %vm1685_vm3 = vcmp.ge.f32.partialorder %v1110_v7, 0.0  ;;  %v1813_v62 = vmul.f32 0.2, %v1110_v7  ;;  %1579 = vmatmul.mubr.f32.gmra.mrb[138].mxu1 %v928_v30  ;;  %v1317_v63 = vpop.f32.mrb[33].mxu1  ;;  %v1112_v31 = vpop.f32.mrb[65].mxu0  ;;  %vm1726_vm5 = vcmp.ge.f32.partialorder %v1315_v2, 0.0 }
 0x25e   : > { %1583 = vmatprep.mubr.f32.mxu1 %v931_v47  ;;  %v1854_v15 = vmul.f32 0.2, %v1315_v2  ;;  %v935_v47 = vld [vmem:[#allocation3 + $0x718] sm:$0xff] }
 0x25f   : > { %v1941_v19 = vsel %vm1685_vm3, %v1110_v7, %v1813_v62 }
 0x260   : > { %v1320_v11 = vpop.f32.mrb[34].mxu1  ;;  %2316 = vrot.lane.b32.xlu0 %v1981_v55, %s5529_s17  ;;  %2111 = vrot.lane.b32.xlu1 %v1941_v19, %s5530_s18  ;;  %v1115_v27 = vpop.f32.mrb[66].mxu0  ;;  %v1982_v59 = vsel %vm1726_vm5, %v1315_v2, %v1854_v15  ;;  %v934_v19 = vld [vmem:[#allocation3 + $0x710] sm:$0xff] }
 0x261   : > { %vm1727_vm4 = vcmp.ge.f32.partialorder %v1320_v11, 0.0  ;;  %v1855_v39 = vmul.f32 0.2, %v1320_v11  ;;  %v1322_v51 = vpop.f32.mrb[35].mxu1  ;;  %1584 = vmatmul.mubr.f32.gmra.mrb[140].mxu1 %v930_v23  ;;  %v1117_v3 = vpop.f32.mrb[67].mxu0  ;;  %vm1686_vm6 = vcmp.ge.f32.partialorder %v1115_v27, 0.0 }
 0x262   : > { %v1814_v30 = vmul.f32 0.2, %v1115_v27  ;;  %1588 = vmatprep.mubr.f32.mxu1 %v933_v33 }
 0x263   : > { %v1983_v43 = vsel %vm1727_vm4, %v1320_v11, %v1855_v39  ;;  %v937_v11 = vld [vmem:[#allocation3 + $0x728] sm:$0xff] }
 0x264   : > { %v1325_v7 = vpop.f32.mrb[36].mxu1  ;;  %2320 = vrot.lane.b32.xlu0 %v1983_v43, %s5529_s17  ;;  %2318 = vrot.lane.b32.xlu1 %v1982_v59, %s5529_s17  ;;  %v1120_v62 = vpop.f32.mrb[68].mxu0  ;;  %v1942_v31 = vsel %vm1686_vm6, %v1115_v27, %v1814_v30  ;;  %v936_v30 = vld [vmem:[#allocation3 + $0x720] sm:$0xff] }
 0x265   : > { %vm1687_vm7 = vcmp.ge.f32.partialorder %v1120_v62, 0.0  ;;  %v1815_v63 = vmul.f32 0.2, %v1120_v62  ;;  %1589 = vmatmul.mubr.f32.gmra.mrb[142].mxu1 %v932_v35  ;;  %v1327_v23 = vpop.f32.mrb[37].mxu1  ;;  %v1122_v55 = vpop.f32.mrb[69].mxu0  ;;  %vm1728_vm8 = vcmp.ge.f32.partialorder %v1325_v7, 0.0 }
 0x266   : > { %1593 = vmatprep.mubr.f32.mxu1 %v935_v47  ;;  %v1856_v33 = vmul.f32 0.2, %v1325_v7  ;;  %v939_v47 = vld [vmem:[#allocation3 + $0x738] sm:$0xff] }
 0x267   : > { %v1943_v51 = vsel %vm1687_vm7, %v1120_v62, %v1815_v63 }
 0x268   : > { %v1330_v2 = vpop.f32.mrb[38].mxu1  ;;  %2113 = vrot.lane.b32.xlu1 %v1942_v31, %s5530_s18  ;;  %2115 = vrot.lane.b32.xlu0 %v1943_v51, %s5530_s18  ;;  %v1125_v15 = vpop.f32.mrb[70].mxu0  ;;  %v1984_v43 = vsel %vm1728_vm8, %v1325_v7, %v1856_v33  ;;  %v938_v51 = vld [vmem:[#allocation3 + $0x730] sm:$0xff] }
 0x269   : > { %vm1729_vm9 = vcmp.ge.f32.partialorder %v1330_v2, 0.0  ;;  %v1857_v39 = vmul.f32 0.2, %v1330_v2  ;;  %v1332_v3 = vpop.f32.mrb[39].mxu1  ;;  %1594 = vmatmul.mubr.f32.gmra.mrb[144].mxu1 %v934_v19  ;;  %v1127_v35 = vpop.f32.mrb[71].mxu0  ;;  %vm1688_vm10 = vcmp.ge.f32.partialorder %v1125_v15, 0.0 }
 0x26a   : > { %v1816_v27 = vmul.f32 0.2, %v1125_v15  ;;  %1598 = vmatprep.mubr.f32.mxu1 %v937_v11  ;;  %v941_v35 = vld [vmem:[#allocation3 + $0x748] sm:$0xff] }
 0x26b   : > { %v1985_v59 = vsel %vm1729_vm9, %v1330_v2, %v1857_v39 }
 0x26c   : > { %v1335_v62 = vpop.f32.mrb[40].mxu1  ;;  %2322 = vrot.lane.b32.xlu1 %v1984_v43, %s5529_s17  ;;  %2324 = vrot.lane.b32.xlu0 %v1985_v59, %s5529_s17  ;;  %v1130_v63 = vpop.f32.mrb[72].mxu0  ;;  %v1944_v23 = vsel %vm1688_vm10, %v1125_v15, %v1816_v27  ;;  %v940_v27 = vld [vmem:[#allocation3 + $0x740] sm:$0xff] }
 0x26d   : > { %vm1689_vm11 = vcmp.ge.f32.partialorder %v1130_v63, 0.0  ;;  %v1817_v31 = vmul.f32 0.2, %v1130_v63  ;;  %1599 = vmatmul.mubr.f32.gmra.mrb[146].mxu1 %v936_v30  ;;  %v1337_v55 = vpop.f32.mrb[41].mxu1  ;;  %v1132_v19 = vpop.f32.mrb[73].mxu0  ;;  %vm1730_vm12 = vcmp.ge.f32.partialorder %v1335_v62, 0.0 }
 0x26e   : > { %1603 = vmatprep.mubr.f32.mxu1 %v939_v47  ;;  %v1858_v3 = vmul.f32 0.2, %v1335_v62  ;;  %v943_v47 = vld [vmem:[#allocation3 + $0x758] sm:$0xff] }
 0x26f   : > { %v1945_v11 = vsel %vm1689_vm11, %v1130_v63, %v1817_v31 }
 0x270   : > { %v1340_v7 = vpop.f32.mrb[42].mxu1  ;;  %2117 = vrot.lane.b32.xlu1 %v1944_v23, %s5530_s18  ;;  %2119 = vrot.lane.b32.xlu0 %v1945_v11, %s5530_s18  ;;  %v1135_v33 = vpop.f32.mrb[74].mxu0  ;;  %v1986_v43 = vsel %vm1730_vm12, %v1335_v62, %v1858_v3  ;;  %v942_v11 = vld [vmem:[#allocation3 + $0x750] sm:$0xff] }
 0x271   : > { %vm1731_vm13 = vcmp.ge.f32.partialorder %v1340_v7, 0.0  ;;  %v1859_v2 = vmul.f32 0.2, %v1340_v7  ;;  %v1342_v39 = vpop.f32.mrb[43].mxu1  ;;  %1604 = vmatmul.mubr.f32.gmra.mrb[148].mxu1 %v938_v51  ;;  %v1137_v30 = vpop.f32.mrb[75].mxu0  ;;  %vm1690_vm14 = vcmp.ge.f32.partialorder %v1135_v33, 0.0 }
 0x272   : > { %v1818_v15 = vmul.f32 0.2, %v1135_v33  ;;  %1608 = vmatprep.mubr.f32.mxu1 %v941_v35  ;;  %v945_v30 = vld [vmem:[#allocation3 + $0x768] sm:$0xff] }
 0x273   : > { %v1987_v59 = vsel %vm1731_vm13, %v1340_v7, %v1859_v2 }
 0x274   : > { %v1345_v63 = vpop.f32.mrb[44].mxu1  ;;  %2326 = vrot.lane.b32.xlu1 %v1986_v43, %s5529_s17  ;;  %2328 = vrot.lane.b32.xlu0 %v1987_v59, %s5529_s17  ;;  %v1140_v31 = vpop.f32.mrb[76].mxu0  ;;  %v1946_v55 = vsel %vm1690_vm14, %v1135_v33, %v1818_v15  ;;  %v944_v15 = vld [vmem:[#allocation3 + $0x760] sm:$0xff] }
 0x275   : > { %vm1691_vm15 = vcmp.ge.f32.partialorder %v1140_v31, 0.0  ;;  %v1819_v23 = vmul.f32 0.2, %v1140_v31  ;;  %1609 = vmatmul.mubr.f32.gmra.mrb[150].mxu1 %v940_v27  ;;  %v1347_v19 = vpop.f32.mrb[45].mxu1  ;;  %v1142_v51 = vpop.f32.mrb[77].mxu0  ;;  %vm1732_vm0 = vcmp.ge.f32.partialorder %v1345_v63, 0.0 }
 0x276   : > { %1613 = vmatprep.mubr.f32.mxu1 %v943_v47  ;;  %v1860_v39 = vmul.f32 0.2, %v1345_v63  ;;  %v947_v47 = vld [vmem:[#allocation3 + $0x778] sm:$0xff] }
 0x277   : > { %v1947_v35 = vsel %vm1691_vm15, %v1140_v31, %v1819_v23 }
 0x278   : > { %v1350_v62 = vpop.f32.mrb[46].mxu1  ;;  %2121 = vrot.lane.b32.xlu1 %v1946_v55, %s5530_s18  ;;  %2123 = vrot.lane.b32.xlu0 %v1947_v35, %s5530_s18  ;;  %v1145_v3 = vpop.f32.mrb[78].mxu0  ;;  %v1988_v43 = vsel %vm1732_vm0, %v1345_v63, %v1860_v39  ;;  %v946_v35 = vld [vmem:[#allocation3 + $0x770] sm:$0xff]  ;;  %v949_v63 = vld [vmem:[#allocation3 + $0x788] sm:$0xff] }
 0x279   : > { %vm1733_vm1 = vcmp.ge.f32.partialorder %v1350_v62, 0.0  ;;  %v1861_v7 = vmul.f32 0.2, %v1350_v62  ;;  %v1352_v2 = vpop.f32.mrb[47].mxu1  ;;  %1614 = vmatmul.mubr.f32.gmra.mrb[152].mxu1 %v942_v11  ;;  %v1147_v27 = vpop.f32.mrb[79].mxu0  ;;  %vm1692_vm2 = vcmp.ge.f32.partialorder %v1145_v3, 0.0 }
 0x27a   : > { %v1820_v33 = vmul.f32 0.2, %v1145_v3  ;;  %1618 = vmatprep.mubr.f32.mxu1 %v945_v30 }
 0x27b   : > { %v1989_v59 = vsel %vm1733_vm1, %v1350_v62, %v1861_v7 }
 0x27c   : > { %v1355_v31 = vpop.f32.mrb[48].mxu1  ;;  %2330 = vrot.lane.b32.xlu1 %v1988_v43, %s5529_s17  ;;  %2357 = vrot.lane.b32.xlu0 %v1989_v59, %s5531_s19  ;;  %v1150_v23 = vpop.f32.mrb[80].mxu0  ;;  %v1948_v19 = vsel %vm1692_vm2, %v1145_v3, %v1820_v33  ;;  %s5539_s17 = smov 112  }
 0x27d   : > { %vm1693_vm3 = vcmp.ge.f32.partialorder %v1150_v23, 0.0  ;;  %v1821_v55 = vmul.f32 0.2, %v1150_v23  ;;  %1619 = vmatmul.mubr.f32.gmra.mrb[154].mxu1 %v944_v15  ;;  %v1357_v51 = vpop.f32.mrb[49].mxu1  ;;  %v1152_v11 = vpop.f32.mrb[81].mxu0  ;;  %vm1734_vm5 = vcmp.ge.f32.partialorder %v1355_v31, 0.0 }
 0x27e   : > { %1623 = vmatprep.mubr.f32.mxu1 %v947_v47  ;;  %v1862_v30 = vmul.f32 0.2, %v1355_v31  ;;  %v948_v15 = vld [vmem:[#allocation3 + $0x780] sm:$0xff]  ;;  %v951_v47 = vld [vmem:[#allocation3 + $0x798] sm:$0xff] }
 0x27f   : > { %v1949_v2 = vsel %vm1693_vm3, %v1150_v23, %v1821_v55 }
 0x280   : > { %v1360_v39 = vpop.f32.mrb[50].mxu1  ;;  %2125 = vrot.lane.b32.xlu1 %v1948_v19, %s5530_s18  ;;  %2152 = vrot.lane.b32.xlu0 %v1949_v2, %s5532_s20  ;;  %v1155_v62 = vpop.f32.mrb[82].mxu0  ;;  %v1990_v43 = vsel %vm1734_vm5, %v1355_v31, %v1862_v30  ;;  %v950_v2 = vld [vmem:[#allocation3 + $0x790] sm:$0xff]  ;;  %s5546_s18 = smov 123  }
 0x281   : > { %vm1735_vm4 = vcmp.ge.f32.partialorder %v1360_v39, 0.0  ;;  %v1863_v7 = vmul.f32 0.2, %v1360_v39  ;;  %v1362_v27 = vpop.f32.mrb[51].mxu1  ;;  %1624 = vmatmul.mubr.f32.gmra.mrb[156].mxu1 %v946_v35  ;;  %v1157_v3 = vpop.f32.mrb[83].mxu0  ;;  %vm1694_vm6 = vcmp.ge.f32.partialorder %v1155_v62, 0.0 }
 0x282   : > { %v1822_v33 = vmul.f32 0.2, %v1155_v62  ;;  %1628 = vmatprep.mubr.f32.mxu1 %v949_v63  ;;  %v953_v3 = vld [vmem:[#allocation3 + $0x7a8] sm:$0xff] }
 0x283   : > { %v1991_v59 = vsel %vm1735_vm4, %v1360_v39, %v1863_v7 }
 0x284   : > { %v1365_v23 = vpop.f32.mrb[52].mxu1  ;;  %2359 = vrot.lane.b32.xlu1 %v1990_v43, %s5531_s19  ;;  %2361 = vrot.lane.b32.xlu0 %v1991_v59, %s5531_s19  ;;  %v1160_v55 = vpop.f32.mrb[84].mxu0  ;;  %v1950_v51 = vsel %vm1694_vm6, %v1155_v62, %v1822_v33  ;;  %v952_v33 = vld [vmem:[#allocation3 + $0x7a0] sm:$0xff] }
 0x285   : > { %vm1695_vm7 = vcmp.ge.f32.partialorder %v1160_v55, 0.0  ;;  %v1823_v19 = vmul.f32 0.2, %v1160_v55  ;;  %1629 = vmatmul.mubr.f32.gmra.mrb[158].mxu1 %v948_v15  ;;  %v1367_v11 = vpop.f32.mrb[53].mxu1  ;;  %v1162_v35 = vpop.f32.mrb[85].mxu0  ;;  %vm1736_vm8 = vcmp.ge.f32.partialorder %v1365_v23, 0.0 }
 0x286   : > { %1633 = vmatprep.mubr.f32.mxu1 %v951_v47  ;;  %v1864_v27 = vmul.f32 0.2, %v1365_v23  ;;  %v955_v47 = vld [vmem:[#allocation3 + $0x7b8] sm:$0xff] }
 0x287   : > { %v1951_v63 = vsel %vm1695_vm7, %v1160_v55, %v1823_v19 }
 0x288   : > { %v1370_v31 = vpop.f32.mrb[54].mxu1  ;;  %2154 = vrot.lane.b32.xlu1 %v1950_v51, %s5532_s20  ;;  %2156 = vrot.lane.b32.xlu0 %v1951_v63, %s5532_s20  ;;  %v1165_v30 = vpop.f32.mrb[86].mxu0  ;;  %v1992_v43 = vsel %vm1736_vm8, %v1365_v23, %v1864_v27  ;;  %v954_v63 = vld [vmem:[#allocation3 + $0x7b0] sm:$0xff] }
 0x289   : > { %vm1737_vm9 = vcmp.ge.f32.partialorder %v1370_v31, 0.0  ;;  %v1865_v39 = vmul.f32 0.2, %v1370_v31  ;;  %v1372_v7 = vpop.f32.mrb[55].mxu1  ;;  %1634 = vmatmul.mubr.f32.gmra.mrb[160].mxu1 %v950_v2  ;;  %v1167_v15 = vpop.f32.mrb[87].mxu0  ;;  %vm1696_vm10 = vcmp.ge.f32.partialorder %v1165_v30, 0.0 }
 0x28a   : > { %v1824_v62 = vmul.f32 0.2, %v1165_v30  ;;  %1638 = vmatprep.mubr.f32.mxu1 %v953_v3  ;;  %v957_v15 = vld [vmem:[#allocation3 + $0x7c8] sm:$0xff] }
 0x28b   : > { %v1993_v59 = vsel %vm1737_vm9, %v1370_v31, %v1865_v39 }
 0x28c   : > { %v1375_v55 = vpop.f32.mrb[56].mxu1  ;;  %2363 = vrot.lane.b32.xlu1 %v1992_v43, %s5531_s19  ;;  %2365 = vrot.lane.b32.xlu0 %v1993_v59, %s5531_s19  ;;  %v1170_v19 = vpop.f32.mrb[88].mxu0  ;;  %v1952_v11 = vsel %vm1696_vm10, %v1165_v30, %v1824_v62  ;;  %v956_v62 = vld [vmem:[#allocation3 + $0x7c0] sm:$0xff] }
 0x28d   : > { %vm1697_vm11 = vcmp.ge.f32.partialorder %v1170_v19, 0.0  ;;  %v1825_v51 = vmul.f32 0.2, %v1170_v19  ;;  %1639 = vmatmul.mubr.f32.gmra.mrb[162].mxu1 %v952_v33  ;;  %v1377_v35 = vpop.f32.mrb[57].mxu1  ;;  %v1172_v2 = vpop.f32.mrb[89].mxu0  ;;  %vm1738_vm12 = vcmp.ge.f32.partialorder %v1375_v55, 0.0 }
 0x28e   : > { %1643 = vmatprep.mubr.f32.mxu1 %v955_v47  ;;  %v1866_v7 = vmul.f32 0.2, %v1375_v55  ;;  %v959_v47 = vld [vmem:[#allocation3 + $0x7d8] sm:$0xff] }
 0x28f   : > { %v1953_v3 = vsel %vm1697_vm11, %v1170_v19, %v1825_v51 }
 0x290   : > { %v1380_v23 = vpop.f32.mrb[58].mxu1  ;;  %2158 = vrot.lane.b32.xlu1 %v1952_v11, %s5532_s20  ;;  %2160 = vrot.lane.b32.xlu0 %v1953_v3, %s5532_s20  ;;  %v1175_v27 = vpop.f32.mrb[90].mxu0  ;;  %v1994_v43 = vsel %vm1738_vm12, %v1375_v55, %v1866_v7 }
 0x291   : > { %vm1739_vm13 = vcmp.ge.f32.partialorder %v1380_v23, 0.0  ;;  %v1867_v31 = vmul.f32 0.2, %v1380_v23  ;;  %v1382_v39 = vpop.f32.mrb[59].mxu1  ;;  %1644 = vmatmul.mubr.f32.gmra.mrb[164].mxu1 %v954_v63  ;;  %v1177_v33 = vpop.f32.mrb[91].mxu0  ;;  %vm1698_vm14 = vcmp.ge.f32.partialorder %v1175_v27, 0.0 }
 0x292   : > { %v1826_v30 = vmul.f32 0.2, %v1175_v27  ;;  %1648 = vmatprep.mubr.f32.mxu1 %v957_v15  ;;  %v958_v63 = vld [vmem:[#allocation3 + $0x7d0] sm:$0xff]  ;;  %v961_v33 = vld [vmem:[#allocation3 + $0x7e8] sm:$0xff] }
 0x293   : > { %v1995_v59 = vsel %vm1739_vm13, %v1380_v23, %v1867_v31  ;;  %vm2094_vm13 = vcmask 130112  }
 0x294   : > { %v1385_v19 = vpop.f32.mrb[60].mxu1  ;;  %2367 = vrot.lane.b32.xlu1 %v1994_v43, %s5531_s19  ;;  %2369 = vrot.lane.b32.xlu0 %v1995_v59, %s5531_s19  ;;  %v1180_v51 = vpop.f32.mrb[92].mxu0  ;;  %v1954_v35 = vsel %vm1698_vm14, %v1175_v27, %v1826_v30  ;;  %v960_v30 = vld [vmem:[#allocation3 + $0x7e0] sm:$0xff] }
 0x295   : > { %vm1699_vm15 = vcmp.ge.f32.partialorder %v1180_v51, 0.0  ;;  %v1827_v11 = vmul.f32 0.2, %v1180_v51  ;;  %1649 = vmatmul.mubr.f32.gmra.mrb[166].mxu1 %v956_v62  ;;  %v1387_v2 = vpop.f32.mrb[61].mxu1  ;;  %v1868_v3 = vmul.f32 0.2, %v1385_v19 }
 0x296   : > { %1653 = vmatprep.mubr.f32.mxu1 %v959_v47  ;;  %v1182_v15 = vpop.f32.mrb[93].mxu0  ;;  %vm1740_vm0 = vcmp.ge.f32.partialorder %v1385_v19, 0.0  ;;  %v963_v47 = vld [vmem:[#allocation3 + $0x7f8] sm:$0xff] }
 0x297   : > { %v1955_v39 = vsel %vm1699_vm15, %v1180_v51, %v1827_v11  ;;  %v1996_v43 = vsel %vm1740_vm0, %v1385_v19, %v1868_v3 }
 0x298   : > { %v1390_v55 = vpop.f32.mrb[62].mxu1  ;;  %2162 = vrot.lane.b32.xlu1 %v1954_v35, %s5532_s20  ;;  %2164 = vrot.lane.b32.xlu0 %v1955_v39, %s5532_s20  ;;  %v1185_v7 = vpop.f32.mrb[94].mxu0  ;;  %v962_v39 = vld [vmem:[#allocation3 + $0x7f0] sm:$0xff] }
 0x299   : > { %vm1741_vm1 = vcmp.ge.f32.partialorder %v1390_v55, 0.0  ;;  %v1869_v23 = vmul.f32 0.2, %v1390_v55  ;;  %v1392_v31 = vpop.f32.mrb[63].mxu1  ;;  %1654 = vmatmul.mubr.f32.gmra.mrb[168].mxu1 %v958_v63  ;;  %v1187_v62 = vpop.f32.mrb[95].mxu0  ;;  %vm1700_vm2 = vcmp.ge.f32.partialorder %v1185_v7, 0.0 }
 0x29a   : > { %v1828_v27 = vmul.f32 0.2, %v1185_v7  ;;  %1658 = vmatprep.mubr.f32.mxu1 %v961_v33 }
 0x29b   : > { %v1997_v59 = vsel %vm1741_vm1, %v1390_v55, %v1869_v23 }
 0x29c   : > { %v1395_v51 = vpop.f32.mrb[64].mxu1  ;;  %2371 = vrot.lane.b32.xlu1 %v1996_v43, %s5531_s19  ;;  %2398 = vrot.lane.b32.xlu0 %v1997_v59, %s5533_s21  ;;  %v1190_v11 = vpop.f32.mrb[96].mxu0  ;;  %v1956_v2 = vsel %vm1700_vm2, %v1185_v7, %v1828_v27  ;;  %s5547_s19 = smov 122  }
 0x29d   : > { %vm1701_vm3 = vcmp.ge.f32.partialorder %v1190_v11, 0.0  ;;  %v1829_v35 = vmul.f32 0.2, %v1190_v11  ;;  %1659 = vmatmul.mubr.f32.gmra.mrb[170].mxu1 %v960_v30  ;;  %v1397_v63 = vpop.f32.mrb[65].mxu1  ;;  %v1870_v15 = vmul.f32 0.2, %v1395_v51  ;;  %v5954_v7 = vpop.permute.xlu0 %2238 }
 0x29e   : > { %1663 = vmatprep.mubr.f32.mxu1 %v963_v47  ;;  %v1192_v31 = vpop.f32.mrb[97].mxu0  ;;  %vm1742_vm5 = vcmp.ge.f32.partialorder %v1395_v51, 0.0  ;;  %v5956_v30 = vpop.permute.xlu1 %2236 }
 0x29f   : > { %v1957_v33 = vsel %vm1701_vm3, %v1190_v11, %v1829_v35  ;;  %v1998_v43 = vsel %vm1742_vm5, %v1395_v51, %v1870_v15 }
 0x2a0   : > { %v1400_v19 = vpop.f32.mrb[66].mxu1  ;;  %2166 = vrot.lane.b32.xlu1 %v1956_v2, %s5532_s20  ;;  %2193 = vrot.lane.b32.xlu0 %v1957_v33, %s5534_s22  ;;  %v1195_v3 = vpop.f32.mrb[98].mxu0  ;;  %s5548_s20 = smov 121  }
 0x2a1   : > { %vm1743_vm4 = vcmp.ge.f32.partialorder %v1400_v19, 0.0  ;;  %v1871_v55 = vmul.f32 0.2, %v1400_v19  ;;  %v1402_v23 = vpop.f32.mrb[67].mxu1  ;;  %1664 = vmatmul.mubr.f32.gmra.mrb[172].mxu1 %v962_v39  ;;  %v1197_v62 = vpop.f32.mrb[99].mxu0  ;;  %vm1702_vm6 = vcmp.ge.f32.partialorder %v1195_v3, 0.0 }
 0x2a2   : > { %v1830_v27 = vmul.f32 0.2, %v1195_v3  ;;  %v5960_v63 = vpop.permute.xlu0 %2242  ;;  %v5962_v33 = vpop.permute.xlu1 %2240 }
 0x2a3   : > { %v1999_v59 = vsel %vm1743_vm4, %v1400_v19, %v1871_v55 }
 0x2a4   : > { %v1405_v47 = vpop.f32.mrb[68].mxu1  ;;  %2400 = vrot.lane.b32.xlu1 %v1998_v43, %s5533_s21  ;;  %2402 = vrot.lane.b32.xlu0 %v1999_v59, %s5533_s21  ;;  %v1200_v11 = vpop.f32.mrb[100].mxu0  ;;  %v1958_v2 = vsel %vm1702_vm6, %v1195_v3, %v1830_v27 }
 0x2a5   : > { %vm1703_vm7 = vcmp.ge.f32.partialorder %v1200_v11, 0.0  ;;  %v1831_v35 = vmul.f32 0.2, %v1200_v11  ;;  %v1407_v39 = vpop.f32.mrb[69].mxu1  ;;  %v1872_v31 = vmul.f32 0.2, %v1405_v47 }
 0x2a6   : > { %v1202_v62 = vpop.f32.mrb[101].mxu0  ;;  %vm1744_vm8 = vcmp.ge.f32.partialorder %v1405_v47, 0.0  ;;  %v5966_v3 = vpop.permute.xlu0 %2246 }
 0x2a7   : > { %v1959_v23 = vsel %vm1703_vm7, %v1200_v11, %v1831_v35  ;;  %v5968_v59 = vpop.permute.xlu1 %2244  ;;  %v2000_v39 = vsel %vm1744_vm8, %v1405_v47, %v1872_v31 }
 0x2a8   : > { %v1410_v51 = vpop.f32.mrb[70].mxu1  ;;  %2195 = vrot.lane.b32.xlu1 %v1958_v2, %s5534_s22  ;;  %2197 = vrot.lane.b32.xlu0 %v1959_v23, %s5534_s22  ;;  %v1205_v15 = vpop.f32.mrb[102].mxu0 }
 0x2a9   : > { %vm1745_vm9 = vcmp.ge.f32.partialorder %v1410_v51, 0.0  ;;  %v1873_v19 = vmul.f32 0.2, %v1410_v51  ;;  %v1412_v55 = vpop.f32.mrb[71].mxu1  ;;  %v1207_v43 = vpop.f32.mrb[103].mxu0  ;;  %vm1704_vm10 = vcmp.ge.f32.partialorder %v1205_v15, 0.0 }
 0x2aa   : > { %v1832_v27 = vmul.f32 0.2, %v1205_v15 }
 0x2ab   : > { %v2001_v11 = vsel %vm1745_vm9, %v1410_v51, %v1873_v19  ;;  %v5974_v43 = vpop.permute.xlu1 %2248 }
 0x2ac   : > { %v1415_v35 = vpop.f32.mrb[72].mxu1  ;;  %2404 = vrot.lane.b32.xlu1 %v2000_v39, %s5533_s21  ;;  %2406 = vrot.lane.b32.xlu0 %v2001_v11, %s5533_s21  ;;  %v1210_v2 = vpop.f32.mrb[104].mxu0  ;;  %v1960_v62 = vsel %vm1704_vm10, %v1205_v15, %v1832_v27 }
 0x2ad   : > { %vm1705_vm11 = vcmp.ge.f32.partialorder %v1210_v2, 0.0  ;;  %v1833_v23 = vmul.f32 0.2, %v1210_v2  ;;  %v1417_v58 = vpop.f32.mrb[73].mxu1  ;;  %v1874_v26 = vmul.f32 0.2, %v1415_v35 }
 0x2ae   : > { %v5972_v55 = vpop.permute.xlu0 %2275  ;;  %v1212_v22 = vpop.f32.mrb[105].mxu0  ;;  %vm1746_vm12 = vcmp.ge.f32.partialorder %v1415_v35, 0.0 }
 0x2af   : > { %v1961_v54 = vsel %vm1705_vm11, %v1210_v2, %v1833_v23  ;;  %v2002_v39 = vsel %vm1746_vm12, %v1415_v35, %v1874_v26  ;;  %vm2135_vm11 = vcmask 195712  }
 0x2b0   : > { %v1420_v47 = vpop.f32.mrb[74].mxu1  ;;  %2199 = vrot.lane.b32.xlu1 %v1960_v62, %s5534_s22  ;;  %2201 = vrot.lane.b32.xlu0 %v1961_v54, %s5534_s22  ;;  %v1215_v31 = vpop.f32.mrb[106].mxu0 }
 0x2b1   : > { %vm1747_vm14 = vcmp.ge.f32.partialorder %v1420_v47, 0.0  ;;  %v1875_v51 = vmul.f32 0.2, %v1420_v47  ;;  %v1422_v19 = vpop.f32.mrb[75].mxu1  ;;  %v1217_v15 = vpop.f32.mrb[107].mxu0  ;;  %vm1706_vm15 = vcmp.ge.f32.partialorder %v1215_v31, 0.0 }
 0x2b2   : > { %v2071_v58 = vpop.permute.xlu0 %2070  ;;  %v1834_v27 = vmul.f32 0.2, %v1215_v31 }
 0x2b3   : > { %2095 = vst.msk [vmem:[#allocation2] sm:$0xff] %vm2094_vm13, %v2071_v58  ;;  %v2003_v11 = vsel %vm1747_vm14, %v1420_v47, %v1875_v51  ;;  %v5981_v54 = vpop.permute.xlu1 %2277 }
 0x2b4   : > { %v1425_v22 = vpop.f32.mrb[76].mxu1  ;;  %2408 = vrot.lane.b32.xlu1 %v2002_v39, %s5533_s21  ;;  %2410 = vrot.lane.b32.xlu0 %v2003_v11, %s5533_s21  ;;  %v1220_v2 = vpop.f32.mrb[108].mxu0  ;;  %v1962_v62 = vsel %vm1706_vm15, %v1215_v31, %v1834_v27 }
 0x2b5   : > { %vm1707_vm0 = vcmp.ge.f32.partialorder %v1220_v2, 0.0  ;;  %v1835_v23 = vmul.f32 0.2, %v1220_v2  ;;  %v1427_v19 = vpop.f32.mrb[77].mxu1  ;;  %v1876_v50 = vmul.f32 0.2, %v1425_v22 }
 0x2b6   : > { %v2073_v15 = vpop.permute.xlu0 %2072  ;;  %v1222_v58 = vpop.f32.mrb[109].mxu0  ;;  %vm1748_vm1 = vcmp.ge.f32.partialorder %v1425_v22, 0.0 }
 0x2b7   : > { %2096 = vst.msk [vmem:[#allocation2 + $0x8] sm:$0xff] %vm2094_vm13, %v2073_v15  ;;  %v1963_v18 = vsel %vm1707_vm0, %v1220_v2, %v1835_v23  ;;  %v5402_v2 = vld [vmem:[%s7068_s4] ss:$16 sps:$4 sm:$0xff]   ;;  %v5404_v23 = vld [vmem:[%s7068_s4 + $0x4] ss:$16 sps:$4 sm:$0xff]  }
 0x2b8   : > { %v1430_v26 = vpop.f32.mrb[78].mxu1  ;;  %2203 = vrot.lane.b32.xlu1 %v1962_v62, %s5534_s22  ;;  %2205 = vrot.lane.b32.xlu0 %v1963_v18, %s5534_s22  ;;  %v1225_v35 = vpop.f32.mrb[110].mxu0  ;;  %v2004_v18 = vsel %vm1748_vm1, %v1425_v22, %v1876_v50 }
 0x2b9   : > { %vm1749_vm2 = vcmp.ge.f32.partialorder %v1430_v26, 0.0  ;;  %v1877_v47 = vmul.f32 0.2, %v1430_v26  ;;  %v1432_v51 = vpop.f32.mrb[79].mxu1  ;;  %vm1708_vm3 = vcmp.ge.f32.partialorder %v1225_v35, 0.0  ;;  %v1227_v39 = vpop.f32.mrb[111].mxu0  ;;  %2881 = vmatprep.subr.bf16.mxu0 %v5404_v23 }
 0x2ba   : > { %v5986_v31 = vpop.permute.xlu1 %2281  ;;  %v5988_v27 = vpop.permute.xlu0 %2279  ;;  %v1836_v11 = vmul.f32 0.2, %v1225_v35  ;;  %2882 = vmatpush1.bf16.msra.mxu0 %v5402_v2 }
 0x2bb   : > { %v2005_v62 = vsel %vm1749_vm2, %v1430_v26, %v1877_v47 }
 0x2bc   : > { %v1435_v19 = vpop.f32.mrb[80].mxu1  ;;  %2412 = vrot.lane.b32.xlu1 %v2004_v18, %s5533_s21  ;;  %2439 = vrot.lane.b32.xlu0 %v2005_v62, %s5535_s27  ;;  %v1230_v15 = vpop.f32.mrb[112].mxu0  ;;  %v1964_v51 = vsel %vm1708_vm3, %v1225_v35, %v1836_v11  ;;  %s5549_s21 = smov 118  }
 0x2bd   : > { %vm1709_vm5 = vcmp.ge.f32.partialorder %v1230_v15, 0.0  ;;  %v1837_v58 = vmul.f32 0.2, %v1230_v15  ;;  %v1437_v39 = vpop.f32.mrb[81].mxu1  ;;  %v1878_v14 = vmul.f32 0.2, %v1435_v19 }
 0x2be   : > { %v2075_v46 = vpop.permute.xlu0 %2074  ;;  %v2077_v50 = vpop.permute.xlu1 %2076  ;;  %vm1750_vm4 = vcmp.ge.f32.partialorder %v1435_v19, 0.0 }
 0x2bf   : > { %2097 = vst.msk [vmem:[#allocation2 + $0x10] sm:$0xff] %vm2094_vm13, %v2075_v46  ;;  %v1965_v22 = vsel %vm1709_vm5, %v1230_v15, %v1837_v58  ;;  %v1232_v26 = vpop.f32.mrb[113].mxu0  ;;  %2098 = vst.msk [vmem:[#allocation2 + $0x18] sm:$0xff] %vm2094_vm13, %v2077_v50  ;;  %v2006_v18 = vsel %vm1750_vm4, %v1435_v19, %v1878_v14  ;;  %vm2176_vm5 = vcmask 261312  }
 0x2c0   : > { %v1440_v47 = vpop.f32.mrb[82].mxu1  ;;  %2207 = vrot.lane.b32.xlu1 %v1964_v51, %s5534_s22  ;;  %2234 = vrot.lane.b32.xlu0 %v1965_v22, %s5526_s14  ;;  %s5537_s22 = smov 96   ;;  %s5542_s14 = smov 126  }
 0x2c1   : > { %vm1751_vm6 = vcmp.ge.f32.partialorder %v1440_v47, 0.0  ;;  %v1879_v35 = vmul.f32 0.2, %v1440_v47  ;;  %v1442_v11 = vpop.f32.mrb[83].mxu1 }
 0x2c2   : > { %v6003_v23 = vpop.permute.xlu0 %2283  ;;  %v6005_v2 = vpop.permute.xlu1 %2285 }
 0x2c3   : > { %v2007_v46 = vsel %vm1751_vm6, %v1440_v47, %v1879_v35 }
 0x2c4   : > { %v1445_v62 = vpop.f32.mrb[84].mxu1  ;;  %2441 = vrot.lane.b32.xlu1 %v2006_v18, %s5535_s27  ;;  %2443 = vrot.lane.b32.xlu0 %v2007_v46, %s5535_s27 }
 0x2c5   : > { %vm1752_vm7 = vcmp.ge.f32.partialorder %v1445_v62, 0.0  ;;  %v1880_v15 = vmul.f32 0.2, %v1445_v62  ;;  %v1447_v58 = vpop.f32.mrb[85].mxu1 }
 0x2c6   : > { %v2079_v51 = vpop.permute.xlu0 %2078  ;;  %v2081_v39 = vpop.permute.xlu1 %2080  ;;  %v5407_v58 = vld [vmem:[%s7068_s4 + $0x24] ss:$16 sps:$4 sm:$0xff]  }
 0x2c7   : > { %2099 = vst.msk [vmem:[#allocation2 + $0x20] sm:$0xff] %vm2094_vm13, %v2079_v51  ;;  %v2008_v50 = vsel %vm1752_vm7, %v1445_v62, %v1880_v15  ;;  %2100 = vst.msk [vmem:[#allocation2 + $0x28] sm:$0xff] %vm2094_vm13, %v2081_v39  ;;  %v5405_v62 = vld [vmem:[%s7068_s4 + $0x20] ss:$16 sps:$4 sm:$0xff]   ;;  %2883 = vmatprep.subr.bf16.mxu0 %v5407_v58 }
 0x2c8   : > { %v1450_v22 = vpop.f32.mrb[86].mxu1  ;;  %2445 = vrot.lane.b32.xlu1 %v2008_v50, %s5535_s27  ;;  %2884 = vmatpush1.bf16.msra.mxu0 %v5405_v62 }
 0x2c9   : > { %vm1753_vm8 = vcmp.ge.f32.partialorder %v1450_v22, 0.0  ;;  %v1881_v14 = vmul.f32 0.2, %v1450_v22  ;;  %v1452_v19 = vpop.f32.mrb[87].mxu1 }
 0x2ca   : > { %v6012_v26 = vpop.permute.xlu0 %2287  ;;  %v6014_v47 = vpop.permute.xlu1 %2289 }
 0x2cb   : > { %v2009_v35 = vsel %vm1753_vm8, %v1450_v22, %v1881_v14 }
 0x2cc   : > { %v1455_v11 = vpop.f32.mrb[88].mxu1  ;;  %2447 = vrot.lane.b32.xlu0 %v2009_v35, %s5535_s27 }
 0x2cd   : > { %vm1754_vm9 = vcmp.ge.f32.partialorder %v1455_v11, 0.0  ;;  %v1882_v18 = vmul.f32 0.2, %v1455_v11  ;;  %v1457_v46 = vpop.f32.mrb[89].mxu1 }
 0x2ce   : > { %v2083_v15 = vpop.permute.xlu0 %2082  ;;  %v2085_v51 = vpop.permute.xlu1 %2084 }
 0x2cf   : > { %2101 = vst.msk [vmem:[#allocation2 + $0x30] sm:$0xff] %vm2094_vm13, %v2083_v15  ;;  %v2010_v39 = vsel %vm1754_vm9, %v1455_v11, %v1882_v18  ;;  %2102 = vst.msk [vmem:[#allocation2 + $0x38] sm:$0xff] %vm2094_vm13, %v2085_v51 }
 0x2d0   : > { %v1460_v50 = vpop.f32.mrb[90].mxu1  ;;  %2449 = vrot.lane.b32.xlu1 %v2010_v39, %s5535_s27 }
 0x2d1   : > { %vm1755_vm10 = vcmp.ge.f32.partialorder %v1460_v50, 0.0  ;;  %v1883_v22 = vmul.f32 0.2, %v1460_v50  ;;  %v1462_v14 = vpop.f32.mrb[91].mxu1 }
 0x2d2   : > { %v6026_v19 = vpop.permute.xlu0 %2316  ;;  %v2112_v35 = vpop.permute.xlu1 %2111 }
 0x2d3   : > { %v2011_v46 = vsel %vm1755_vm10, %v1460_v50, %v1883_v22  ;;  %2136 = vst.msk [vmem:[#allocation2] sm:$0xff] %vm2135_vm11, %v2112_v35 }
 0x2d4   : > { %v1465_v15 = vpop.f32.mrb[92].mxu1  ;;  %2451 = vrot.lane.b32.xlu0 %v2011_v46, %s5535_s27 }
 0x2d5   : > { %vm1756_vm12 = vcmp.ge.f32.partialorder %v1465_v15, 0.0  ;;  %v1884_v11 = vmul.f32 0.2, %v1465_v15  ;;  %v1467_v18 = vpop.f32.mrb[93].mxu1 }
 0x2d6   : > { %v6030_v51 = vpop.permute.xlu0 %2320  ;;  %v6032_v58 = vpop.permute.xlu1 %2318 }
 0x2d7   : > { %v2012_v39 = vsel %vm1756_vm12, %v1465_v15, %v1884_v11  ;;  %vm2217_vm12 = vcmask 326912  }
 0x2d8   : > { %v1470_v14 = vpop.f32.mrb[94].mxu1  ;;  %2453 = vrot.lane.b32.xlu1 %v2012_v39, %s5535_s27  ;;  %s5538_s27 = smov 104  }
 0x2d9   : > { %vm1757_vm13 = vcmp.ge.f32.partialorder %v1470_v14, 0.0  ;;  %v1885_v62 = vmul.f32 0.2, %v1470_v14  ;;  %v1472_v42 = vpop.f32.mrb[95].mxu1 }
 0x2da   : > { %v2116_v50 = vpop.permute.xlu0 %2115  ;;  %v2114_v22 = vpop.permute.xlu1 %2113 }
 0x2db   : > { %2138 = vst.msk [vmem:[#allocation2 + $0x10] sm:$0xff] %vm2135_vm11, %v2116_v50  ;;  %v2013_v35 = vsel %vm1757_vm13, %v1470_v14, %v1885_v62  ;;  %2137 = vst.msk [vmem:[#allocation2 + $0x8] sm:$0xff] %vm2135_vm11, %v2114_v22  ;;  %v5408_v62 = vld [vmem:[%s7068_s4 + $0x40] ss:$16 sps:$4 sm:$0xff]  }
 0x2dc   : > { %v1475_v46 = vpop.f32.mrb[96].mxu1  ;;  %2480 = vrot.lane.b32.xlu0 %v2013_v35, %s5536_s13  ;;  %v5410_v35 = vld [vmem:[%s7068_s4 + $0x44] ss:$16 sps:$4 sm:$0xff]  }
 0x2dd   : > { %vm1758_vm14 = vcmp.ge.f32.partialorder %v1475_v46, 0.0  ;;  %v1886_v18 = vmul.f32 0.2, %v1475_v46  ;;  %v1477_v15 = vpop.f32.mrb[97].mxu1  ;;  %2885 = vmatprep.subr.bf16.mxu0 %v5410_v35 }
 0x2de   : > { %v6038_v11 = vpop.permute.xlu0 %2324  ;;  %v6040_v39 = vpop.permute.xlu1 %2322  ;;  %2886 = vmatpush1.bf16.msra.mxu0 %v5408_v62 }
 0x2df   : > { %v2014_v10 = vsel %vm1758_vm14, %v1475_v46, %v1886_v18  ;;  %vm2258_vm14 = vcmask 392512  }
 0x2e0   : > { %v1480_v42 = vpop.f32.mrb[98].mxu1  ;;  %2482 = vrot.lane.b32.xlu1 %v2014_v10, %s5536_s13 }
 0x2e1   : > { %vm1759_vm15 = vcmp.ge.f32.partialorder %v1480_v42, 0.0  ;;  %v1887_v50 = vmul.f32 0.2, %v1480_v42  ;;  %v1482_v14 = vpop.f32.mrb[99].mxu1 }
 0x2e2   : > { %v2120_v22 = vpop.permute.xlu0 %2119  ;;  %v2118_v15 = vpop.permute.xlu1 %2117 }
 0x2e3   : > { %2140 = vst.msk [vmem:[#allocation2 + $0x20] sm:$0xff] %vm2135_vm11, %v2120_v22  ;;  %v2015_v38 = vsel %vm1759_vm15, %v1480_v42, %v1887_v50  ;;  %2139 = vst.msk [vmem:[#allocation2 + $0x18] sm:$0xff] %vm2135_vm11, %v2118_v15  ;;  %vm2299_vm15 = vcmask 458112  }
 0x2e4   : > { %v1485_v46 = vpop.f32.mrb[100].mxu1  ;;  %2484 = vrot.lane.b32.xlu0 %v2015_v38, %s5536_s13 }
 0x2e5   : > { %vm1760_vm0 = vcmp.ge.f32.partialorder %v1485_v46, 0.0  ;;  %v1888_v10 = vmul.f32 0.2, %v1485_v46  ;;  %v1487_v18 = vpop.f32.mrb[101].mxu1 }
 0x2e6   : > { %v6052_v14 = vpop.permute.xlu0 %2328  ;;  %v6054_v6 = vpop.permute.xlu1 %2326 }
 0x2e7   : > { %v2016_v1 = vsel %vm1760_vm0, %v1485_v46, %v1888_v10  ;;  %vm2340_vm0 = vcmask 523712  }
 0x2e8   : > { %v1490_v0 = vpop.f32.mrb[102].mxu1  ;;  %2486 = vrot.lane.b32.xlu1 %v2016_v1, %s5536_s13 }
 0x2e9   : > { %vm1761_vm1 = vcmp.ge.f32.partialorder %v1490_v0, 0.0  ;;  %v1889_v42 = vmul.f32 0.2, %v1490_v0  ;;  %v1492_v50 = vpop.f32.mrb[103].mxu1 }
 0x2ea   : > { %v2124_v22 = vpop.permute.xlu0 %2123  ;;  %v2122_v15 = vpop.permute.xlu1 %2121 }
 0x2eb   : > { %2142 = vst.msk [vmem:[#allocation2 + $0x30] sm:$0xff] %vm2135_vm11, %v2124_v22  ;;  %v2017_v38 = vsel %vm1761_vm1, %v1490_v0, %v1889_v42  ;;  %2141 = vst.msk [vmem:[#allocation2 + $0x28] sm:$0xff] %vm2135_vm11, %v2122_v15  ;;  %vm2381_vm1 = vcmask 589312  }
 0x2ec   : > { %v1495_v35 = vpop.f32.mrb[104].mxu1  ;;  %2488 = vrot.lane.b32.xlu0 %v2017_v38, %s5536_s13 }
 0x2ed   : > { %vm1762_vm2 = vcmp.ge.f32.partialorder %v1495_v35, 0.0  ;;  %v1890_v62 = vmul.f32 0.2, %v1495_v35  ;;  %v1497_v18 = vpop.f32.mrb[105].mxu1 }
 0x2ee   : > { %v6060_v46 = vpop.permute.xlu0 %2357  ;;  %v6062_v10 = vpop.permute.xlu1 %2330 }
 0x2ef   : > { %v2018_v1 = vsel %vm1762_vm2, %v1495_v35, %v1890_v62  ;;  %v5411_v62 = vld [vmem:[%s7068_s4 + $0x60] ss:$16 sps:$4 sm:$0xff]  }
 0x2f0   : > { %v1500_v34 = vpop.f32.mrb[106].mxu1  ;;  %2490 = vrot.lane.b32.xlu1 %v2018_v1, %s5536_s13 }
 0x2f1   : > { %vm1763_vm3 = vcmp.ge.f32.partialorder %v1500_v34, 0.0  ;;  %v1891_v50 = vmul.f32 0.2, %v1500_v34  ;;  %v1502_v22 = vpop.f32.mrb[107].mxu1 }
 0x2f2   : > { %v2153_v0 = vpop.permute.xlu0 %2152  ;;  %v2126_v42 = vpop.permute.xlu1 %2125  ;;  %v5413_v22 = vld [vmem:[%s7068_s4 + $0x64] ss:$16 sps:$4 sm:$0xff]  }
 0x2f3   : > { %2177 = vst.msk [vmem:[#allocation2] sm:$0xff] %vm2176_vm5, %v2153_v0  ;;  %v2019_v15 = vsel %vm1763_vm3, %v1500_v34, %v1891_v50  ;;  %2887 = vmatprep.subr.bf16.mxu0 %v5413_v22  ;;  %vm2422_vm3 = vcmask 654912  }
 0x2f4   : > { %2143 = vst.msk [vmem:[#allocation2 + $0x38] sm:$0xff] %vm2135_vm11, %v2126_v42  ;;  %v1505_v38 = vpop.f32.mrb[108].mxu1  ;;  %2492 = vrot.lane.b32.xlu0 %v2019_v15, %s5536_s13  ;;  %2888 = vmatpush1.bf16.msra.mxu0 %v5411_v62 }
 0x2f5   : > { %vm1764_vm4 = vcmp.ge.f32.partialorder %v1505_v38, 0.0  ;;  %v1892_v18 = vmul.f32 0.2, %v1505_v38  ;;  %v1507_v35 = vpop.f32.mrb[109].mxu1 }
 0x2f6   : > { %v6071_v1 = vpop.permute.xlu0 %2361  ;;  %v6076_v0 = vpop.permute.xlu1 %2359 }
 0x2f7   : > { %v2020_v34 = vsel %vm1764_vm4, %v1505_v38, %v1892_v18 }
 0x2f8   : > { %v1510_v50 = vpop.f32.mrb[110].mxu1  ;;  %2494 = vrot.lane.b32.xlu1 %v2020_v34, %s5536_s13  ;;  %s6899_s13 = scalar_lea.vmem %s7073_s9, %s5269_s29 }
 0x2f9   : > { %vm1765_vm6 = vcmp.ge.f32.partialorder %v1510_v50, 0.0  ;;  %v1893_v42 = vmul.f32 0.2, %v1510_v50  ;;  %v1512_v15 = vpop.f32.mrb[111].mxu1 }
 0x2fa   : > { %v2157_v35 = vpop.permute.xlu0 %2156  ;;  %v2155_v32 = vpop.permute.xlu1 %2154 }
 0x2fb   : > { %2179 = vst.msk [vmem:[#allocation2 + $0x10] sm:$0xff] %vm2176_vm5, %v2157_v35  ;;  %v2021_v61 = vsel %vm1765_vm6, %v1510_v50, %v1893_v42  ;;  %2178 = vst.msk [vmem:[#allocation2 + $0x8] sm:$0xff] %vm2176_vm5, %v2155_v32 }
 0x2fc   : > { %v1515_v60 = vpop.f32.mrb[112].mxu1  ;;  %2521 = vrot.lane.b32.xlu0 %v2021_v61, %s5537_s22 }
 0x2fd   : > { %vm1766_vm7 = vcmp.ge.f32.partialorder %v1515_v60, 0.0  ;;  %v1894_v38 = vmul.f32 0.2, %v1515_v60  ;;  %v1517_v18 = vpop.f32.mrb[113].mxu1 }
 0x2fe   : > { %v6082_v34 = vpop.permute.xlu0 %2365  ;;  %v6084_v22 = vpop.permute.xlu1 %2363 }
 0x2ff   : > { %v2022_v15 = vsel %vm1766_vm7, %v1515_v60, %v1894_v38 }
 0x300   : > { %v1520_v62 = vpop.f32.mrb[114].mxu1  ;;  %2523 = vrot.lane.b32.xlu1 %v2022_v15, %s5537_s22 }
 0x301   : > { %vm1767_vm8 = vcmp.ge.f32.partialorder %v1520_v62, 0.0  ;;  %v1895_v35 = vmul.f32 0.2, %v1520_v62  ;;  %v1522_v50 = vpop.f32.mrb[115].mxu1 }
 0x302   : > { %v2161_v42 = vpop.permute.xlu0 %2160  ;;  %v2159_v32 = vpop.permute.xlu1 %2158 }
 0x303   : > { %2181 = vst.msk [vmem:[#allocation2 + $0x20] sm:$0xff] %vm2176_vm5, %v2161_v42  ;;  %v2023_v29 = vsel %vm1767_vm8, %v1520_v62, %v1895_v35  ;;  %2180 = vst.msk [vmem:[#allocation2 + $0x18] sm:$0xff] %vm2176_vm5, %v2159_v32  ;;  %v5414_v62 = vld [vmem:[%s7068_s4 + $0x80] ss:$16 sps:$4 sm:$0xff]   ;;  %v5416_v35 = vld [vmem:[%s7068_s4 + $0x84] ss:$16 sps:$4 sm:$0xff]  }
 0x304   : > { %v1525_v61 = vpop.f32.mrb[116].mxu1  ;;  %2525 = vrot.lane.b32.xlu0 %v2023_v29, %s5537_s22  ;;  %2889 = vmatprep.subr.bf16.mxu0 %v5416_v35  ;;  %vm2463_vm8 = vcmask 720512  }
 0x305   : > { %vm1768_vm9 = vcmp.ge.f32.partialorder %v1525_v61, 0.0  ;;  %v1896_v18 = vmul.f32 0.2, %v1525_v61  ;;  %v1527_v28 = vpop.f32.mrb[117].mxu1  ;;  %2890 = vmatpush1.bf16.msra.mxu0 %v5414_v62 }
 0x306   : > { %v6090_v60 = vpop.permute.xlu0 %2369  ;;  %v6092_v38 = vpop.permute.xlu1 %2367 }
 0x307   : > { %v2024_v15 = vsel %vm1768_vm9, %v1525_v61, %v1896_v18 }
 0x308   : > { %v1530_v57 = vpop.f32.mrb[118].mxu1  ;;  %2527 = vrot.lane.b32.xlu1 %v2024_v15, %s5537_s22 }
 0x309   : > { %vm1769_vm10 = vcmp.ge.f32.partialorder %v1530_v57, 0.0  ;;  %v1897_v29 = vmul.f32 0.2, %v1530_v57  ;;  %v1532_v50 = vpop.f32.mrb[119].mxu1 }
 0x30a   : > { %v2165_v28 = vpop.permute.xlu0 %2164  ;;  %v2163_v42 = vpop.permute.xlu1 %2162 }
 0x30b   : > { %2183 = vst.msk [vmem:[#allocation2 + $0x30] sm:$0xff] %vm2176_vm5, %v2165_v28  ;;  %v2025_v32 = vsel %vm1769_vm10, %v1530_v57, %v1897_v29  ;;  %2182 = vst.msk [vmem:[#allocation2 + $0x28] sm:$0xff] %vm2176_vm5, %v2163_v42 }
 0x30c   : > { %v1535_v61 = vpop.f32.mrb[120].mxu1  ;;  %2529 = vrot.lane.b32.xlu0 %v2025_v32, %s5537_s22 }
 0x30d   : > { %vm1770_vm11 = vcmp.ge.f32.partialorder %v1535_v61, 0.0  ;;  %v1898_v18 = vmul.f32 0.2, %v1535_v61  ;;  %v1537_v15 = vpop.f32.mrb[121].mxu1 }
 0x30e   : > { %v6104_v56 = vpop.permute.xlu0 %2398  ;;  %v6106_v25 = vpop.permute.xlu1 %2371 }
 0x30f   : > { %v2026_v50 = vsel %vm1770_vm11, %v1535_v61, %v1898_v18 }
 0x310   : > { %v6108_v24 = vpop.f32.mrb[122].mxu1  ;;  %2531 = vrot.lane.b32.xlu1 %v2026_v50, %s5537_s22 }
 0x311   : > { %v1542_v35 = vpop.f32.mrb[123].mxu1 }
 0x312   : > { %v2194_v57 = vpop.permute.xlu0 %2193  ;;  %v2167_v62 = vpop.permute.xlu1 %2166 }
 0x313   : > { %2218 = vst.msk [vmem:[#allocation2] sm:$0xff] %vm2217_vm12, %v2194_v57 }
 0x314   : > { %2184 = vst.msk [vmem:[#allocation2 + $0x38] sm:$0xff] %vm2176_vm5, %v2167_v62  ;;  %v6113_v29 = vpop.f32.mrb[124].mxu1 }
 0x315   : > { %v1547_v28 = vpop.f32.mrb[125].mxu1 }
 0x316   : > { %v2403_v42 = vpop.permute.xlu0 %2402  ;;  %v2401_v32 = vpop.permute.xlu1 %2400 }
 0x318   : > { %v1550_v15 = vpop.f32.mrb[126].mxu1 }
 0x319   : > { %vm1773_vm13 = vcmp.ge.f32.partialorder %v1550_v15, 0.0  ;;  %v1901_v61 = vmul.f32 0.2, %v1550_v15  ;;  %v1552_v18 = vpop.f32.mrb[127].mxu1 }
 0x31a   : > { %v2198_v50 = vpop.permute.xlu0 %2197  ;;  %v2196_v35 = vpop.permute.xlu1 %2195 }
 0x31b   : > { %2220 = vst.msk [vmem:[#allocation2 + $0x10] sm:$0xff] %vm2217_vm12, %v2198_v50  ;;  %v2029_v53 = vsel %vm1773_vm13, %v1550_v15, %v1901_v61  ;;  %2219 = vst.msk [vmem:[#allocation2 + $0x8] sm:$0xff] %vm2217_vm12, %v2196_v35 }
 0x31c   : > { %2261 = vst.msk [vmem:[#allocation2 + $0x10] sm:$0xff] %vm2258_vm14, %v5954_v7  ;;  %v1555_v57 = vpop.f32.mrb[128].mxu1  ;;  %2562 = vrot.lane.b32.xlu0 %v2029_v53, %s5538_s27  ;;  %2260 = vst.msk [vmem:[#allocation2 + $0x8] sm:$0xff] %vm2258_vm14, %v5956_v30  ;;  %v5417_v30 = vld [vmem:[%s7068_s4 + $0xa0] ss:$16 sps:$4 sm:$0xff]  }
 0x31d   : > { %2302 = vst.msk [vmem:[#allocation2 + $0x10] sm:$0xff] %vm2299_vm15, %v5988_v27  ;;  %vm1774_vm2 = vcmp.ge.f32.partialorder %v1555_v57, 0.0  ;;  %v1902_v62 = vmul.f32 0.2, %v1555_v57  ;;  %v1557_v28 = vpop.f32.mrb[129].mxu1  ;;  %2301 = vst.msk [vmem:[#allocation2 + $0x8] sm:$0xff] %vm2299_vm15, %v5981_v54 }
 0x31e   : > { %v2407_v15 = vpop.permute.xlu0 %2406  ;;  %2343 = vst.msk [vmem:[#allocation2 + $0x10] sm:$0xff] %vm2340_vm0, %v6030_v51  ;;  %v2405_v7 = vpop.permute.xlu1 %2404  ;;  %2342 = vst.msk [vmem:[#allocation2 + $0x8] sm:$0xff] %vm2340_vm0, %v6032_v58  ;;  %v5419_v54 = vld [vmem:[%s7068_s4 + $0xa4] ss:$16 sps:$4 sm:$0xff]  }
 0x31f   : > { %v2030_v53 = vsel %vm1774_vm2, %v1555_v57, %v1902_v62  ;;  %2384 = vst.msk [vmem:[#allocation2 + $0x10] sm:$0xff] %vm2381_vm1, %v6071_v1  ;;  %2383 = vst.msk [vmem:[#allocation2 + $0x8] sm:$0xff] %vm2381_vm1, %v6076_v0  ;;  %2891 = vmatprep.subr.bf16.mxu0 %v5419_v54 }
 0x320   : > { %v1560_v27 = vpop.f32.mrb[130].mxu1  ;;  %2564 = vrot.lane.b32.xlu1 %v2030_v53, %s5538_s27  ;;  %2425 = vst.msk [vmem:[#allocation2 + $0x10] sm:$0xff] %vm2422_vm3, %v2403_v42  ;;  %2424 = vst.msk [vmem:[#allocation2 + $0x8] sm:$0xff] %vm2422_vm3, %v2401_v32  ;;  %2892 = vmatpush1.bf16.msra.mxu0 %v5417_v30 }
 0x321   : > { %vm1775_vm5 = vcmp.ge.f32.partialorder %v1560_v27, 0.0  ;;  %v1903_v51 = vmul.f32 0.2, %v1560_v27  ;;  %v1562_v58 = vpop.f32.mrb[131].mxu1 }
 0x322   : > { %v2202_v1 = vpop.permute.xlu0 %2201  ;;  %v2200_v61 = vpop.permute.xlu1 %2199 }
 0x323   : > { %2222 = vst.msk [vmem:[#allocation2 + $0x20] sm:$0xff] %vm2217_vm12, %v2202_v1  ;;  %v2031_v18 = vsel %vm1775_vm5, %v1560_v27, %v1903_v51  ;;  %2221 = vst.msk [vmem:[#allocation2 + $0x18] sm:$0xff] %vm2217_vm12, %v2200_v61 }
 0x324   : > { %2263 = vst.msk [vmem:[#allocation2 + $0x20] sm:$0xff] %vm2258_vm14, %v5960_v63  ;;  %v1565_v0 = vpop.f32.mrb[132].mxu1  ;;  %2566 = vrot.lane.b32.xlu0 %v2031_v18, %s5538_s27  ;;  %2262 = vst.msk [vmem:[#allocation2 + $0x18] sm:$0xff] %vm2258_vm14, %v5962_v33 }
 0x325   : > { %2304 = vst.msk [vmem:[#allocation2 + $0x20] sm:$0xff] %vm2299_vm15, %v6003_v23  ;;  %vm1776_vm4 = vcmp.ge.f32.partialorder %v1565_v0, 0.0  ;;  %v1904_v42 = vmul.f32 0.2, %v1565_v0  ;;  %v1567_v32 = vpop.f32.mrb[133].mxu1  ;;  %2303 = vst.msk [vmem:[#allocation2 + $0x18] sm:$0xff] %vm2299_vm15, %v5986_v31 }
 0x326   : > { %v2411_v50 = vpop.permute.xlu0 %2410  ;;  %2345 = vst.msk [vmem:[#allocation2 + $0x20] sm:$0xff] %vm2340_vm0, %v6038_v11  ;;  %v2409_v63 = vpop.permute.xlu1 %2408  ;;  %2344 = vst.msk [vmem:[#allocation2 + $0x18] sm:$0xff] %vm2340_vm0, %v6040_v39 }
 0x327   : > { %v2032_v35 = vsel %vm1776_vm4, %v1565_v0, %v1904_v42  ;;  %2386 = vst.msk [vmem:[#allocation2 + $0x20] sm:$0xff] %vm2381_vm1, %v6082_v34  ;;  %2385 = vst.msk [vmem:[#allocation2 + $0x18] sm:$0xff] %vm2381_vm1, %v6084_v22  ;;  %v5423_v0 = vld [vmem:[%s7068_s4 + $0xe0] ss:$16 sps:$4 sm:$0xff]   ;;  %v5425_v42 = vld [vmem:[%s7068_s4 + $0xe4] ss:$16 sps:$4 sm:$0xff]  }
 0x328   : > { %v1570_v33 = vpop.f32.mrb[134].mxu1  ;;  %2568 = vrot.lane.b32.xlu1 %v2032_v35, %s5538_s27  ;;  %2427 = vst.msk [vmem:[#allocation2 + $0x20] sm:$0xff] %vm2422_vm3, %v2407_v15  ;;  %2426 = vst.msk [vmem:[#allocation2 + $0x18] sm:$0xff] %vm2422_vm3, %v2405_v7 }
 0x329   : > { %vm1777_vm6 = vcmp.ge.f32.partialorder %v1570_v33, 0.0  ;;  %v1905_v31 = vmul.f32 0.2, %v1570_v33  ;;  %v1572_v23 = vpop.f32.mrb[135].mxu1 }
 0x32a   : > { %v2206_v11 = vpop.permute.xlu0 %2205  ;;  %v2204_v57 = vpop.permute.xlu1 %2203 }
 0x32b   : > { %2224 = vst.msk [vmem:[#allocation2 + $0x30] sm:$0xff] %vm2217_vm12, %v2206_v11  ;;  %v2033_v39 = vsel %vm1777_vm6, %v1570_v33, %v1905_v31  ;;  %2223 = vst.msk [vmem:[#allocation2 + $0x28] sm:$0xff] %vm2217_vm12, %v2204_v57 }
 0x32c   : > { %2265 = vst.msk [vmem:[#allocation2 + $0x30] sm:$0xff] %vm2258_vm14, %v5966_v3  ;;  %v1575_v34 = vpop.f32.mrb[136].mxu1  ;;  %2570 = vrot.lane.b32.xlu0 %v2033_v39, %s5538_s27  ;;  %2264 = vst.msk [vmem:[#allocation2 + $0x28] sm:$0xff] %vm2258_vm14, %v5968_v59 }
 0x32d   : > { %2306 = vst.msk [vmem:[#allocation2 + $0x30] sm:$0xff] %vm2299_vm15, %v6012_v26  ;;  %vm1778_vm7 = vcmp.ge.f32.partialorder %v1575_v34, 0.0  ;;  %v1906_v22 = vmul.f32 0.2, %v1575_v34  ;;  %v1577_v62 = vpop.f32.mrb[137].mxu1  ;;  %2305 = vst.msk [vmem:[#allocation2 + $0x28] sm:$0xff] %vm2299_vm15, %v6005_v2 }
 0x32e   : > { %v2440_v28 = vpop.permute.xlu0 %2439  ;;  %2347 = vst.msk [vmem:[#allocation2 + $0x30] sm:$0xff] %vm2340_vm0, %v6052_v14  ;;  %v2413_v3 = vpop.permute.xlu1 %2412  ;;  %2346 = vst.msk [vmem:[#allocation2 + $0x28] sm:$0xff] %vm2340_vm0, %v6054_v6  ;;  %v5420_v6 = vld [vmem:[%s7068_s4 + $0xc0] ss:$16 sps:$4 sm:$0xff]  }
 0x32f   : > { %v2034_v15 = vsel %vm1778_vm7, %v1575_v34, %v1906_v22  ;;  %2388 = vst.msk [vmem:[#allocation2 + $0x30] sm:$0xff] %vm2381_vm1, %v6090_v60  ;;  %2387 = vst.msk [vmem:[#allocation2 + $0x28] sm:$0xff] %vm2381_vm1, %v6092_v38  ;;  %v5422_v60 = vld [vmem:[%s7068_s4 + $0xc4] ss:$16 sps:$4 sm:$0xff]  }
 0x330   : > { %v6182_v59 = vpop.f32.mrb[138].mxu1  ;;  %2572 = vrot.lane.b32.xlu1 %v2034_v15, %s5538_s27  ;;  %2429 = vst.msk [vmem:[#allocation2 + $0x30] sm:$0xff] %vm2422_vm3, %v2411_v50  ;;  %2428 = vst.msk [vmem:[#allocation2 + $0x28] sm:$0xff] %vm2422_vm3, %v2409_v63  ;;  %2893 = vmatprep.subr.bf16.mxu0 %v5422_v60 }
 0x331   : > { %v1582_v2 = vpop.f32.mrb[139].mxu1  ;;  %2894 = vmatpush1.bf16.msra.mxu0 %v5420_v6  ;;  %vm1779_vm4 = vcmp.ge.f32.partialorder %v6182_v59, 0.0 }
 0x332   : > { %v2235_v26 = vpop.permute.xlu0 %2234  ;;  %v2208_v14 = vpop.permute.xlu1 %2207  ;;  %2895 = vmatprep.subr.bf16.mxu0 %v5425_v42  ;;  %v1907_v42 = vmul.f32 0.2, %v6182_v59 }
 0x333   : > { %2259 = vst.msk [vmem:[#allocation2] sm:$0xff] %vm2258_vm14, %v2235_v26 }
 0x334   : > { %2225 = vst.msk [vmem:[#allocation2 + $0x38] sm:$0xff] %vm2217_vm12, %v2208_v14  ;;  %v6199_v38 = vpop.f32.mrb[140].mxu1 }
 0x335   : > { %2300 = vst.msk [vmem:[#allocation2] sm:$0xff] %vm2299_vm15, %v5972_v55  ;;  %v1587_v7 = vpop.f32.mrb[141].mxu1  ;;  %2896 = vmatpush1.bf16.msra.mxu0 %v5423_v0  ;;  %vm1780_vm7 = vcmp.ge.f32.partialorder %v6199_v38, 0.0 }
 0x336   : > { %2266 = vst.msk [vmem:[#allocation2 + $0x38] sm:$0xff] %vm2258_vm14, %v5974_v43  ;;  %v2444_v53 = vpop.permute.xlu0 %2443  ;;  %v2442_v55 = vpop.permute.xlu1 %2441  ;;  %vm2504_vm14 = vcmask 786112  }
 0x337   : > { %2341 = vst.msk [vmem:[#allocation2] sm:$0xff] %vm2340_vm0, %v6026_v19 }
 0x338   : > { %2307 = vst.msk [vmem:[#allocation2 + $0x38] sm:$0xff] %vm2299_vm15, %v6014_v47  ;;  %v1590_v43 = vpop.f32.mrb[142].mxu1 }
 0x339   : > { %2382 = vst.msk [vmem:[#allocation2] sm:$0xff] %vm2381_vm1, %v6060_v46  ;;  %vm1781_vm9 = vcmp.ge.f32.partialorder %v1590_v43, 0.0  ;;  %v1909_v47 = vmul.f32 0.2, %v1590_v43  ;;  %v1592_v19 = vpop.f32.mrb[143].mxu1 }
 0x33a   : > { %2348 = vst.msk [vmem:[#allocation2 + $0x38] sm:$0xff] %vm2340_vm0, %v6062_v10  ;;  %v2446_v46 = vpop.permute.xlu1 %2445 }
 0x33b   : > { %2466 = vst.msk [vmem:[#allocation2 + $0x10] sm:$0xff] %vm2463_vm8, %v2444_v53  ;;  %2465 = vst.msk [vmem:[#allocation2 + $0x8] sm:$0xff] %vm2463_vm8, %v2442_v55  ;;  %v2037_v10 = vsel %vm1781_vm9, %v1590_v43, %v1909_v47  ;;  %v1899_v47 = vmul.f32 0.2, %v6108_v24 }
 0x33c   : > { %2423 = vst.msk [vmem:[#allocation2] sm:$0xff] %vm2422_vm3, %v6104_v56  ;;  %v1595_v30 = vpop.f32.mrb[144].mxu1  ;;  %2603 = vrot.lane.b32.xlu0 %v2037_v10, %s5539_s17 }
 0x33d   : > { %2389 = vst.msk [vmem:[#allocation2 + $0x38] sm:$0xff] %vm2381_vm1, %v6106_v25  ;;  %vm1782_vm10 = vcmp.ge.f32.partialorder %v1595_v30, 0.0  ;;  %v1910_v56 = vmul.f32 0.2, %v1595_v30  ;;  %v1597_v54 = vpop.f32.mrb[145].mxu1  ;;  %vm1771_vm1 = vcmp.ge.f32.partialorder %v6108_v24, 0.0 }
 0x33e   : > { %2464 = vst.msk [vmem:[#allocation2] sm:$0xff] %vm2463_vm8, %v2440_v28  ;;  %2467 = vst.msk [vmem:[#allocation2 + $0x18] sm:$0xff] %vm2463_vm8, %v2446_v46  ;;  %v2448_v25 = vpop.permute.xlu0 %2447  ;;  %v5428_v46 = vld [vmem:[%s7068_s4 + $0xc] ss:$16 sps:$4 sm:$0xff]  }
 0x33f   : > { %2430 = vst.msk [vmem:[#allocation2 + $0x38] sm:$0xff] %vm2422_vm3, %v2413_v3  ;;  %v2038_v27 = vsel %vm1782_vm10, %v1595_v30, %v1910_v56  ;;  %v5541_v30 = vmov 0   ;;  %2954 = vmatprep.subr.bf16.mxu0 %v5428_v46  ;;  %vm1772_vm3 = vcmp.ge.f32.partialorder %v6113_v29, 0.0  ;;  %vm2545_vm10 = vcmask 851712  }
 0x340   : > { %2468 = vst.msk [vmem:[#allocation2 + $0x20] sm:$0xff] %vm2463_vm8, %v2448_v25  ;;  %v1600_v51 = vpop.f32.mrb[146].mxu1  ;;  %2605 = vrot.lane.b32.xlu1 %v2038_v27, %s5539_s17  ;;  %2913 = vmatprep.mubr.bf16.mxu0 %v5541_v30  ;;  %v1900_v27 = vmul.f32 0.2, %v6113_v29 }
 0x341   : > { %vm1783_vm11 = vcmp.ge.f32.partialorder %v1600_v51, 0.0  ;;  %v1911_v58 = vmul.f32 0.2, %v1600_v51  ;;  %v1602_v1 = vpop.f32.mrb[147].mxu1 }
 0x342   : > { %v2450_v61 = vpop.permute.xlu1 %2449 }
 0x343   : > { %2469 = vst.msk [vmem:[#allocation2 + $0x28] sm:$0xff] %vm2463_vm8, %v2450_v61  ;;  %v2039_v18 = vsel %vm1783_vm11, %v1600_v51, %v1911_v58  ;;  %v2027_v58 = vsel %vm1771_vm1, %v6108_v24, %v1899_v47  ;;  %vm2668_vm1 = vcmask 1048512  }
 0x344   : > { %v1605_v32 = vpop.f32.mrb[148].mxu1  ;;  %2607 = vrot.lane.b32.xlu0 %v2039_v18, %s5539_s17 }
 0x345   : > { %vm1784_vm12 = vcmp.ge.f32.partialorder %v1605_v32, 0.0  ;;  %v1912_v50 = vmul.f32 0.2, %v1605_v32  ;;  %v1607_v63 = vpop.f32.mrb[149].mxu1 }
 0x346   : > { %v2452_v35 = vpop.permute.xlu0 %2451 }
 0x347   : > { %2470 = vst.msk [vmem:[#allocation2 + $0x30] sm:$0xff] %vm2463_vm8, %v2452_v35  ;;  %v2040_v33 = vsel %vm1784_vm12, %v1605_v32, %v1912_v50  ;;  %v2028_v32 = vsel %vm1772_vm3, %v6113_v29, %v1900_v27  ;;  %v7108_v27 = vpack.i.bf16 %v5730_v36, %v5732_v37  ;;  %v7112_v37 = vpack.i.bf16 %v5748_v44, %v5750_v45  ;;  %v7118_v45 = vld [vmem:[#allocation13_spill] sm:$0xff] }
 0x348   : > { %v1610_v31 = vpop.f32.mrb[150].mxu1  ;;  %2609 = vrot.lane.b32.xlu1 %v2040_v33, %s5539_s17 }
 0x349   : > { %vm1785_vm13 = vcmp.ge.f32.partialorder %v1610_v31, 0.0  ;;  %v1913_v23 = vmul.f32 0.2, %v1610_v31  ;;  %v1612_v11 = vpop.f32.mrb[151].mxu1 }
 0x34a   : > { %v2454_v57 = vpop.permute.xlu1 %2453  ;;  %v2035_v11 = vsel %vm1779_vm4, %v6182_v59, %v1907_v42  ;;  %v7130_v42 = vld [vmem:[#allocation17_spill] sm:$0xff] }
 0x34b   : > { %2471 = vst.msk [vmem:[#allocation2 + $0x38] sm:$0xff] %vm2463_vm8, %v2454_v57  ;;  %v2041_v39 = vsel %vm1785_vm13, %v1610_v31, %v1913_v23  ;;  %v1908_v31 = vmul.f32 0.2, %v6199_v38 }
 0x34c   : > { %v1615_v34 = vpop.f32.mrb[152].mxu1  ;;  %2611 = vrot.lane.b32.xlu0 %v2041_v39, %s5539_s17 }
 0x34d   : > { %vm1786_vm15 = vcmp.ge.f32.partialorder %v1615_v34, 0.0  ;;  %v1914_v22 = vmul.f32 0.2, %v1615_v34  ;;  %v1617_v62 = vpop.f32.mrb[153].mxu1 }
 0x34e   : > { %v2481_v28 = vpop.permute.xlu0 %2480  ;;  %v2036_v62 = vsel %vm1780_vm7, %v6199_v38, %v1908_v31 }
 0x34f   : > { %2505 = vst.msk [vmem:[#allocation2] sm:$0xff] %vm2504_vm14, %v2481_v28  ;;  %v2042_v3 = vsel %vm1786_vm15, %v1615_v34, %v1914_v22  ;;  %vm2586_vm15 = vcmask 917312  }
 0x350   : > { %v6236_v15 = vpop.f32.mrb[154].mxu1  ;;  %2613 = vrot.lane.b32.xlu1 %v2042_v3, %s5539_s17 }
 0x351   : > { %v1622_v2 = vpop.f32.mrb[155].mxu1  ;;  %v1915_v22 = vmul.f32 0.2, %v6236_v15  ;;  %vm1787_vm9 = vcmp.ge.f32.partialorder %v6236_v15, 0.0 }
 0x352   : > { %v2483_v26 = vpop.permute.xlu1 %2482 }
 0x353   : > { %2506 = vst.msk [vmem:[#allocation2 + $0x8] sm:$0xff] %vm2504_vm14, %v2483_v26  ;;  %v2043_v38 = vsel %vm1787_vm9, %v6236_v15, %v1915_v22 }
 0x354   : > { %v6240_v14 = vpop.f32.mrb[156].mxu1 }
 0x355   : > { %v1627_v6 = vpop.f32.mrb[157].mxu1  ;;  %vm1788_vm12 = vcmp.ge.f32.partialorder %v6240_v14, 0.0 }
 0x356   : > { %v2485_v60 = vpop.permute.xlu0 %2484  ;;  %v1916_v6 = vmul.f32 0.2, %v6240_v14 }
 0x357   : > { %2507 = vst.msk [vmem:[#allocation2 + $0x10] sm:$0xff] %vm2504_vm14, %v2485_v60 }
 0x358   : > { %v1630_v7 = vpop.f32.mrb[158].mxu1  ;;  %v2044_v47 = vsel %vm1788_vm12, %v6240_v14, %v1916_v6 }
 0x359   : > { %vm1789_vm0 = vcmp.ge.f32.partialorder %v1630_v7, 0.0  ;;  %v1917_v53 = vmul.f32 0.2, %v1630_v7  ;;  %v1632_v55 = vpop.f32.mrb[159].mxu1 }
 0x35a   : > { %v2487_v43 = vpop.permute.xlu1 %2486 }
 0x35b   : > { %2508 = vst.msk [vmem:[#allocation2 + $0x18] sm:$0xff] %vm2504_vm14, %v2487_v43  ;;  %v2045_v19 = vsel %vm1789_vm0, %v1630_v7, %v1917_v53  ;;  %vm2627_vm0 = vcmask 982912  }
 0x35c   : > { %v1635_v10 = vpop.f32.mrb[160].mxu1  ;;  %2644 = vrot.lane.b32.xlu0 %v2045_v19, %s5540_s25 }
 0x35d   : > { %vm1790_vm2 = vcmp.ge.f32.partialorder %v1635_v10, 0.0  ;;  %v1918_v56 = vmul.f32 0.2, %v1635_v10  ;;  %v1637_v54 = vpop.f32.mrb[161].mxu1 }
 0x35e   : > { %v2489_v25 = vpop.permute.xlu0 %2488 }
 0x35f   : > { %2509 = vst.msk [vmem:[#allocation2 + $0x20] sm:$0xff] %vm2504_vm14, %v2489_v25  ;;  %v2046_v51 = vsel %vm1790_vm2, %v1635_v10, %v1918_v56  ;;  %v7107_v25 = vpack.i.bf16 %v5808_v4, %v5810_v5  ;;  %v7110_v4 = vpack.i.bf16 %v5738_v40, %v5740_v41  ;;  %v7111_v5 = vpack.i.bf16 %v5828_v12, %v5830_v13  ;;  %v7119_v12 = vld [vmem:[#allocation14_spill] sm:$0xff] }
 0x360   : > { %v1640_v1 = vpop.f32.mrb[162].mxu1  ;;  %2646 = vrot.lane.b32.xlu1 %v2046_v51, %s5540_s25  ;;  %2533 = vrot.lane.b32.xlu0 %v2027_v58, %s5537_s22  ;;  %v7109_v51 = vpack.i.bf16 %v5818_v8, %v5820_v9  ;;  %v7113_v8 = vpack.i.bf16 %v5838_v16, %v5840_v17  ;;  %v7114_v40 = vpack.i.bf16 %v5758_v48, %v5760_v49  ;;  %v7116_v9 = vld [vmem:[#allocation6_spill] sm:$0xff]  ;;  %v7121_v48 = vld [vmem:[#allocation7_spill] sm:$0xff]  ;;  %v7122_v49 = vld [vmem:[#allocation8_spill] sm:$0xff] }
 0x361   : > { %vm1791_vm5 = vcmp.ge.f32.partialorder %v1640_v1, 0.0  ;;  %v1919_v61 = vmul.f32 0.2, %v1640_v1  ;;  %v1642_v18 = vpop.f32.mrb[163].mxu1  ;;  %v7115_v41 = vpack.i.bf16 %v5848_v20, %v5850_v21  ;;  %v7117_v44 = vpack.i.bf16 %v5768_v52, %v7116_v9  ;;  %v7124_v20 = vld [vmem:[#allocation15_spill] sm:$0xff]  ;;  %v7125_v21 = vld [vmem:[#allocation16_spill] sm:$0xff] }
 0x362   : > { %v2491_v0 = vpop.permute.xlu1 %2490  ;;  %v7120_v13 = vpack.i.bf16 %v7118_v45, %v7119_v12  ;;  %v7123_v17 = vpack.i.bf16 %v7121_v48, %v7122_v49  ;;  %v7128_v18 = vld [vmem:[#allocation10_spill] sm:$0xff]  ;;  %v5441_v45 = vld [vmem:[%s7068_s4 + $0xa8] ss:$16 sps:$4 sm:$0xff]   ;;  %v5446_v12 = vld [vmem:[%s7068_s4 + $0xcc] ss:$16 sps:$4 sm:$0xff]  }
 0x363   : > { %2510 = vst.msk [vmem:[#allocation2 + $0x28] sm:$0xff] %vm2504_vm14, %v2491_v0  ;;  %v2047_v50 = vsel %vm1791_vm5, %v1640_v1, %v1919_v61  ;;  %v7126_v1 = vpack.i.bf16 %v7124_v20, %v7125_v21  ;;  %v7127_v61 = vld [vmem:[#allocation9_spill] sm:$0xff]  ;;  %v5450_v21 = vld [vmem:[%s7071_s7 + $0x40] sm:$0xff]  }
 0x364   : > { %v1645_v24 = vpop.f32.mrb[164].mxu1  ;;  %2535 = vrot.lane.b32.xlu1 %v2028_v32, %s5537_s22  ;;  %2648 = vrot.lane.b32.xlu0 %v2047_v50, %s5540_s25  ;;  %v7129_v0 = vpack.i.bf16 %v7127_v61, %v7128_v18  ;;  %v7131_v32 = vld [vmem:[#allocation18_spill] sm:$0xff]  ;;  %v5447_v20 = vld [vmem:[%s7068_s4 + $0xe8] ss:$16 sps:$4 sm:$0xff]   ;;  %v5454_v18 = vld [vmem:[%s7071_s7 + $0x50] sm:$0xff]   ;;  %s5552_s22 = smov 117  }
 0x365   : > { %vm1792_vm6 = vcmp.ge.f32.partialorder %v1645_v24, 0.0  ;;  %v1920_v63 = vmul.f32 0.2, %v1645_v24  ;;  %v1647_v35 = vpop.f32.mrb[165].mxu1  ;;  %v7132_v50 = vpack.i.bf16 %v7130_v42, %v7131_v32  ;;  %v5453_v61 = vld [vmem:[%s7071_s7 + $0x8] sm:$0xff]   ;;  %v5456_v42 = vld [vmem:[%s7071_s7 + $0x58] sm:$0xff]  }
 0x366   : > { %v2493_v33 = vpop.permute.xlu0 %2492  ;;  %v7134_v35 = vld [vmem:[#allocation12_spill] sm:$0xff]  ;;  %v5457_v32 = vld [vmem:[%s7071_s7 + $0x18] sm:$0xff]  }
 0x367   : > { %2511 = vst.msk [vmem:[#allocation2 + $0x30] sm:$0xff] %vm2504_vm14, %v2493_v33  ;;  %v2048_v23 = vsel %vm1792_vm6, %v1645_v24, %v1920_v63  ;;  %v7133_v63 = vld [vmem:[#allocation11_spill] sm:$0xff] }
 0x368   : > { %v1650_v29 = vpop.f32.mrb[166].mxu1  ;;  %2650 = vrot.lane.b32.xlu1 %v2048_v23, %s5540_s25  ;;  %2574 = vrot.lane.b32.xlu0 %v2035_v11, %s5538_s27  ;;  %v7135_v33 = vpack.i.bf16 %v7133_v63, %v7134_v35  ;;  %v5460_v63 = vld [vmem:[%s7071_s7 + $0x68] sm:$0xff]  }
 0x369   : > { %vm1793_vm8 = vcmp.ge.f32.partialorder %v1650_v29, 0.0  ;;  %v1921_v57 = vmul.f32 0.2, %v1650_v29  ;;  %v1652_v39 = vpop.f32.mrb[167].mxu1  ;;  %v5461_v35 = vld [vmem:[%s7071_s7 + $0x28] sm:$0xff]  }
 0x36a   : > { %v2495_v34 = vpop.permute.xlu1 %2494 }
 0x36b   : > { %2512 = vst.msk [vmem:[#allocation2 + $0x38] sm:$0xff] %vm2504_vm14, %v2495_v34  ;;  %v2049_v28 = vsel %vm1793_vm8, %v1650_v29, %v1921_v57 }
 0x36c   : > { %v1655_v59 = vpop.f32.mrb[168].mxu1  ;;  %2576 = vrot.lane.b32.xlu1 %v2036_v62, %s5538_s27  ;;  %2652 = vrot.lane.b32.xlu0 %v2049_v28, %s5540_s25  ;;  %s5554_s27 = smov 114  }
 0x36d   : > { %vm1794_vm11 = vcmp.ge.f32.partialorder %v1655_v59, 0.0  ;;  %v1922_v3 = vmul.f32 0.2, %v1655_v59  ;;  %v1657_v2 = vpop.f32.mrb[169].mxu1 }
 0x36e   : > { %v2522_v26 = vpop.permute.xlu0 %2521 }
 0x36f   : > { %2546 = vst.msk [vmem:[#allocation2] sm:$0xff] %vm2545_vm10, %v2522_v26  ;;  %v2050_v60 = vsel %vm1794_vm11, %v1655_v59, %v1922_v3 }
 0x370   : > { %v1660_v7 = vpop.f32.mrb[170].mxu1  ;;  %2654 = vrot.lane.b32.xlu1 %v2050_v60, %s5540_s25  ;;  %2615 = vrot.lane.b32.xlu0 %v2043_v38, %s5539_s17  ;;  %v5426_v38 = vld [vmem:[%s7068_s4 + $0x8] ss:$16 sps:$4 sm:$0xff]  }
 0x371   : > { %vm1795_vm13 = vcmp.ge.f32.partialorder %v1660_v7, 0.0  ;;  %v1923_v53 = vmul.f32 0.2, %v1660_v7  ;;  %v1662_v55 = vpop.f32.mrb[171].mxu1 }
 0x372   : > { %v2524_v43 = vpop.permute.xlu1 %2523 }
 0x373   : > { %2547 = vst.msk [vmem:[#allocation2 + $0x8] sm:$0xff] %vm2545_vm10, %v2524_v43  ;;  %v2051_v19 = vsel %vm1795_vm13, %v1660_v7, %v1923_v53  ;;  %v5431_v43 = vld [vmem:[%s7068_s4 + $0x2c] ss:$16 sps:$4 sm:$0xff]  }
 0x374   : > { %v1665_v46 = vpop.f32.mrb[172].mxu1  ;;  %2617 = vrot.lane.b32.xlu1 %v2044_v47, %s5539_s17  ;;  %2656 = vrot.lane.b32.xlu0 %v2051_v19, %s5540_s25  ;;  %s5545_s17 = smov 125  }
 0x375   : > { %vm1796_vm14 = vcmp.ge.f32.partialorder %v1665_v46, 0.0  ;;  %v1924_v15 = vmul.f32 0.2, %v1665_v46  ;;  %v1667_v10 = vpop.f32.mrb[173].mxu1 }
 0x376   : > { %v2526_v56 = vpop.permute.xlu0 %2525 }
 0x377   : > { %2548 = vst.msk [vmem:[#allocation2 + $0x10] sm:$0xff] %vm2545_vm10, %v2526_v56  ;;  %v2052_v54 = vsel %vm1796_vm14, %v1665_v46, %v1924_v15  ;;  %v5429_v46 = vld [vmem:[%s7068_s4 + $0x28] ss:$16 sps:$4 sm:$0xff]   ;;  %v5434_v15 = vld [vmem:[%s7068_s4 + $0x4c] ss:$16 sps:$4 sm:$0xff]  }
 0x378   : > { %2658 = vrot.lane.b32.xlu1 %v2052_v54, %s5540_s25  ;;  %5323 = vrot.lane.b32.xlu0 %v7107_v25, %s5540_s25  ;;  %v5432_v54 = vld [vmem:[%s7068_s4 + $0x48] ss:$16 sps:$4 sm:$0xff]  }
 0x37a   : > { %v2528_v14 = vpop.permute.xlu1 %2527 }
 0x37b   : > { %2549 = vst.msk [vmem:[#allocation2 + $0x18] sm:$0xff] %vm2545_vm10, %v2528_v14 }
 0x37c   : > { %5328 = vrot.lane.b32.xlu1 %v7108_v27, %s5540_s25  ;;  %5333 = vrot.lane.b32.xlu0 %v7109_v51, %s5540_s25  ;;  %v5437_v51 = vld [vmem:[%s7068_s4 + $0x6c] ss:$16 sps:$4 sm:$0xff]  }
 0x37e   : > { %v2530_v58 = vpop.permute.xlu0 %2529 }
 0x37f   : > { %2550 = vst.msk [vmem:[#allocation2 + $0x20] sm:$0xff] %vm2545_vm10, %v2530_v58 }
 0x380   : > { %5338 = vrot.lane.b32.xlu1 %v7110_v4, %s5540_s25  ;;  %5343 = vrot.lane.b32.xlu0 %v7111_v5, %s5540_s25  ;;  %v5435_v5 = vld [vmem:[%s7068_s4 + $0x68] ss:$16 sps:$4 sm:$0xff]  }
 0x382   : > { %v2532_v36 = vpop.permute.xlu1 %2531 }
 0x383   : > { %2551 = vst.msk [vmem:[#allocation2 + $0x28] sm:$0xff] %vm2545_vm10, %v2532_v36  ;;  %v5440_v36 = vld [vmem:[%s7068_s4 + $0x8c] ss:$16 sps:$4 sm:$0xff]  }
 0x384   : > { %5348 = vrot.lane.b32.xlu1 %v7112_v37, %s5540_s25  ;;  %5353 = vrot.lane.b32.xlu0 %v7113_v8, %s5540_s25  ;;  %v5438_v8 = vld [vmem:[%s7068_s4 + $0x88] ss:$16 sps:$4 sm:$0xff]  }
 0x388   : > { %5358 = vrot.lane.b32.xlu1 %v7114_v40, %s5540_s25  ;;  %5363 = vrot.lane.b32.xlu0 %v7115_v41, %s5540_s25 }
 0x38c   : > { %5368 = vrot.lane.b32.xlu1 %v7117_v44, %s5540_s25  ;;  %5373 = vrot.lane.b32.xlu0 %v7120_v13, %s5540_s25  ;;  %v5443_v44 = vld [vmem:[%s7068_s4 + $0xac] ss:$16 sps:$4 sm:$0xff]  }
 0x38e   : > { %v2563_v16 = vpop.permute.xlu0 %2562 }
 0x38f   : > { %2587 = vst.msk [vmem:[#allocation2] sm:$0xff] %vm2586_vm15, %v2563_v16  ;;  %v5444_v16 = vld [vmem:[%s7068_s4 + $0xc8] ss:$16 sps:$4 sm:$0xff]  }
 0x390   : > { %5378 = vrot.lane.b32.xlu1 %v7123_v17, %s5540_s25  ;;  %5383 = vrot.lane.b32.xlu0 %v7126_v1, %s5540_s25  ;;  %v5449_v17 = vld [vmem:[%s7068_s4 + $0xec] ss:$16 sps:$4 sm:$0xff]   ;;  %v5451_v1 = vld [vmem:[%s7071_s7] sm:$0xff]  }
 0x392   : > { %v2565_v52 = vpop.permute.xlu1 %2564 }
 0x393   : > { %2588 = vst.msk [vmem:[#allocation2 + $0x8] sm:$0xff] %vm2586_vm15, %v2565_v52  ;;  %v5452_v52 = vld [vmem:[%s7071_s7 + $0x48] sm:$0xff]  }
 0x394   : > { %5388 = vrot.lane.b32.xlu1 %v7129_v0, %s5540_s25  ;;  %5393 = vrot.lane.b32.xlu0 %v7132_v50, %s5540_s25  ;;  %v5455_v0 = vld [vmem:[%s7071_s7 + $0x10] sm:$0xff]   ;;  %v5458_v50 = vld [vmem:[%s7071_s7 + $0x60] sm:$0xff]  }
 0x396   : > { %v2567_v24 = vpop.permute.xlu0 %2566 }
 0x397   : > { %2589 = vst.msk [vmem:[#allocation2 + $0x10] sm:$0xff] %vm2586_vm15, %v2567_v24  ;;  %v5459_v24 = vld [vmem:[%s7071_s7 + $0x20] sm:$0xff]  }
 0x398   : > { %5398 = vrot.lane.b32.xlu1 %v7135_v33, %s5540_s25  ;;  %v5462_v33 = vld [vmem:[%s7071_s7 + $0x70] sm:$0xff]  }
 0x39a   : > { %v2569_v31 = vpop.permute.xlu1 %2568 }
 0x39b   : > { %2590 = vst.msk [vmem:[#allocation2 + $0x18] sm:$0xff] %vm2586_vm15, %v2569_v31  ;;  %v5464_v31 = vld [vmem:[%s7071_s7 + $0x78] sm:$0xff]  }
 0x39e   : > { %v2571_v23 = vpop.permute.xlu0 %2570 }
 0x39f   : > { %2591 = vst.msk [vmem:[#allocation2 + $0x20] sm:$0xff] %vm2586_vm15, %v2571_v23  ;;  %v5465_v23 = vld [vmem:[%s7071_s7 + $0x38] sm:$0xff]  }
 0x3a2   : > { %v2573_v11 = vpop.permute.xlu1 %2572 }
 0x3a3   : > { %2592 = vst.msk [vmem:[#allocation2 + $0x28] sm:$0xff] %vm2586_vm15, %v2573_v11  ;;  %v5466_v11 = vld [vmem:[%s7071_s7 + $0xc0] sm:$0xff]  }
 0x3ae   : > { %v2604_v29 = vpop.permute.xlu0 %2603 }
 0x3af   : > { %2628 = vst.msk [vmem:[#allocation2] sm:$0xff] %vm2627_vm0, %v2604_v29  ;;  %v3029_v29 = vlaneseq }
 0x3b2   : > { %v2606_v57 = vpop.permute.xlu1 %2605 }
 0x3b3   : > { %2629 = vst.msk [vmem:[#allocation2 + $0x8] sm:$0xff] %vm2627_vm0, %v2606_v57  ;;  %v6487_v57 = vshrl.u32 %v3029_v29, 7 }
 0x3b6   : > { %v2608_v39 = vpop.permute.xlu0 %2607 }
 0x3b7   : > { %2630 = vst.msk [vmem:[#allocation2 + $0x10] sm:$0xff] %vm2627_vm0, %v2608_v39  ;;  %v3031_v39 = vsub.s32 0, %v6487_v57 }
 0x3ba   : > { %v2610_v34 = vpop.permute.xlu1 %2609 }
 0x3bb   : > { %2631 = vst.msk [vmem:[#allocation2 + $0x18] sm:$0xff] %vm2627_vm0, %v2610_v34  ;;  %v6493_v34 = vld [vmem:[%s7069_s5] sm:$0xf] }
 0x3be   : > { %v2612_v22 = vpop.permute.xlu0 %2611 }
 0x3bf   : > { %2632 = vst.msk [vmem:[#allocation2 + $0x20] sm:$0xff] %vm2627_vm0, %v2612_v22  ;;  %v3035_v22 = vsub.s32 1, %v6487_v57 }
 0x3c2   : > { %v2614_v62 = vpop.permute.xlu1 %2613 }
 0x3c3   : > { %2633 = vst.msk [vmem:[#allocation2 + $0x28] sm:$0xff] %vm2627_vm0, %v2614_v62  ;;  %v6499_v62 = vld [vmem:[%s7070_s6] sm:$0xf] }
 0x3ce   : > { %v2645_v28 = vpop.permute.xlu0 %2644 }
 0x3cf   : > { %2669 = vst.msk [vmem:[#allocation2] sm:$0xff] %vm2668_vm1, %v2645_v28  ;;  %v6502_v28 = vrot.slane %v6493_v34, %v3031_v39 }
 0x3d2   : > { %v2647_v59 = vpop.permute.xlu1 %2646  ;;  %v2534_v3 = vpop.permute.xlu0 %2533 }
 0x3d3   : > { %2670 = vst.msk [vmem:[#allocation2 + $0x8] sm:$0xff] %vm2668_vm1, %v2647_v59  ;;  %v6505_v59 = vrot.slane %v6493_v34, %v3035_v22 }
 0x3d4   : > { %2552 = vst.msk [vmem:[#allocation2 + $0x30] sm:$0xff] %vm2545_vm10, %v2534_v3  ;;  %v6508_v3 = vrot.slane %v6499_v62, %v3031_v39 }
 0x3d6   : > { %v2536_v2 = vpop.permute.xlu1 %2535  ;;  %v2649_v26 = vpop.permute.xlu0 %2648  ;;  %v2677_v7 = vld [vmem:[#allocation2] sm:$0xff] }
 0x3d7   : > { %2553 = vst.msk [vmem:[#allocation2 + $0x38] sm:$0xff] %vm2545_vm10, %v2536_v2 }
 0x3d8   : > { %2671 = vst.msk [vmem:[#allocation2 + $0x10] sm:$0xff] %vm2668_vm1, %v2649_v26  ;;  %v6511_v26 = vrot.slane %v6499_v62, %v3035_v22  ;;  %v5471_v22 = vld [vmem:[%s7071_s7 + $0x90] sm:$0xff]  }
 0x3da   : > { %v2651_v6 = vpop.permute.xlu1 %2650  ;;  %v2575_v60 = vpop.permute.xlu0 %2574  ;;  %v2678_v53 = vld [vmem:[#allocation2 + $0x8] sm:$0xff] }
 0x3db   : > { %2672 = vst.msk [vmem:[#allocation2 + $0x18] sm:$0xff] %vm2668_vm1, %v2651_v6  ;;  %v6376_v55 = vpack.c.bf16 %v2678_v53, %v2677_v7 }
 0x3dc   : > { %2593 = vst.msk [vmem:[#allocation2 + $0x30] sm:$0xff] %vm2586_vm15, %v2575_v60 }
 0x3dd   : > { %2914 = vmatmul.mubr.bf16.vlgmr.msra.gmra.mrb[116].mxu0 %v6376_v55 }
 0x3de   : > { %2955 = vmatpush1.bf16.msra.mxu0 %v5426_v38  ;;  %v2577_v47 = vpop.permute.xlu1 %2576  ;;  %v2653_v19 = vpop.permute.xlu0 %2652  ;;  %2923 = vmatprep.mubr.bf16.mxu0 %v5541_v30 }
 0x3df   : > { %2594 = vst.msk [vmem:[#allocation2 + $0x38] sm:$0xff] %vm2586_vm15, %v2577_v47  ;;  %2956 = vmatprep.subr.bf16.mxu0 %v5431_v43  ;;  %v2679_v25 = vld [vmem:[#allocation2 + $0x10] sm:$0xff] }
 0x3e0   : > { %2673 = vst.msk [vmem:[#allocation2 + $0x20] sm:$0xff] %vm2668_vm1, %v2653_v19 }
 0x3e2   : > { %2957 = vmatpush1.bf16.msra.mxu0 %v5429_v46  ;;  %v2655_v10 = vpop.permute.xlu1 %2654  ;;  %v2616_v56 = vpop.permute.xlu0 %2615  ;;  %v2680_v14 = vld [vmem:[#allocation2 + $0x18] sm:$0xff] }
 0x3e3   : > { %2674 = vst.msk [vmem:[#allocation2 + $0x28] sm:$0xff] %vm2668_vm1, %v2655_v10  ;;  %2958 = vmatprep.subr.bf16.mxu0 %v5434_v15  ;;  %v2686_v27 = vpack.c.bf16 %v2680_v14, %v2679_v25 }
 0x3e4   : > { %2634 = vst.msk [vmem:[#allocation2 + $0x30] sm:$0xff] %vm2627_vm0, %v2616_v56 }
 0x3e5   : > { %2924 = vmatmul.mubr.bf16.gmra.mrb[120].mxu0 %v2686_v27 }
 0x3e6   : > { %2959 = vmatpush1.bf16.msra.mxu0 %v5432_v54  ;;  %v2618_v58 = vpop.permute.xlu1 %2617  ;;  %v2657_v4 = vpop.permute.xlu0 %2656  ;;  %2933 = vmatprep.mubr.bf16.mxu0 %v5541_v30 }
 0x3e7   : > { %2635 = vst.msk [vmem:[#allocation2 + $0x38] sm:$0xff] %vm2627_vm0, %v2618_v58  ;;  %2960 = vmatprep.subr.bf16.mxu0 %v5437_v51  ;;  %v2681_v40 = vld [vmem:[#allocation2 + $0x20] sm:$0xff] }
 0x3e8   : > { %2675 = vst.msk [vmem:[#allocation2 + $0x30] sm:$0xff] %vm2668_vm1, %v2657_v4 }
 0x3ea   : > { %2961 = vmatpush1.bf16.msra.mxu0 %v5435_v5  ;;  %v2659_v37 = vpop.permute.xlu1 %2658  ;;  %v2682_v41 = vld [vmem:[#allocation2 + $0x28] sm:$0xff] }
 0x3eb   : > { %2676 = vst.msk [vmem:[#allocation2 + $0x38] sm:$0xff] %vm2668_vm1, %v2659_v37  ;;  %2962 = vmatprep.subr.bf16.mxu0 %v5440_v36  ;;  %v2687_v9 = vpack.c.bf16 %v2682_v41, %v2681_v40 }
 0x3ed   : > { %2934 = vmatmul.mubr.bf16.gmra.mrb[124].mxu0 %v2687_v9 }
 0x3ee   : > { %2963 = vmatpush1.bf16.msra.mxu0 %v5438_v8  ;;  %2943 = vmatprep.mubr.bf16.mxu0 %v5541_v30 }
 0x3ef   : > { %2964 = vmatprep.subr.bf16.mxu0 %v5443_v44  ;;  %v2683_v48 = vld [vmem:[#allocation2 + $0x30] sm:$0xff] }
 0x3f2   : > { %2965 = vmatpush1.bf16.msra.mxu0 %v5441_v45  ;;  %v2684_v13 = vld [vmem:[#allocation2 + $0x38] sm:$0xff] }
 0x3f3   : > { %2966 = vmatprep.subr.bf16.mxu0 %v5446_v12  ;;  %v2688_v49 = vpack.c.bf16 %v2684_v13, %v2683_v48  ;;  %v5467_v12 = vld [vmem:[%s7071_s7 + $0x80] sm:$0xff]   ;;  %v5468_v48 = vld [vmem:[%s7071_s7 + $0xc8] sm:$0xff]  }
 0x3f5   : > { %2944 = vmatmul.mubr.bf16.gmra.mrb[128].mxu0 %v2688_v49 }
 0x3f6   : > { %2967 = vmatpush1.bf16.msra.mxu0 %v5444_v16  ;;  %2986 = vmatprep.mubr.bf16.mxu0 %v5541_v30 }
 0x3f7   : > { %2968 = vmatprep.subr.bf16.mxu0 %v5449_v17 }
 0x3fa   : > { %2969 = vmatpush1.bf16.msra.mxu0 %v5447_v20 }
 0x3fb   : > { %4941 = vmatprep.subr.bf16.mxu0 %v5450_v21 }
 0x3fd   : > { %2987 = vmatmul.mubr.bf16.vlgmr.msra.gmra.mrb[132].mxu0 %v6376_v55 }
 0x3fe   : > { %2996 = vmatprep.mubr.bf16.mxu0 %v5541_v30  ;;  %4942 = vmatpush3.bf16.msra.mxu0 %v5451_v1 }
 0x3ff   : > { %4943 = vmatprep.subr.bf16.mxu0 %v5452_v52  ;;  %v5469_v52 = vld [vmem:[%s7071_s7 + $0x88] sm:$0xff]  }
 0x402   : > { %4944 = vmatpush3.bf16.msra.mxu0 %v5453_v61 }
 0x403   : > { %4945 = vmatprep.subr.bf16.mxu0 %v5454_v18 }
 0x405   : > { %2997 = vmatmul.mubr.bf16.gmra.mrb[136].mxu0 %v2686_v27 }
 0x406   : > { %3006 = vmatprep.mubr.bf16.mxu0 %v5541_v30  ;;  %4946 = vmatpush3.bf16.msra.mxu0 %v5455_v0  ;;  %v5470_v0 = vld [vmem:[%s7071_s7 + $0xd0] sm:$0xff]  }
 0x407   : > { %4947 = vmatprep.subr.bf16.mxu0 %v5456_v42 }
 0x40a   : > { %4948 = vmatpush3.bf16.msra.mxu0 %v5457_v32 }
 0x40b   : > { %4949 = vmatprep.subr.bf16.mxu0 %v5458_v50 }
 0x40d   : > { %3007 = vmatmul.mubr.bf16.gmra.mrb[140].mxu0 %v2687_v9 }
 0x40e   : > { %3016 = vmatprep.mubr.bf16.mxu0 %v5541_v30  ;;  %4950 = vmatpush3.bf16.msra.mxu0 %v5459_v24  ;;  %v5463_v30 = vld [vmem:[%s7071_s7 + $0x30] sm:$0xff]  }
 0x40f   : > { %4951 = vmatprep.subr.bf16.mxu0 %v5460_v63 }
 0x412   : > { %4952 = vmatpush3.bf16.msra.mxu0 %v5461_v35 }
 0x413   : > { %4953 = vmatprep.subr.bf16.mxu0 %v5462_v33 }
 0x415   : > { %3017 = vmatmul.mubr.bf16.gmra.mrb[144].mxu0 %v2688_v49 }
 0x416   : > { %4954 = vmatpush3.bf16.msra.mxu0 %v5463_v30 }
 0x417   : > { %4955 = vmatprep.subr.bf16.mxu0 %v5464_v31 }
 0x41a   : > { %4956 = vmatpush3.bf16.msra.mxu0 %v5465_v23 }
 0x41b   : > { %4981 = vmatprep.subr.bf16.mxu0 %v5466_v11 }
 0x4b0   : > { %v2915_v2 = vpop.f32.mrb[116].mxu0 }
 0x4b1   : > { %v3049_v6 = vmul.f32 %v6502_v28, %v2915_v2  ;;  %v2917_v60 = vpop.f32.mrb[117].mxu0 }
 0x4b2   : > { %v3050_v38 = vmul.f32 %v6505_v59, %v2917_v60  ;;  %v2919_v7 = vpop.f32.mrb[118].mxu0  ;;  %v5472_v60 = vld [vmem:[%s7071_s7 + $0xd8] sm:$0xff]  }
 0x4b3   : > { %v3103_v53 = vadd.f32 %v6508_v3, %v3049_v6  ;;  %v3053_v55 = vmul.f32 %v6502_v28, %v2919_v7  ;;  %v2921_v43 = vpop.f32.mrb[119].mxu0 }
 0x4b4   : > { %v3104_v47 = vadd.f32 %v6511_v26, %v3050_v38  ;;  %v3054_v19 = vmul.f32 %v6505_v59, %v2921_v43  ;;  %v6555_v38 = vpop.permute.xlu0 %5323 }
 0x4b5   : > { %v3167_v46 = vmul.f32 0.2, %v3103_v53  ;;  %v3107_v15 = vadd.f32 %v6508_v3, %v3053_v55  ;;  %vm3135_vm2 = vcmp.ge.f32.partialorder %v3103_v53, 0.0 }
 0x4b6   : > { %v3168_v10 = vmul.f32 0.2, %v3104_v47  ;;  %v3108_v56 = vadd.f32 %v6511_v26, %v3054_v19  ;;  %vm3136_vm3 = vcmp.ge.f32.partialorder %v3104_v47, 0.0  ;;  %v5473_v19 = vld [vmem:[%s7071_s7 + $0x98] sm:$0xff]  }
 0x4b7   : > { %vm3139_vm5 = vcmp.ge.f32.partialorder %v3107_v15, 0.0  ;;  %v3171_v54 = vmul.f32 0.2, %v3107_v15  ;;  %v3199_v27 = vsel %vm3135_vm2, %v3103_v53, %v3167_v46 }
 0x4b8   : > { %vm3140_vm4 = vcmp.ge.f32.partialorder %v3108_v56, 0.0  ;;  %v3172_v25 = vmul.f32 0.2, %v3108_v56  ;;  %v2925_v14 = vpop.f32.mrb[120].mxu0  ;;  %v3200_v8 = vsel %vm3136_vm3, %v3104_v47, %v3168_v10  ;;  %v6565_v10 = vpop.permute.xlu1 %5328 }
 0x4b9   : > { %v3203_v51 = vsel %vm3139_vm5, %v3107_v15, %v3171_v54  ;;  %v3057_v58 = vmul.f32 %v6502_v28, %v2925_v14  ;;  %v2927_v4 = vpop.f32.mrb[121].mxu0  ;;  %v5474_v15 = vld [vmem:[%s7071_s7 + $0xe0] sm:$0xff]   ;;  %v3039_v14 = vsub.s32 2, %v6487_v57 }
 0x4ba   : > { %v3231_v5 = vpack.c.bf16 %v3203_v51, %v3199_v27  ;;  %v3058_v36 = vmul.f32 %v6505_v59, %v2927_v4  ;;  %v2929_v37 = vpop.f32.mrb[122].mxu0  ;;  %v3204_v40 = vsel %vm3140_vm4, %v3108_v56, %v3172_v25 }
 0x4bb   : > { %v3111_v41 = vadd.f32 %v6508_v3, %v3057_v58  ;;  %v3061_v9 = vmul.f32 %v6502_v28, %v2929_v37  ;;  %v2931_v44 = vpop.f32.mrb[123].mxu0  ;;  %v3232_v45 = vpack.c.bf16 %v3204_v40, %v3200_v8 }
 0x4bc   : > { %v3112_v13 = vadd.f32 %v6511_v26, %v3058_v36  ;;  %v3062_v16 = vmul.f32 %v6505_v59, %v2931_v44  ;;  %v6570_v36 = vpop.permute.xlu0 %5333 }
 0x4bd   : > { %v3175_v49 = vmul.f32 0.2, %v3111_v41  ;;  %v3115_v17 = vadd.f32 %v6508_v3, %v3061_v9  ;;  %3535 = vmatprep.mubr.bf16.mxu0 %v3232_v45  ;;  %vm3143_vm6 = vcmp.ge.f32.partialorder %v3111_v41, 0.0  ;;  %v3043_v9 = vsub.s32 3, %v6487_v57 }
 0x4be   : > { %v3176_v20 = vmul.f32 0.2, %v3112_v13  ;;  %v3116_v21 = vadd.f32 %v6511_v26, %v3062_v16  ;;  %3536 = vmatmul.mubr.bf16.vlgmr.msra.gmra.mrb[148].mxu0 %v3231_v5  ;;  %vm3144_vm7 = vcmp.ge.f32.partialorder %v3112_v13, 0.0  ;;  %v5326_v16 = vunpack.i.h.bf16 %v6555_v38 }
 0x4bf   : > { %vm3147_vm8 = vcmp.ge.f32.partialorder %v3115_v17, 0.0  ;;  %v3179_v1 = vmul.f32 0.2, %v3115_v17  ;;  %4982 = vmatpush3.bf16.msra.mxu0 %v5467_v12  ;;  %v3207_v50 = vsel %vm3143_vm6, %v3111_v41, %v3175_v49  ;;  %v5475_v41 = vld [vmem:[%s7071_s7 + $0xa0] sm:$0xff]  }
 0x4c0   : > { %vm3148_vm9 = vcmp.ge.f32.partialorder %v3116_v21, 0.0  ;;  %v3180_v61 = vmul.f32 0.2, %v3116_v21  ;;  %v2935_v18 = vpop.f32.mrb[124].mxu0  ;;  %4983 = vmatprep.subr.bf16.mxu0 %v5468_v48  ;;  %v3208_v33 = vsel %vm3144_vm7, %v3112_v13, %v3176_v20  ;;  %v5476_v13 = vld [vmem:[%s7071_s7 + $0xe8] sm:$0xff]  }
 0x4c1   : > { %v3065_v42 = vmul.f32 %v6502_v28, %v2935_v18  ;;  %v2937_v32 = vpop.f32.mrb[125].mxu0  ;;  %v3211_v24 = vsel %vm3147_vm8, %v3115_v17, %v3179_v1  ;;  %v5325_v17 = vunpack.i.l.bf16 %v6555_v38  ;;  %v6600_v18 = vrot.slane %v6499_v62, %v3039_v14 }
 0x4c2   : > { %v3066_v63 = vmul.f32 %v6505_v59, %v2937_v32  ;;  %v2939_v35 = vpop.f32.mrb[126].mxu0  ;;  %v3212_v30 = vsel %vm3148_vm9, %v3116_v21, %v3180_v61  ;;  %v3235_v31 = vpack.c.bf16 %v3211_v24, %v3207_v50  ;;  %v6590_v21 = vpop.permute.xlu1 %5338  ;;  %v6594_v61 = vrot.slane %v6493_v34, %v3043_v9 }
 0x4c3   : > { %v3119_v23 = vadd.f32 %v6508_v3, %v3065_v42  ;;  %v3069_v11 = vmul.f32 %v6502_v28, %v2939_v35  ;;  %4984 = vmatpush3.bf16.msra.mxu0 %v5469_v52  ;;  %v2941_v29 = vpop.f32.mrb[127].mxu0  ;;  %v3236_v39 = vpack.c.bf16 %v3212_v30, %v3208_v33  ;;  %v6606_v42 = vpop.permute.xlu0 %5343  ;;  %v6609_v50 = vrot.slane %v6499_v62, %v3043_v9 }
 0x4c4   : > { %v3120_v2 = vadd.f32 %v6511_v26, %v3066_v63  ;;  %v3070_v6 = vmul.f32 %v6505_v59, %v2941_v29  ;;  %4985 = vmatprep.subr.bf16.mxu0 %v5470_v0  ;;  %v5478_v0 = vld [vmem:[%s7071_s7 + $0xf0] sm:$0xff]   ;;  %v5330_v24 = vunpack.i.l.bf16 %v6565_v10  ;;  %v5336_v38 = vunpack.i.h.bf16 %v6570_v36 }
 0x4c5   : > { %v3183_v7 = vmul.f32 0.2, %v3119_v23  ;;  %v3123_v53 = vadd.f32 %v6508_v3, %v3069_v11  ;;  %3543 = vmatprep.mubr.bf16.mxu0 %v3236_v39  ;;  %vm3151_vm10 = vcmp.ge.f32.partialorder %v3119_v23, 0.0 }
 0x4c6   : > { %v3184_v55 = vmul.f32 0.2, %v3120_v2  ;;  %v3124_v43 = vadd.f32 %v6511_v26, %v3070_v6  ;;  %3544 = vmatmul.mubr.bf16.gmra.mrb[152].mxu0 %v3235_v31  ;;  %vm3152_vm11 = vcmp.ge.f32.partialorder %v3120_v2, 0.0 }
 0x4c7   : > { %vm3155_vm12 = vcmp.ge.f32.partialorder %v3123_v53, 0.0  ;;  %v3187_v47 = vmul.f32 0.2, %v3123_v53  ;;  %4986 = vmatpush3.bf16.msra.mxu0 %v5471_v22  ;;  %v3215_v54 = vsel %vm3151_vm10, %v3119_v23, %v3183_v7  ;;  %v6622_v7 = vpop.permute.xlu1 %5348 }
 0x4c8   : > { %vm3156_vm13 = vcmp.ge.f32.partialorder %v3124_v43, 0.0  ;;  %v3188_v46 = vmul.f32 0.2, %v3124_v43  ;;  %4987 = vmatprep.subr.bf16.mxu0 %v5472_v60  ;;  %v2945_v56 = vpop.f32.mrb[128].mxu0  ;;  %v3216_v58 = vsel %vm3152_vm11, %v3120_v2, %v3184_v55  ;;  %v5479_v60 = vld [vmem:[%s7071_s7 + $0xb0] sm:$0xff]  }
 0x4c9   : > { %v3219_v25 = vsel %vm3155_vm12, %v3123_v53, %v3187_v47  ;;  %v3073_v27 = vmul.f32 %v6502_v28, %v2945_v56  ;;  %v2947_v51 = vpop.f32.mrb[129].mxu0  ;;  %v5201_v47 = vpack.c.bf16 %v5326_v16, %v5325_v17  ;;  %v5341_v56 = vunpack.i.h.bf16 %v6590_v21 }
 0x4ca   : > { %v3220_v4 = vsel %vm3156_vm13, %v3124_v43, %v3188_v46  ;;  %v3239_v5 = vpack.c.bf16 %v3219_v25, %v3215_v54  ;;  %v3074_v37 = vmul.f32 %v6505_v59, %v2947_v51  ;;  %v2949_v8 = vpop.f32.mrb[130].mxu0  ;;  %v5480_v43 = vld [vmem:[%s7071_s7 + $0xf8] sm:$0xff]   ;;  %v5335_v46 = vunpack.i.l.bf16 %v6570_v36  ;;  %v6632_v54 = vpop.permute.xlu0 %5353 }
 0x4cb   : > { %4988 = vmatpush3.bf16.msra.mxu0 %v5473_v19  ;;  %v3240_v40 = vpack.c.bf16 %v3220_v4, %v3216_v58  ;;  %v3127_v44 = vadd.f32 %v6508_v3, %v3073_v27  ;;  %v3077_v45 = vmul.f32 %v6502_v28, %v2949_v8  ;;  %v2951_v12 = vpop.f32.mrb[131].mxu0  ;;  %v6588_v28 = vrot.slane %v6493_v34, %v3039_v14  ;;  %v5481_v58 = vld [vmem:[%s7071_s7 + $0xb8] sm:$0xff]  }
 0x4cc   : > { %4989 = vmatprep.subr.bf16.mxu0 %v5474_v15  ;;  %v3128_v48 = vadd.f32 %v6511_v26, %v3074_v37  ;;  %v3078_v49 = vmul.f32 %v6505_v59, %v2951_v12  ;;  %v5477_v59 = vld [vmem:[%s7071_s7 + $0xa8] sm:$0xff]   ;;  %v5340_v27 = vunpack.i.l.bf16 %v6590_v21  ;;  %v5346_v4 = vunpack.i.h.bf16 %v6606_v42 }
 0x4cd   : > { %3551 = vmatprep.mubr.bf16.mxu0 %v3240_v40  ;;  %v3191_v57 = vmul.f32 0.2, %v3127_v44  ;;  %v3131_v20 = vadd.f32 %v6508_v3, %v3077_v45  ;;  %vm3159_vm14 = vcmp.ge.f32.partialorder %v3127_v44, 0.0  ;;  %v5359_v45 = vpop.permute.xlu1 %5358 }
 0x4ce   : > { %3552 = vmatmul.mubr.bf16.gmra.mrb[156].mxu0 %v3239_v5  ;;  %v3192_v1 = vmul.f32 0.2, %v3128_v48  ;;  %v3132_v52 = vadd.f32 %v6511_v26, %v3078_v49  ;;  %vm3160_vm15 = vcmp.ge.f32.partialorder %v3128_v48, 0.0  ;;  %v5331_v26 = vunpack.i.h.bf16 %v6565_v10 }
 0x4cf   : > { %4990 = vmatpush3.bf16.msra.mxu0 %v5475_v41  ;;  %vm3163_vm0 = vcmp.ge.f32.partialorder %v3131_v20, 0.0  ;;  %v3195_v3 = vmul.f32 0.2, %v3131_v20  ;;  %v3223_v33 = vsel %vm3159_vm14, %v3127_v44, %v3191_v57  ;;  %v5345_v5 = vunpack.i.l.bf16 %v6606_v42 }
 0x4d0   : > { %4991 = vmatprep.subr.bf16.mxu0 %v5476_v13  ;;  %vm3164_vm1 = vcmp.ge.f32.partialorder %v3132_v52, 0.0  ;;  %v3196_v34 = vmul.f32 0.2, %v3132_v52  ;;  %v2988_v32 = vpop.f32.mrb[132].mxu0  ;;  %v3224_v11 = vsel %vm3160_vm15, %v3128_v48, %v3192_v1  ;;  %v5203_v19 = vpack.c.bf16 %v5331_v26, %v5330_v24 }
 0x4d1   : > { %v3051_v63 = vmul.f32 %v6588_v28, %v2988_v32  ;;  %v2990_v35 = vpop.f32.mrb[133].mxu0  ;;  %v3227_v30 = vsel %vm3163_vm0, %v3131_v20, %v3195_v3  ;;  %v5205_v44 = vpack.c.bf16 %v5336_v38, %v5335_v46  ;;  %v5207_v17 = vpack.c.bf16 %v5341_v56, %v5340_v27 }
 0x4d2   : > { %v3052_v31 = vmul.f32 %v6594_v61, %v2990_v35  ;;  %v2992_v23 = vpop.f32.mrb[134].mxu0  ;;  %v3228_v29 = vsel %vm3164_vm1, %v3132_v52, %v3196_v34  ;;  %v3243_v39 = vpack.c.bf16 %v3227_v30, %v3223_v33  ;;  %v5351_v52 = vunpack.i.h.bf16 %v6622_v7 }
 0x4d3   : > { %4992 = vmatpush3.bf16.msra.mxu0 %v5477_v59  ;;  %v3105_v22 = vadd.f32 %v6600_v18, %v3051_v63  ;;  %v3055_v62 = vmul.f32 %v6588_v28, %v2992_v23  ;;  %v2994_v2 = vpop.f32.mrb[135].mxu0  ;;  %v3244_v6 = vpack.c.bf16 %v3228_v29, %v3224_v11  ;;  %v5364_v59 = vpop.permute.xlu0 %5363  ;;  %v5209_v26 = vpack.c.bf16 %v5346_v4, %v5345_v5 }
 0x4d4   : > { %4993 = vmatprep.subr.bf16.mxu0 %v5478_v0  ;;  %v3106_v53 = vadd.f32 %v6609_v50, %v3052_v31  ;;  %v3056_v55 = vmul.f32 %v6594_v61, %v2994_v2  ;;  %v5350_v42 = vunpack.i.l.bf16 %v6622_v7  ;;  %v5356_v34 = vunpack.i.h.bf16 %v6632_v54  ;;  %v6655_v29 = vpop.permute.xlu1 %5368 }
 0x4d5   : > { %v3169_v15 = vmul.f32 0.2, %v3105_v22  ;;  %v3109_v10 = vadd.f32 %v6600_v18, %v3055_v62  ;;  %3559 = vmatprep.mubr.bf16.mxu0 %v3244_v6  ;;  %vm3137_vm2 = vcmp.ge.f32.partialorder %v3105_v22, 0.0  ;;  %v5355_v63 = vunpack.i.l.bf16 %v6632_v54 }
 0x4d6   : > { %v3170_v25 = vmul.f32 0.2, %v3106_v53  ;;  %v3110_v14 = vadd.f32 %v6609_v50, %v3056_v55  ;;  %3560 = vmatmul.mubr.bf16.gmra.mrb[160].mxu0 %v3243_v39  ;;  %vm3138_vm3 = vcmp.ge.f32.partialorder %v3106_v53, 0.0  ;;  %v5361_v30 = vunpack.i.h.bf16 %v5359_v45 }
 0x4d7   : > { %vm3141_vm5 = vcmp.ge.f32.partialorder %v3109_v10, 0.0  ;;  %v3173_v51 = vmul.f32 0.2, %v3109_v10  ;;  %4994 = vmatpush3.bf16.msra.mxu0 %v5479_v60  ;;  %v3201_v8 = vsel %vm3137_vm2, %v3105_v22, %v3169_v15  ;;  %v5360_v23 = vunpack.i.l.bf16 %v5359_v45  ;;  %v6659_v7 = vpop.permute.xlu0 %5373 }
 0x4d8   : > { %vm3142_vm4 = vcmp.ge.f32.partialorder %v3110_v14, 0.0  ;;  %v3174_v36 = vmul.f32 0.2, %v3110_v14  ;;  %v2998_v37 = vpop.f32.mrb[136].mxu0  ;;  %4995 = vmatprep.subr.bf16.mxu0 %v5480_v43  ;;  %v3202_v48 = vsel %vm3138_vm3, %v3106_v53, %v3170_v25  ;;  %v5366_v11 = vunpack.i.h.bf16 %v5364_v59 }
 0x4d9   : > { %v3205_v40 = vsel %vm3141_vm5, %v3109_v10, %v3173_v51  ;;  %v3059_v41 = vmul.f32 %v6588_v28, %v2998_v37  ;;  %v3000_v9 = vpop.f32.mrb[137].mxu0  ;;  %v5365_v62 = vunpack.i.l.bf16 %v5364_v59  ;;  %v5211_v54 = vpack.c.bf16 %v5351_v52, %v5350_v42  ;;  %v5379_v37 = vpop.permute.xlu1 %5378 }
 0x4da   : > { %v3233_v12 = vpack.c.bf16 %v3205_v40, %v3201_v8  ;;  %v3060_v13 = vmul.f32 %v6594_v61, %v3000_v9  ;;  %v3002_v16 = vpop.f32.mrb[138].mxu0  ;;  %v3206_v49 = vsel %vm3142_vm4, %v3110_v14, %v3174_v36  ;;  %v5213_v27 = vpack.c.bf16 %v5356_v34, %v5355_v63 }
 0x4db   : > { %v3113_v57 = vadd.f32 %v6600_v18, %v3059_v41  ;;  %v3063_v20 = vmul.f32 %v6588_v28, %v3002_v16  ;;  %4996 = vmatpush3.bf16.msra.mxu0 %v5481_v58  ;;  %v3004_v21 = vpop.f32.mrb[139].mxu0  ;;  %v3234_v1 = vpack.c.bf16 %v3206_v49, %v3202_v48  ;;  %v5215_v51 = vpack.c.bf16 %v5361_v30, %v5360_v23 }
 0x4dc   : > { %v3114_v3 = vadd.f32 %v6609_v50, %v3060_v13  ;;  %v3064_v0 = vmul.f32 %v6594_v61, %v3004_v21  ;;  %5202 = vmatprep.subr.bf16.mxu0 %v5201_v47  ;;  %v5217_v5 = vpack.c.bf16 %v5366_v11, %v5365_v62  ;;  %v5371_v36 = vunpack.i.h.bf16 %v6655_v29 }
 0x4dd   : > { %v3177_v32 = vmul.f32 0.2, %v3113_v57  ;;  %v3117_v24 = vadd.f32 %v6600_v18, %v3063_v20  ;;  %3600 = vmatprep.mubr.bf16.mxu0 %v3234_v1  ;;  %vm3145_vm6 = vcmp.ge.f32.partialorder %v3113_v57, 0.0  ;;  %v5370_v41 = vunpack.i.l.bf16 %v6655_v29 }
 0x4de   : > { %v3178_v35 = vmul.f32 0.2, %v3114_v3  ;;  %v3118_v33 = vadd.f32 %v6609_v50, %v3064_v0  ;;  %3601 = vmatmul.mubr.bf16.vlgmr.msra.gmra.mrb[164].mxu0 %v3233_v12  ;;  %vm3146_vm7 = vcmp.ge.f32.partialorder %v3114_v3, 0.0  ;;  %v5375_v45 = vunpack.i.l.bf16 %v6659_v7  ;;  %v5384_v12 = vpop.permute.xlu0 %5383 }
 0x4df   : > { %vm3149_vm8 = vcmp.ge.f32.partialorder %v3117_v24, 0.0  ;;  %v3181_v31 = vmul.f32 0.2, %v3117_v24  ;;  %5204 = vmatpush3.bf16.msra.mxu0 %v5203_v19  ;;  %v3209_v60 = vsel %vm3145_vm6, %v3113_v57, %v3177_v32  ;;  %v5381_v48 = vunpack.i.h.bf16 %v5379_v37 }
 0x4e0   : > { %vm3150_vm9 = vcmp.ge.f32.partialorder %v3118_v33, 0.0  ;;  %v3182_v39 = vmul.f32 0.2, %v3118_v33  ;;  %5206 = vmatprep.subr.bf16.mxu0 %v5205_v44  ;;  %v3008_v22 = vpop.f32.mrb[140].mxu0  ;;  %v3210_v43 = vsel %vm3146_vm7, %v3114_v3, %v3178_v35  ;;  %v5376_v44 = vunpack.i.h.bf16 %v6659_v7  ;;  %v5389_v35 = vpop.permute.xlu1 %5388 }
 0x4e1   : > { %v3067_v2 = vmul.f32 %v6588_v28, %v3008_v22  ;;  %v3010_v6 = vpop.f32.mrb[141].mxu0  ;;  %v3213_v38 = vsel %vm3149_vm8, %v3117_v24, %v3181_v31  ;;  %v5380_v0 = vunpack.i.l.bf16 %v5379_v37  ;;  %v5386_v24 = vunpack.i.h.bf16 %v5384_v12  ;;  %v3976_v37 = vld [vmem:[%s7066_s2 + $0x30] sm:$0xff] }
 0x4e2   : > { %v3068_v53 = vmul.f32 %v6594_v61, %v3010_v6  ;;  %v3012_v55 = vpop.f32.mrb[142].mxu0  ;;  %v3214_v47 = vsel %vm3150_vm9, %v3118_v33, %v3182_v39  ;;  %v3237_v19 = vpack.c.bf16 %v3213_v38, %v3209_v60  ;;  %v5385_v63 = vunpack.i.l.bf16 %v5384_v12  ;;  %v5394_v29 = vpop.permute.xlu0 %5393  ;;  %v3985_v12 = vld [vmem:[%s7066_s2 + $0x78] sm:$0xff] }
 0x4e3   : > { %v3121_v46 = vadd.f32 %v6600_v18, %v3067_v2  ;;  %v3071_v15 = vmul.f32 %v6588_v28, %v3012_v55  ;;  %5208 = vmatpush3.bf16.msra.mxu0 %v5207_v17  ;;  %v3014_v10 = vpop.f32.mrb[143].mxu0  ;;  %v3238_v56 = vpack.c.bf16 %v3214_v47, %v3210_v43  ;;  %v5219_v31 = vpack.c.bf16 %v5371_v36, %v5370_v41  ;;  %v3977_v36 = vld [vmem:[%s7066_s2 + $0x38] sm:$0xff] }
 0x4e4   : > { %v3122_v25 = vadd.f32 %v6609_v50, %v3068_v53  ;;  %v3072_v14 = vmul.f32 %v6594_v61, %v3014_v10  ;;  %5210 = vmatprep.subr.bf16.mxu0 %v5209_v26  ;;  %v5221_v22 = vpack.c.bf16 %v5376_v44, %v5375_v45  ;;  %v5223_v62 = vpack.c.bf16 %v5381_v48, %v5380_v0  ;;  %v5399_v43 = vpop.permute.xlu1 %5398  ;;  %v3981_v41 = vld [vmem:[%s7066_s2 + $0x58] sm:$0xff]  ;;  %v3983_v44 = vld [vmem:[%s7066_s2 + $0x68] sm:$0xff]  ;;  %v3982_v45 = vld [vmem:[%s7066_s2 + $0x60] sm:$0xff] }
 0x4e5   : > { %v3185_v58 = vmul.f32 0.2, %v3121_v46  ;;  %v3125_v4 = vadd.f32 %v6600_v18, %v3071_v15  ;;  %3608 = vmatprep.mubr.bf16.mxu0 %v3238_v56  ;;  %vm3153_vm10 = vcmp.ge.f32.partialorder %v3121_v46, 0.0  ;;  %v5391_v6 = vunpack.i.h.bf16 %v5389_v35  ;;  %v3971_v15 = vld [vmem:[%s7066_s2 + $0x8] sm:$0xff] }
 0x4e6   : > { %v3186_v8 = vmul.f32 0.2, %v3122_v25  ;;  %v3126_v40 = vadd.f32 %v6609_v50, %v3072_v14  ;;  %3609 = vmatmul.mubr.bf16.gmra.mrb[168].mxu0 %v3237_v19  ;;  %vm3154_vm11 = vcmp.ge.f32.partialorder %v3122_v25, 0.0  ;;  %v5225_v60 = vpack.c.bf16 %v5386_v24, %v5385_v63  ;;  %v4244_v48 = vld [vmem:[%s7072_s8 + $0x8] sm:$0xff] }
 0x4e7   : > { %vm3157_vm12 = vcmp.ge.f32.partialorder %v3125_v4, 0.0  ;;  %v3189_v9 = vmul.f32 0.2, %v3125_v4  ;;  %5212 = vmatpush3.bf16.msra.mxu0 %v5211_v54  ;;  %v3217_v57 = vsel %vm3153_vm10, %v3121_v46, %v3185_v58  ;;  %v5390_v38 = vunpack.i.l.bf16 %v5389_v35  ;;  %v3972_v58 = vld [vmem:[%s7066_s2 + $0x10] sm:$0xff] }
 0x4e8   : > { %vm3158_vm13 = vcmp.ge.f32.partialorder %v3126_v40, 0.0  ;;  %v3190_v13 = vmul.f32 0.2, %v3126_v40  ;;  %5214 = vmatprep.subr.bf16.mxu0 %v5213_v27  ;;  %v3018_v16 = vpop.f32.mrb[144].mxu0  ;;  %v3218_v52 = vsel %vm3154_vm11, %v3122_v25, %v3186_v8  ;;  %v5395_v55 = vunpack.i.l.bf16 %v5394_v29  ;;  %v3970_v27 = vld [vmem:[%s7066_s2] sm:$0xff]  ;;  %v3979_v8 = vld [vmem:[%s7066_s2 + $0x48] sm:$0xff] }
 0x4e9   : > { %v3075_v49 = vmul.f32 %v6588_v28, %v3018_v16  ;;  %v3020_v17 = vpop.f32.mrb[145].mxu0  ;;  %v3221_v20 = vsel %vm3157_vm12, %v3125_v4, %v3189_v9  ;;  %v5227_v10 = vpack.c.bf16 %v5391_v6, %v5390_v38  ;;  %v5401_v56 = vunpack.i.h.bf16 %v5399_v43  ;;  %v3975_v4 = vld [vmem:[%s7066_s2 + $0x28] sm:$0xff]  ;;  %v3980_v9 = vld [vmem:[%s7066_s2 + $0x50] sm:$0xff]  ;;  %v4243_v16 = vld [vmem:[%s7072_s8] sm:$0xff] }
 0x4ea   : > { %v3076_v21 = vmul.f32 %v6594_v61, %v3020_v17  ;;  %v3022_v1 = vpop.f32.mrb[146].mxu0  ;;  %v3222_v59 = vsel %vm3158_vm13, %v3126_v40, %v3190_v13  ;;  %v3241_v3 = vpack.c.bf16 %v3221_v20, %v3217_v57  ;;  %v5400_v54 = vunpack.i.l.bf16 %v5399_v43  ;;  %v3978_v40 = vld [vmem:[%s7066_s2 + $0x40] sm:$0xff]  ;;  %v3984_v13 = vld [vmem:[%s7066_s2 + $0x70] sm:$0xff] }
 0x4eb   : > { %v3129_v26 = vadd.f32 %v6600_v18, %v3075_v49  ;;  %v3079_v42 = vmul.f32 %v6588_v28, %v3022_v1  ;;  %5216 = vmatpush3.bf16.msra.mxu0 %v5215_v51  ;;  %v3024_v34 = vpop.f32.mrb[147].mxu0  ;;  %v3242_v32 = vpack.c.bf16 %v3222_v59, %v3218_v52  ;;  %v3973_v51 = vld [vmem:[%s7066_s2 + $0x18] sm:$0xff]  ;;  %v5233_v49 = vpack.c.bf16 %v4244_v48, %v4243_v16 }
 0x4ec   : > { %v3130_v33 = vadd.f32 %v6609_v50, %v3076_v21  ;;  %v3080_v30 = vmul.f32 %v6594_v61, %v3024_v34  ;;  %5218 = vmatprep.subr.bf16.mxu0 %v5217_v5  ;;  %v5231_v14 = vpack.c.bf16 %v5401_v56, %v5400_v54  ;;  %v3974_v5 = vld [vmem:[%s7066_s2 + $0x20] sm:$0xff]  ;;  %vm4245_vm3 = vcmask 130048  }
 0x4ed   : > { %v3193_v23 = vmul.f32 0.2, %v3129_v26  ;;  %v3133_v11 = vadd.f32 %v6600_v18, %v3079_v42  ;;  %3616 = vmatprep.mubr.bf16.mxu0 %v3242_v32  ;;  %vm3161_vm14 = vcmp.ge.f32.partialorder %v3129_v26, 0.0  ;;  %v5396_v18 = vunpack.i.h.bf16 %v5394_v29 }
 0x4ee   : > { %v3194_v39 = vmul.f32 0.2, %v3130_v33  ;;  %v3134_v28 = vadd.f32 %v6609_v50, %v3080_v30  ;;  %3617 = vmatmul.mubr.bf16.gmra.mrb[172].mxu0 %v3241_v3  ;;  %vm3162_vm15 = vcmp.ge.f32.partialorder %v3130_v33, 0.0  ;;  %vm4712_vm11 = vcmask 4096  }
 0x4ef   : > { %vm3165_vm0 = vcmp.ge.f32.partialorder %v3133_v11, 0.0  ;;  %v3197_v2 = vmul.f32 0.2, %v3133_v11  ;;  %5220 = vmatpush3.bf16.msra.mxu0 %v5219_v31  ;;  %v3225_v7 = vsel %vm3161_vm14, %v3129_v26, %v3193_v23  ;;  %v5229_v25 = vpack.c.bf16 %v5396_v18, %v5395_v55 }
 0x4f0   : > { %vm3166_vm1 = vcmp.ge.f32.partialorder %v3134_v28, 0.0  ;;  %v3198_v61 = vmul.f32 0.2, %v3134_v28  ;;  %5222 = vmatprep.subr.bf16.mxu0 %v5221_v22  ;;  %v3226_v50 = vsel %vm3162_vm15, %v3130_v33, %v3194_v39 }
 0x4f1   : > { %v3229_v53 = vsel %vm3165_vm0, %v3133_v11, %v3197_v2 }
 0x4f2   : > { %v3230_v47 = vsel %vm3166_vm1, %v3134_v28, %v3198_v61  ;;  %v3245_v19 = vpack.c.bf16 %v3229_v53, %v3225_v7 }
 0x4f3   : > { %5224 = vmatpush3.bf16.msra.mxu0 %v5223_v62  ;;  %v3246_v46 = vpack.c.bf16 %v3230_v47, %v3226_v50 }
 0x4f4   : > { %5226 = vmatprep.subr.bf16.mxu0 %v5225_v60 }
 0x4f5   : > { %3624 = vmatprep.mubr.bf16.mxu0 %v3246_v46 }
 0x4f6   : > { %3625 = vmatmul.mubr.bf16.gmra.mrb[176].mxu0 %v3245_v19 }
 0x4f7   : > { %5228 = vmatpush3.bf16.msra.mxu0 %v5227_v10  ;;  %4178 = vmatprep.mubr.f32.mxu0 %v3971_v15 }
 0x4f8   : > { %5230 = vmatprep.subr.bf16.mxu0 %v5229_v25 }
 0x4fb   : > { %5232 = vmatpush3.bf16.msra.mxu0 %v5231_v14 }
 0x4fc   : > { %5234 = vmatprep.subr.bf16.mxu0 %v5233_v49 }
 0x4fe   : > { %4179 = vmatmul.mubr.f32.vlgmr.msra.gmra.mrb[114].mxu0 %v3970_v27 }
 0x4ff   : > { %4183 = vmatprep.mubr.f32.mxu0 %v3973_v51  ;;  %5236 = vmatpush3.bf16.msra.mxu0 %v5233_v49 }
 0x502   : > { %4184 = vmatmul.mubr.f32.gmra.mrb[180].mxu0 %v3972_v58 }
 0x503   : > { %4188 = vmatprep.mubr.f32.mxu0 %v3975_v4 }
 0x506   : > { %4189 = vmatmul.mubr.f32.gmra.mrb[182].mxu0 %v3974_v5 }
 0x507   : > { %4193 = vmatprep.mubr.f32.mxu0 %v3977_v36 }
 0x50a   : > { %4194 = vmatmul.mubr.f32.gmra.mrb[184].mxu0 %v3976_v37 }
 0x50b   : > { %4198 = vmatprep.mubr.f32.mxu0 %v3979_v8 }
 0x50e   : > { %4199 = vmatmul.mubr.f32.gmra.mrb[186].mxu0 %v3978_v40 }
 0x50f   : > { %4203 = vmatprep.mubr.f32.mxu0 %v3981_v41 }
 0x512   : > { %4204 = vmatmul.mubr.f32.gmra.mrb[188].mxu0 %v3980_v9 }
 0x513   : > { %4208 = vmatprep.mubr.f32.mxu0 %v3983_v44 }
 0x516   : > { %4209 = vmatmul.mubr.f32.gmra.mrb[190].mxu0 %v3982_v45 }
 0x517   : > { %4213 = vmatprep.mubr.f32.mxu0 %v3985_v12 }
 0x51a   : > { %4214 = vmatmul.mubr.f32.gmra.mrb[192].mxu0 %v3984_v13 }
 0x591   : > { %v4957_v17 = vpop.f32.mrb[148].mxu0 }
 0x592   : > { %v4958_v57 = vpop.f32.mrb[149].mxu0 }
 0x593   : > { %v4959_v20 = vadd.f32 %v4958_v57, %v4957_v17  ;;  %v4960_v21 = vpop.f32.mrb[150].mxu0 }
 0x594   : > { %v4961_v1 = vpop.f32.mrb[151].mxu0 }
 0x595   : > { %v4962_v52 = vadd.f32 %v4961_v1, %v4960_v21 }
 0x599   : > { %v4963_v59 = vpop.f32.mrb[152].mxu0 }
 0x59a   : > { %v4964_v3 = vpop.f32.mrb[153].mxu0 }
 0x59b   : > { %v4965_v0 = vadd.f32 %v4964_v3, %v4963_v59  ;;  %v4966_v26 = vpop.f32.mrb[154].mxu0 }
 0x59c   : > { %v4967_v42 = vpop.f32.mrb[155].mxu0 }
 0x59d   : > { %v4968_v34 = vadd.f32 %v4967_v42, %v4966_v26 }
 0x5a1   : > { %v4969_v32 = vpop.f32.mrb[156].mxu0 }
 0x5a2   : > { %v4970_v24 = vpop.f32.mrb[157].mxu0 }
 0x5a3   : > { %v4971_v63 = vadd.f32 %v4970_v24, %v4969_v32  ;;  %v4972_v35 = vpop.f32.mrb[158].mxu0 }
 0x5a4   : > { %v4973_v33 = vpop.f32.mrb[159].mxu0 }
 0x5a5   : > { %v4974_v30 = vadd.f32 %v4973_v33, %v4972_v35 }
 0x5a9   : > { %v4975_v31 = vpop.f32.mrb[160].mxu0 }
 0x5aa   : > { %v4976_v23 = vpop.f32.mrb[161].mxu0 }
 0x5ab   : > { %v4977_v11 = vadd.f32 %v4976_v23, %v4975_v31  ;;  %v4978_v29 = vpop.f32.mrb[162].mxu0 }
 0x5ac   : > { %v4979_v39 = vpop.f32.mrb[163].mxu0 }
 0x5ad   : > { %v4980_v28 = vadd.f32 %v4979_v39, %v4978_v29 }
 0x5b1   : > { %v4997_v22 = vpop.f32.mrb[164].mxu0 }
 0x5b2   : > { %v4998_v62 = vpop.f32.mrb[165].mxu0 }
 0x5b3   : > { %v4999_v2 = vadd.f32 %v4998_v62, %v4997_v22  ;;  %v5000_v6 = vpop.f32.mrb[166].mxu0 }
 0x5b4   : > { %v5001_v61 = vpop.f32.mrb[167].mxu0 }
 0x5b5   : > { %v6738_v60 = vadd.f32 %v4999_v2, %v4959_v20  ;;  %v5002_v38 = vadd.f32 %v5001_v61, %v5000_v6 }
 0x5b7   : > { %v6740_v18 = vadd.f32 %v5002_v38, %v4962_v52  ;;  %v3668_v7 = vrot.slane %v6738_v60, 2  ;;  %v3643_v53 = vrot.slane %v6738_v60, 1  ;;  %v3693_v19 = vrot.slane %v6738_v60, 3 }
 0x5b9   : > { %v5003_v55 = vpop.f32.mrb[168].mxu0  ;;  %3673 = vrot.lane.b32.xlu1 %v3668_v7, %s5542_s14  ;;  %3648 = vrot.lane.b32.xlu0 %v3643_v53, %s5543_s15  ;;  %v3644_v54 = vrot.slane %v6740_v18, 1  ;;  %v3669_v25 = vrot.slane %v6740_v18, 2  ;;  %v3694_v4 = vrot.slane %v6740_v18, 3 }
 0x5ba   : > { %v5004_v43 = vpop.f32.mrb[169].mxu0 }
 0x5bb   : > { %v5005_v50 = vadd.f32 %v5004_v43, %v5003_v55  ;;  %v5006_v47 = vpop.f32.mrb[170].mxu0 }
 0x5bc   : > { %v5007_v46 = vpop.f32.mrb[171].mxu0 }
 0x5bd   : > { %v6747_v15 = vadd.f32 %v5005_v50, %v4965_v0  ;;  %v5008_v10 = vadd.f32 %v5007_v46, %v5006_v47  ;;  %3719 = vrot.lane.b32.xlu1 %v6740_v18, %s5544_s16  ;;  %3698 = vrot.lane.b32.xlu0 %v3693_v19, %s5545_s17 }
 0x5bf   : > { %v6752_v56 = vadd.f32 %v5008_v10, %v4968_v34  ;;  %v3670_v48 = vrot.slane %v6747_v15, 2  ;;  %v3645_v49 = vrot.slane %v6747_v15, 1  ;;  %v3695_v21 = vrot.slane %v6747_v15, 3 }
 0x5c1   : > { %v5009_v14 = vpop.f32.mrb[172].mxu0  ;;  %3650 = vrot.lane.b32.xlu1 %v3644_v54, %s5543_s15  ;;  %3675 = vrot.lane.b32.xlu0 %v3669_v25, %s5542_s14  ;;  %v3646_v6 = vrot.slane %v6752_v56, 1  ;;  %v3671_v61 = vrot.slane %v6752_v56, 2  ;;  %v3696_v50 = vrot.slane %v6752_v56, 3 }
 0x5c2   : > { %v5010_v27 = vpop.f32.mrb[173].mxu0 }
 0x5c3   : > { %v5011_v51 = vadd.f32 %v5010_v27, %v5009_v14  ;;  %v5012_v58 = vpop.f32.mrb[174].mxu0 }
 0x5c4   : > { %v5013_v5 = vpop.f32.mrb[175].mxu0 }
 0x5c5   : > { %v6759_v36 = vadd.f32 %v5011_v51, %v4971_v63  ;;  %v5014_v37 = vadd.f32 %v5013_v5, %v5012_v58  ;;  %3700 = vrot.lane.b32.xlu1 %v3694_v4, %s5545_s17  ;;  %3740 = vrot.lane.b32.xlu0 %v3644_v54, %s5546_s18 }
 0x5c7   : > { %v6763_v8 = vadd.f32 %v5014_v37, %v4974_v30  ;;  %v3672_v58 = vrot.slane %v6759_v36, 2  ;;  %v3697_v5 = vrot.slane %v6759_v36, 3 }
 0x5c9   : > { %3761 = vrot.lane.b32.xlu1 %v3669_v25, %s5547_s19  ;;  %3782 = vrot.lane.b32.xlu0 %v3694_v4, %s5548_s20  ;;  %v5015_v40 = vpop.f32.mrb[176].mxu0  ;;  %v3647_v4 = vrot.slane %v6759_v36, 1  ;;  %v3760_v37 = vrot.slane %v6763_v8, 2 }
 0x5ca   : > { %v5016_v41 = vpop.f32.mrb[177].mxu0 }
 0x5cb   : > { %v5017_v9 = vadd.f32 %v5016_v41, %v5015_v40  ;;  %v5018_v44 = vpop.f32.mrb[178].mxu0  ;;  %v3739_v40 = vrot.slane %v6763_v8, 1  ;;  %v3781_v41 = vrot.slane %v6763_v8, 3 }
 0x5cc   : > { %v5019_v45 = vpop.f32.mrb[179].mxu0 }
 0x5cd   : > { %v6767_v12 = vadd.f32 %v5017_v9, %v4977_v11  ;;  %v5020_v13 = vadd.f32 %v5019_v45, %v5018_v44  ;;  %3803 = vrot.lane.b32.xlu1 %v6747_v15, %s5540_s25  ;;  %3721 = vrot.lane.b32.xlu0 %v6747_v15, %s5544_s16 }
 0x5cf   : > { %v6773_v16 = vadd.f32 %v5020_v13, %v4980_v28 }
 0x5d1   : > { %3677 = vrot.lane.b32.xlu1 %v3670_v48, %s5542_s14  ;;  %3652 = vrot.lane.b32.xlu0 %v3645_v49, %s5543_s15  ;;  %v5053_v17 = vpop.f32.mrb[114].mxu0 }
 0x5d2   : > { %v5054_v57 = vpop.f32.mrb[115].mxu0 }
 0x5d3   : > { %v5055_v20 = vadd.f32 %v5054_v57, %v5053_v17  ;;  %v3844_v57 = vrot.slane %v6767_v12, 2 }
 0x5d5   : > { %vm4219_vm2 = vcmp.ge.f32.partialorder %v5055_v20, 0.0  ;;  %v4227_v1 = vmul.f32 0.2, %v5055_v20  ;;  %3723 = vrot.lane.b32.xlu1 %v6752_v56, %s5544_s16  ;;  %3702 = vrot.lane.b32.xlu0 %v3695_v21, %s5545_s17  ;;  %v5056_v52 = vpop.f32.mrb[180].mxu0 }
 0x5d6   : > { %v5057_v59 = vpop.f32.mrb[181].mxu0 }
 0x5d7   : > { %v5058_v3 = vadd.f32 %v5057_v59, %v5056_v52  ;;  %v4235_v0 = vsel %vm4219_vm2, %v5055_v20, %v4227_v1  ;;  %v3823_v1 = vrot.slane %v6767_v12, 1 }
 0x5d8   : > { %5141 = vmatprep.mubr.msk.f32.mxu0 %vm4245_vm3, %v4235_v0 }
 0x5d9   : > { %vm4220_vm5 = vcmp.ge.f32.partialorder %v5058_v3, 0.0  ;;  %v4228_v26 = vmul.f32 0.2, %v5058_v3  ;;  %3742 = vrot.lane.b32.xlu1 %v3645_v49, %s5546_s18  ;;  %3763 = vrot.lane.b32.xlu0 %v3670_v48, %s5547_s19  ;;  %v5059_v42 = vpop.f32.mrb[182].mxu0 }
 0x5da   : > { %v5060_v34 = vpop.f32.mrb[183].mxu0 }
 0x5db   : > { %v4236_v32 = vsel %vm4220_vm5, %v5058_v3, %v4228_v26  ;;  %v5061_v24 = vadd.f32 %v5060_v34, %v5059_v42  ;;  %v3865_v3 = vrot.slane %v6767_v12, 3 }
 0x5dc   : > { %5142 = vmatmul.mubr.msk.f32.vlgmr.msra.gmra.mrb[194].mxu0 %vm4245_vm3, %v4236_v32 }
 0x5dd   : > { %3784 = vrot.lane.b32.xlu1 %v3695_v21, %s5548_s20  ;;  %3805 = vrot.lane.b32.xlu0 %v6752_v56, %s5540_s25  ;;  %vm4221_vm4 = vcmp.ge.f32.partialorder %v5061_v24, 0.0  ;;  %v4229_v63 = vmul.f32 0.2, %v5061_v24  ;;  %v5062_v35 = vpop.f32.mrb[184].mxu0 }
 0x5de   : > { %v5063_v33 = vpop.f32.mrb[185].mxu0 }
 0x5df   : > { %v5064_v30 = vadd.f32 %v5063_v33, %v5062_v35  ;;  %v4237_v31 = vsel %vm4221_vm4, %v5061_v24, %v4229_v63  ;;  %v3928_v24 = vrot.slane %v6773_v16, 2 }
 0x5e0   : > { %5144 = vmatprep.mubr.msk.f32.mxu0 %vm4245_vm3, %v4237_v31 }
 0x5e1   : > { %3845 = vrot.lane.b32.xlu1 %v3670_v48, %s5549_s21  ;;  %3824 = vrot.lane.b32.xlu0 %v3645_v49, %s5550_s23  ;;  %vm4222_vm6 = vcmp.ge.f32.partialorder %v5064_v30, 0.0  ;;  %v4230_v23 = vmul.f32 0.2, %v5064_v30  ;;  %v5065_v11 = vpop.f32.mrb[186].mxu0 }
 0x5e2   : > { %v5066_v29 = vpop.f32.mrb[187].mxu0 }
 0x5e3   : > { %v4238_v39 = vsel %vm4222_vm6, %v5064_v30, %v4230_v23  ;;  %v5067_v28 = vadd.f32 %v5066_v29, %v5065_v11  ;;  %v3949_v30 = vrot.slane %v6773_v16, 3 }
 0x5e4   : > { %5145 = vmatmul.mubr.msk.f32.gmra.mrb[196].mxu0 %vm4245_vm3, %v4238_v39 }
 0x5e5   : > { %3887 = vrot.lane.b32.xlu1 %v6752_v56, %s5551_s24  ;;  %3866 = vrot.lane.b32.xlu0 %v3695_v21, %s5552_s22  ;;  %vm4223_vm7 = vcmp.ge.f32.partialorder %v5067_v28, 0.0  ;;  %v4231_v22 = vmul.f32 0.2, %v5067_v28  ;;  %v5068_v62 = vpop.f32.mrb[188].mxu0 }
 0x5e6   : > { %v5069_v2 = vpop.f32.mrb[189].mxu0 }
 0x5e7   : > { %v5070_v38 = vadd.f32 %v5069_v2, %v5068_v62  ;;  %v4239_v7 = vsel %vm4223_vm7, %v5067_v28, %v4231_v22 }
 0x5e8   : > { %5147 = vmatprep.mubr.msk.f32.mxu0 %vm4245_vm3, %v4239_v7 }
 0x5e9   : > { %3654 = vrot.lane.b32.xlu1 %v3646_v6, %s5543_s15  ;;  %3679 = vrot.lane.b32.xlu0 %v3671_v61, %s5542_s14  ;;  %vm4224_vm8 = vcmp.ge.f32.partialorder %v5070_v38, 0.0  ;;  %v4232_v53 = vmul.f32 0.2, %v5070_v38  ;;  %v5071_v55 = vpop.f32.mrb[190].mxu0 }
 0x5ea   : > { %v5072_v43 = vpop.f32.mrb[191].mxu0 }
 0x5eb   : > { %v4240_v47 = vsel %vm4224_vm8, %v5070_v38, %v4232_v53  ;;  %v5073_v19 = vadd.f32 %v5072_v43, %v5071_v55 }
 0x5ec   : > { %5148 = vmatmul.mubr.msk.f32.gmra.mrb[198].mxu0 %vm4245_vm3, %v4240_v47 }
 0x5ed   : > { %3704 = vrot.lane.b32.xlu1 %v3696_v50, %s5545_s17  ;;  %3744 = vrot.lane.b32.xlu0 %v3646_v6, %s5546_s18  ;;  %vm4225_vm9 = vcmp.ge.f32.partialorder %v5073_v19, 0.0  ;;  %v4233_v46 = vmul.f32 0.2, %v5073_v19  ;;  %v5074_v10 = vpop.f32.mrb[192].mxu0 }
 0x5ee   : > { %v5075_v54 = vpop.f32.mrb[193].mxu0 }
 0x5ef   : > { %v5076_v25 = vadd.f32 %v5075_v54, %v5074_v10  ;;  %v4241_v14 = vsel %vm4225_vm9, %v5073_v19, %v4233_v46 }
 0x5f0   : > { %5150 = vmatprep.mubr.msk.f32.mxu0 %vm4245_vm3, %v4241_v14 }
 0x5f1   : > { %3765 = vrot.lane.b32.xlu1 %v3671_v61, %s5547_s19  ;;  %3786 = vrot.lane.b32.xlu0 %v3696_v50, %s5548_s20  ;;  %vm4226_vm10 = vcmp.ge.f32.partialorder %v5076_v25, 0.0  ;;  %v4234_v27 = vmul.f32 0.2, %v5076_v25 }
 0x5f3   : > { %v4242_v51 = vsel %vm4226_vm10, %v5076_v25, %v4234_v27 }
 0x5f4   : > { %5151 = vmatmul.mubr.msk.f32.gmra.mrb[200].mxu0 %vm4245_vm3, %v4242_v51 }
 0x5f5   : > { %3826 = vrot.lane.b32.xlu1 %v3646_v6, %s5550_s23  ;;  %3847 = vrot.lane.b32.xlu0 %v3671_v61, %s5549_s21 }
 0x5f9   : > { %3868 = vrot.lane.b32.xlu1 %v3696_v50, %s5552_s22  ;;  %3908 = vrot.lane.b32.xlu0 %v3646_v6, %s5553_s26 }
 0x5fd   : > { %3929 = vrot.lane.b32.xlu1 %v3671_v61, %s5554_s27  ;;  %3950 = vrot.lane.b32.xlu0 %v3696_v50, %s5555_s28 }
 0x601   : > { %3807 = vrot.lane.b32.xlu1 %v6759_v36, %s5540_s25  ;;  %3725 = vrot.lane.b32.xlu0 %v6759_v36, %s5544_s16 }
 0x605   : > { %3681 = vrot.lane.b32.xlu1 %v3672_v58, %s5542_s14  ;;  %3889 = vrot.lane.b32.xlu0 %v6759_v36, %s5551_s24 }
 0x609   : > { %3727 = vrot.lane.b32.xlu1 %v6763_v8, %s5544_s16  ;;  %3656 = vrot.lane.b32.xlu0 %v3647_v4, %s5543_s15 }
 0x60d   : > { %3746 = vrot.lane.b32.xlu1 %v3647_v4, %s5546_s18  ;;  %3706 = vrot.lane.b32.xlu0 %v3697_v5, %s5545_s17 }
 0x611   : > { %3788 = vrot.lane.b32.xlu1 %v3697_v5, %s5548_s20  ;;  %3767 = vrot.lane.b32.xlu0 %v3672_v58, %s5547_s19 }
 0x615   : > { %3849 = vrot.lane.b32.xlu1 %v3672_v58, %s5549_s21  ;;  %3809 = vrot.lane.b32.xlu0 %v6763_v8, %s5540_s25 }
 0x619   : > { %3891 = vrot.lane.b32.xlu1 %v6763_v8, %s5551_s24  ;;  %3828 = vrot.lane.b32.xlu0 %v3647_v4, %s5550_s23 }
 0x61d   : > { %3910 = vrot.lane.b32.xlu1 %v3647_v4, %s5553_s26  ;;  %3870 = vrot.lane.b32.xlu0 %v3697_v5, %s5552_s22 }
 0x621   : > { %3952 = vrot.lane.b32.xlu1 %v3697_v5, %s5555_s28  ;;  %3931 = vrot.lane.b32.xlu0 %v3672_v58, %s5554_s27 }
 0x625   : > { %3769 = vrot.lane.b32.xlu1 %v3760_v37, %s5547_s19  ;;  %3748 = vrot.lane.b32.xlu0 %v3739_v40, %s5546_s18 }
 0x629   : > { %3830 = vrot.lane.b32.xlu1 %v3739_v40, %s5550_s23  ;;  %3790 = vrot.lane.b32.xlu0 %v3781_v41, %s5548_s20 }
 0x62b   : > { %v3674_v9 = vpop.permute.xlu1 %3673  ;;  %v3649_v44 = vpop.permute.xlu0 %3648 }
 0x62c   : > { %v3663_v42 = vadd.f32 %v3649_v44, %v6738_v60 }
 0x62d   : > { %3872 = vrot.lane.b32.xlu1 %v3781_v41, %s5552_s22  ;;  %3851 = vrot.lane.b32.xlu0 %v3760_v37, %s5549_s21 }
 0x62e   : > { %v3688_v63 = vadd.f32 %v3674_v9, %v3663_v42 }
 0x62f   : > { %v3720_v45 = vpop.permute.xlu1 %3719  ;;  %v3699_v13 = vpop.permute.xlu0 %3698 }
 0x630   : > { %v3713_v60 = vadd.f32 %v3699_v13, %v3688_v63 }
 0x631   : > { %3933 = vrot.lane.b32.xlu1 %v3760_v37, %s5554_s27  ;;  %3912 = vrot.lane.b32.xlu0 %v3739_v40, %s5553_s26 }
 0x632   : > { %v3734_v11 = vadd.f32 %v3720_v45, %v3713_v60 }
 0x633   : > { %v3651_v48 = vpop.permute.xlu1 %3650  ;;  %v6854_v49 = vpop.permute.xlu0 %3675 }
 0x634   : > { %v3664_v14 = vadd.f32 %v3651_v48, %v6740_v18 }
 0x635   : > { %3954 = vrot.lane.b32.xlu0 %v3781_v41, %s5555_s28  ;;  %3811 = vrot.lane.b32.xlu1 %v6767_v12, %s5540_s25 }
 0x636   : > { %v3689_v5 = vadd.f32 %v6854_v49, %v3664_v14 }
 0x637   : > { %v6859_v8 = vpop.permute.xlu1 %3700  ;;  %v3741_v17 = vpop.permute.xlu0 %3740 }
 0x638   : > { %v3755_v28 = vadd.f32 %v3741_v17, %v3734_v11  ;;  %v3714_v18 = vadd.f32 %v6859_v8, %v3689_v5 }
 0x639   : > { %3893 = vrot.lane.b32.xlu0 %v6767_v12, %s5551_s24  ;;  %3853 = vrot.lane.b32.xlu1 %v3844_v57, %s5549_s21  ;;  %v3907_v12 = vrot.slane %v6773_v16, 1 }
 0x63b   : > { %v3762_v20 = vpop.permute.xlu1 %3761  ;;  %v3783_v21 = vpop.permute.xlu0 %3782 }
 0x63c   : > { %v3776_v22 = vadd.f32 %v3762_v20, %v3755_v28 }
 0x63d   : > { %3895 = vrot.lane.b32.xlu1 %v6773_v16, %s5551_s24  ;;  %3832 = vrot.lane.b32.xlu0 %v3823_v1, %s5550_s23 }
 0x63e   : > { %v3797_v6 = vadd.f32 %v3783_v21, %v3776_v22 }
 0x63f   : > { %v3804_v52 = vpop.permute.xlu1 %3803  ;;  %v3722_v59 = vpop.permute.xlu0 %3721 }
 0x640   : > { %v3818_v7 = vadd.f32 %v3804_v52, %v3797_v6  ;;  %v3735_v44 = vadd.f32 %v3722_v59, %v3714_v18 }
 0x641   : > { %3914 = vrot.lane.b32.xlu1 %v3823_v1, %s5553_s26  ;;  %3874 = vrot.lane.b32.xlu0 %v3865_v3, %s5552_s22 }
 0x643   : > { %v6872_v0 = vpop.permute.xlu1 %3677  ;;  %v3653_v26 = vpop.permute.xlu0 %3652 }
 0x644   : > { %v3665_v20 = vadd.f32 %v3653_v26, %v6747_v15 }
 0x645   : > { %3956 = vrot.lane.b32.xlu1 %v3865_v3, %s5555_s28  ;;  %3935 = vrot.lane.b32.xlu0 %v3844_v57, %s5554_s27 }
 0x646   : > { %v3690_v3 = vadd.f32 %v6872_v0, %v3665_v20 }
 0x647   : > { %v6877_v34 = vpop.permute.xlu1 %3723  ;;  %v6879_v32 = vpop.permute.xlu0 %3702 }
 0x648   : > { %v3715_v8 = vadd.f32 %v6879_v32, %v3690_v3 }
 0x649   : > { %3937 = vrot.lane.b32.xlu1 %v3928_v24, %s5554_s27  ;;  %3916 = vrot.lane.b32.xlu0 %v3907_v12, %s5553_s26 }
 0x64b   : > { %v3743_v35 = vpop.permute.xlu1 %3742  ;;  %v3764_v33 = vpop.permute.xlu0 %3763 }
 0x64c   : > { %v3756_v48 = vadd.f32 %v3743_v35, %v3735_v44  ;;  %v3736_v35 = vadd.f32 %v6877_v34, %v3715_v8 }
 0x64d   : > { %3958 = vrot.lane.b32.xlu0 %v3949_v30, %s5555_s28 }
 0x64e   : > { %v3777_v57 = vadd.f32 %v3764_v33, %v3756_v48 }
 0x64f   : > { %v3785_v31 = vpop.permute.xlu1 %3784  ;;  %v3806_v23 = vpop.permute.xlu0 %3805 }
 0x650   : > { %v3798_v52 = vadd.f32 %v3785_v31, %v3777_v57 }
 0x652   : > { %v3819_v12 = vadd.f32 %v3806_v23, %v3798_v52 }
 0x653   : > { %v3846_v29 = vpop.permute.xlu1 %3845  ;;  %v3825_v39 = vpop.permute.xlu0 %3824 }
 0x654   : > { %v3839_v55 = vadd.f32 %v3825_v39, %v3818_v7 }
 0x656   : > { %v3860_v47 = vadd.f32 %v3846_v29, %v3839_v55 }
 0x657   : > { %v3888_v62 = vpop.permute.xlu1 %3887  ;;  %v3867_v2 = vpop.permute.xlu0 %3866 }
 0x658   : > { %v3881_v10 = vadd.f32 %v3867_v2, %v3860_v47 }
 0x65a   : > { %v3902_v27 = vadd.f32 %v3888_v62, %v3881_v10 }
 0x65b   : > { %v6887_v61 = vpop.permute.xlu1 %3654  ;;  %v6889_v38 = vpop.permute.xlu0 %3679 }
 0x65c   : > { %v3666_v6 = vadd.f32 %v6887_v61, %v6752_v56 }
 0x65e   : > { %v3691_v47 = vadd.f32 %v6889_v38, %v3666_v6 }
 0x65f   : > { %v6891_v16 = vpop.permute.xlu1 %3704  ;;  %v3745_v53 = vpop.permute.xlu0 %3744 }
 0x660   : > { %v3757_v29 = vadd.f32 %v3745_v53, %v3736_v35 }
 0x663   : > { %v3766_v43 = vpop.permute.xlu1 %3765  ;;  %v3787_v50 = vpop.permute.xlu0 %3786 }
 0x664   : > { %v3778_v15 = vadd.f32 %v3766_v43, %v3757_v29 }
 0x666   : > { %v3799_v28 = vadd.f32 %v3787_v50, %v3778_v15 }
 0x667   : > { %v3827_v19 = vpop.permute.xlu1 %3826  ;;  %v3848_v46 = vpop.permute.xlu0 %3847 }
 0x668   : > { %v3840_v63 = vadd.f32 %v3827_v19, %v3819_v12 }
 0x66a   : > { %v3861_v60 = vadd.f32 %v3848_v46, %v3840_v63 }
 0x66b   : > { %v3869_v54 = vpop.permute.xlu1 %3868  ;;  %v3909_v25 = vpop.permute.xlu0 %3908 }
 0x66c   : > { %v3923_v51 = vadd.f32 %v3909_v25, %v3902_v27  ;;  %v3882_v26 = vadd.f32 %v3869_v54, %v3861_v60  ;;  %v3716_v54 = vadd.f32 %v6891_v16, %v3691_v47 }
 0x66f   : > { %v3930_v58 = vpop.permute.xlu1 %3929  ;;  %v3951_v4 = vpop.permute.xlu0 %3950 }
 0x670   : > { %v3944_v37 = vadd.f32 %v3930_v58, %v3923_v51 }
 0x672   : > { %v3965_v40 = vadd.f32 %v3951_v4, %v3944_v37 }
 0x673   : > { %v3808_v41 = vpop.permute.xlu1 %3807  ;;  %v3726_v9 = vpop.permute.xlu0 %3725 }
 0x674   : > { %4713 = vst.msk [vmem:[%s6899_s13] sm:$0x1f] %vm4712_vm11, %v3965_v40  ;;  %v3820_v32 = vadd.f32 %v3808_v41, %v3799_v28  ;;  %v3737_v14 = vadd.f32 %v3726_v9, %v3716_v54 }
 0x677   : > { %v3682_v45 = vpop.permute.xlu1 %3681  ;;  %v3890_v13 = vpop.permute.xlu0 %3889 }
 0x678   : > { %v3903_v0 = vadd.f32 %v3890_v13, %v3882_v26 }
 0x67b   : > { %v3728_v49 = vpop.permute.xlu1 %3727  ;;  %v3657_v17 = vpop.permute.xlu0 %3656 }
 0x67c   : > { %v3667_v55 = vadd.f32 %v3657_v17, %v6759_v36 }
 0x67e   : > { %v3692_v50 = vadd.f32 %v3682_v45, %v3667_v55 }
 0x67f   : > { %v3747_v21 = vpop.permute.xlu1 %3746  ;;  %v3707_v1 = vpop.permute.xlu0 %3706 }
 0x680   : > { %v3717_v27 = vadd.f32 %v3707_v1, %v3692_v50  ;;  %v3758_v51 = vadd.f32 %v3747_v21, %v3737_v14 }
 0x682   : > { %v3738_v4 = vadd.f32 %v3728_v49, %v3717_v27 }
 0x683   : > { %v3789_v42 = vpop.permute.xlu1 %3788  ;;  %v3768_v24 = vpop.permute.xlu0 %3767 }
 0x684   : > { %v3779_v58 = vadd.f32 %v3768_v24, %v3758_v51 }
 0x686   : > { %v3800_v18 = vadd.f32 %v3789_v42, %v3779_v58 }
 0x687   : > { %v3850_v59 = vpop.permute.xlu1 %3849  ;;  %v3810_v30 = vpop.permute.xlu0 %3809 }
 0x688   : > { %v3821_v9 = vadd.f32 %v3810_v30, %v3800_v18 }
 0x68b   : > { %v3892_v11 = vpop.permute.xlu1 %3891  ;;  %v3829_v33 = vpop.permute.xlu0 %3828 }
 0x68c   : > { %v3841_v34 = vadd.f32 %v3829_v33, %v3820_v32 }
 0x68e   : > { %v3862_v19 = vadd.f32 %v3850_v59, %v3841_v34 }
 0x68f   : > { %v3911_v31 = vpop.permute.xlu1 %3910  ;;  %v3871_v39 = vpop.permute.xlu0 %3870 }
 0x690   : > { %v3924_v22 = vadd.f32 %v3911_v31, %v3903_v0  ;;  %v3883_v25 = vadd.f32 %v3871_v39, %v3862_v19 }
 0x692   : > { %v3904_v36 = vadd.f32 %v3892_v11, %v3883_v25 }
 0x693   : > { %v3953_v23 = vpop.permute.xlu1 %3952  ;;  %v3932_v62 = vpop.permute.xlu0 %3931 }
 0x694   : > { %v3945_v2 = vadd.f32 %v3932_v62, %v3924_v22 }
 0x696   : > { %v3966_v7 = vadd.f32 %v3953_v23, %v3945_v2 }
 0x697   : > { %v3770_v53 = vpop.permute.xlu1 %3769  ;;  %v3749_v43 = vpop.permute.xlu0 %3748 }
 0x698   : > { %4714 = vst.msk [vmem:[%s6899_s13 + $0x8] sm:$0x1f] %vm4712_vm11, %v3966_v7  ;;  %v3759_v38 = vadd.f32 %v3749_v43, %v3738_v4 }
 0x69a   : > { %v3780_v16 = vadd.f32 %v3770_v53, %v3759_v38 }
 0x69b   : > { %v3831_v46 = vpop.permute.xlu1 %3830  ;;  %v3791_v10 = vpop.permute.xlu0 %3790 }
 0x69c   : > { %v3842_v57 = vadd.f32 %v3831_v46, %v3821_v9  ;;  %v3801_v20 = vadd.f32 %v3791_v10, %v3780_v16 }
 0x69f   : > { %v3873_v56 = vpop.permute.xlu1 %3872  ;;  %v3852_v61 = vpop.permute.xlu0 %3851 }
 0x6a0   : > { %v3863_v21 = vadd.f32 %v3852_v61, %v3842_v57 }
 0x6a2   : > { %v3884_v63 = vadd.f32 %v3873_v56, %v3863_v21 }
 0x6a3   : > { %v3934_v5 = vpop.permute.xlu1 %3933  ;;  %v3913_v37 = vpop.permute.xlu0 %3912 }
 0x6a4   : > { %v3925_v40 = vadd.f32 %v3913_v37, %v3904_v36 }
 0x6a6   : > { %v3946_v41 = vadd.f32 %v3934_v5, %v3925_v40 }
 0x6a7   : > { %v3955_v44 = vpop.permute.xlu0 %3954  ;;  %v3812_v45 = vpop.permute.xlu1 %3811 }
 0x6a8   : > { %v3967_v13 = vadd.f32 %v3955_v44, %v3946_v41  ;;  %v3822_v1 = vadd.f32 %v3812_v45, %v3801_v20 }
 0x6aa   : > { %4715 = vst.msk [vmem:[%s6899_s13 + $0x10] sm:$0x1f] %vm4712_vm11, %v3967_v13 }
 0x6ab   : > { %v3894_v48 = vpop.permute.xlu0 %3893  ;;  %v3854_v17 = vpop.permute.xlu1 %3853 }
 0x6ac   : > { %v3905_v60 = vadd.f32 %v3894_v48, %v3884_v63 }
 0x6af   : > { %v6917_v49 = vpop.f32.mrb[194].mxu0  ;;  %v3896_v52 = vpop.permute.xlu1 %3895 }
 0x6b0   : > { %v3833_v3 = vpop.permute.xlu0 %3832  ;;  %v6919_v24 = vpop.f32.mrb[195].mxu0  ;;  %4461 = vrot.lane.b32.xlu0 %v6917_v49, %s5544_s16  ;;  %v4411_v42 = vrot.slane %v6917_v49, 2  ;;  %v4386_v8 = vrot.slane %v6917_v49, 1  ;;  %v4436_v11 = vrot.slane %v6917_v49, 3 }
 0x6b1   : > { %v3843_v12 = vadd.f32 %v3833_v3, %v3822_v1  ;;  %v4385_v23 = vrot.slane %v6919_v24, 1  ;;  %v4410_v2 = vrot.slane %v6919_v24, 2  ;;  %v4435_v55 = vrot.slane %v6919_v24, 3 }
 0x6b2   : > { %4417 = vrot.lane.b32.xlu1 %v4411_v42, %s5542_s14 }
 0x6b3   : > { %v3915_v59 = vpop.permute.xlu1 %3914  ;;  %v3864_v30 = vadd.f32 %v3854_v17, %v3843_v12 }
 0x6b4   : > { %v3875_v35 = vpop.permute.xlu0 %3874  ;;  %4392 = vrot.lane.b32.xlu0 %v4386_v8, %s5543_s15  ;;  %v3926_v33 = vadd.f32 %v3915_v59, %v3905_v60 }
 0x6b5   : > { %v3885_v29 = vadd.f32 %v3875_v35, %v3864_v30 }
 0x6b6   : > { %4482 = vrot.lane.b32.xlu1 %v4386_v8, %s5546_s18 }
 0x6b7   : > { %v3957_v15 = vpop.permute.xlu1 %3956  ;;  %v6929_v26 = vpop.f32.mrb[196].mxu0  ;;  %v3906_v22 = vadd.f32 %v3896_v52, %v3885_v29 }
 0x6b8   : > { %v3936_v31 = vpop.permute.xlu0 %3935  ;;  %4442 = vrot.lane.b32.xlu0 %v4436_v11, %s5545_s17  ;;  %v6932_v39 = vpop.f32.mrb[197].mxu0  ;;  %v4413_v46 = vrot.slane %v6929_v26, 2  ;;  %v4388_v10 = vrot.slane %v6929_v26, 1  ;;  %v4438_v54 = vrot.slane %v6929_v26, 3 }
 0x6b9   : > { %v3947_v0 = vadd.f32 %v3936_v31, %v3926_v33  ;;  %v4387_v25 = vrot.slane %v6932_v39, 1  ;;  %v4412_v14 = vrot.slane %v6932_v39, 2  ;;  %v4437_v27 = vrot.slane %v6932_v39, 3 }
 0x6ba   : > { %4524 = vrot.lane.b32.xlu1 %v4436_v11, %s5548_s20 }
 0x6bb   : > { %v3968_v28 = vadd.f32 %v3957_v15, %v3947_v0  ;;  %v3938_v6 = vpop.permute.xlu1 %3937 }
 0x6bc   : > { %v3917_v62 = vpop.permute.xlu0 %3916  ;;  %4503 = vrot.lane.b32.xlu0 %v4411_v42, %s5547_s19 }
 0x6bd   : > { %4716 = vst.msk [vmem:[%s6899_s13 + $0x18] sm:$0x1f] %vm4712_vm11, %v3968_v28  ;;  %v3927_v32 = vadd.f32 %v3917_v62, %v3906_v22 }
 0x6be   : > { %4390 = vrot.lane.b32.xlu1 %v4385_v23, %s5543_s15 }
 0x6bf   : > { %v3948_v34 = vadd.f32 %v3938_v6, %v3927_v32  ;;  %v5149_v7 = vpop.f32.mrb[198].mxu0 }
 0x6c0   : > { %v3959_v53 = vpop.permute.xlu0 %3958  ;;  %4415 = vrot.lane.b32.xlu0 %v4410_v2, %s5542_s14  ;;  %v6943_v43 = vpop.f32.mrb[199].mxu0  ;;  %v4502_v56 = vrot.slane %v5149_v7, 2  ;;  %v4481_v61 = vrot.slane %v5149_v7, 1  ;;  %v4523_v51 = vrot.slane %v5149_v7, 3 }
 0x6c1   : > { %v3969_v47 = vadd.f32 %v3959_v53, %v3948_v34  ;;  %v4414_v36 = vrot.slane %v6943_v43, 2  ;;  %v4389_v58 = vrot.slane %v6943_v43, 1  ;;  %v4439_v4 = vrot.slane %v6943_v43, 3 }
 0x6c2   : > { %4440 = vrot.lane.b32.xlu1 %v4435_v55, %s5545_s17 }
 0x6c3   : > { %4717 = vst.msk [vmem:[%s6899_s13 + $0x20] sm:$0x1f] %vm4712_vm11, %v3969_v47 }
 0x6c4   : > { %4465 = vrot.lane.b32.xlu0 %v6929_v26, %s5544_s16 }
 0x6c6   : > { %4547 = vrot.lane.b32.xlu1 %v6929_v26, %s5540_s25 }
 0x6c7   : > { %v6952_v19 = vpop.f32.mrb[200].mxu0 }
 0x6c8   : > { %4629 = vrot.lane.b32.xlu0 %v6929_v26, %s5551_s24  ;;  %v6956_v50 = vpop.f32.mrb[201].mxu0  ;;  %v4670_v16 = vrot.slane %v6952_v19, 2  ;;  %v4649_v48 = vrot.slane %v6952_v19, 1  ;;  %v4691_v60 = vrot.slane %v6952_v19, 3 }
 0x6c9   : > { %v4586_v57 = vrot.slane %v6956_v50, 2  ;;  %v4565_v21 = vrot.slane %v6956_v50, 1  ;;  %v4607_v42 = vrot.slane %v6956_v50, 3 }
 0x6ca   : > { %4463 = vrot.lane.b32.xlu1 %v6932_v39, %s5544_s16 }
 0x6cc   : > { %4545 = vrot.lane.b32.xlu0 %v6932_v39, %s5540_s25 }
 0x6ce   : > { %4421 = vrot.lane.b32.xlu1 %v4413_v46, %s5542_s14 }
 0x6d0   : > { %4396 = vrot.lane.b32.xlu0 %v4388_v10, %s5543_s15 }
 0x6d2   : > { %4486 = vrot.lane.b32.xlu1 %v4388_v10, %s5546_s18 }
 0x6d4   : > { %4446 = vrot.lane.b32.xlu0 %v4438_v54, %s5545_s17 }
 0x6d6   : > { %4528 = vrot.lane.b32.xlu1 %v4438_v54, %s5548_s20 }
 0x6d8   : > { %4507 = vrot.lane.b32.xlu0 %v4413_v46, %s5547_s19 }
 0x6da   : > { %4589 = vrot.lane.b32.xlu1 %v4413_v46, %s5549_s21 }
 0x6dc   : > { %4568 = vrot.lane.b32.xlu0 %v4388_v10, %s5550_s23 }
 0x6de   : > { %4650 = vrot.lane.b32.xlu1 %v4388_v10, %s5553_s26 }
 0x6e0   : > { %4610 = vrot.lane.b32.xlu0 %v4438_v54, %s5552_s22 }
 0x6e2   : > { %4692 = vrot.lane.b32.xlu1 %v4438_v54, %s5555_s28 }
 0x6e4   : > { %4671 = vrot.lane.b32.xlu0 %v4413_v46, %s5554_s27 }
 0x6e6   : > { %4394 = vrot.lane.b32.xlu1 %v4387_v25, %s5543_s15 }
 0x6e8   : > { %4419 = vrot.lane.b32.xlu0 %v4412_v14, %s5542_s14 }
 0x6ea   : > { %4444 = vrot.lane.b32.xlu1 %v4437_v27, %s5545_s17 }
 0x6ec   : > { %4484 = vrot.lane.b32.xlu0 %v4387_v25, %s5546_s18 }
 0x6ee   : > { %4505 = vrot.lane.b32.xlu1 %v4412_v14, %s5547_s19 }
 0x6f0   : > { %4526 = vrot.lane.b32.xlu0 %v4437_v27, %s5548_s20 }
 0x6f2   : > { %4566 = vrot.lane.b32.xlu1 %v4387_v25, %s5550_s23 }
 0x6f4   : > { %4587 = vrot.lane.b32.xlu0 %v4412_v14, %s5549_s21 }
 0x6f6   : > { %4608 = vrot.lane.b32.xlu1 %v4437_v27, %s5552_s22 }
 0x6f8   : > { %4469 = vrot.lane.b32.xlu0 %v5149_v7, %s5544_s16 }
 0x6fa   : > { %4551 = vrot.lane.b32.xlu1 %v5149_v7, %s5540_s25 }
 0x6fc   : > { %4633 = vrot.lane.b32.xlu0 %v5149_v7, %s5551_s24 }
 0x6fe   : > { %4467 = vrot.lane.b32.xlu1 %v6943_v43, %s5544_s16 }
 0x700   : > { %4549 = vrot.lane.b32.xlu0 %v6943_v43, %s5540_s25 }
 0x702   : > { %4631 = vrot.lane.b32.xlu1 %v6943_v43, %s5551_s24 }
 0x704   : > { %4511 = vrot.lane.b32.xlu0 %v4502_v56, %s5547_s19 }
 0x706   : > { %4490 = vrot.lane.b32.xlu1 %v4481_v61, %s5546_s18 }
 0x708   : > { %4572 = vrot.lane.b32.xlu0 %v4481_v61, %s5550_s23 }
 0x70a   : > { %4532 = vrot.lane.b32.xlu1 %v4523_v51, %s5548_s20 }
 0x70c   : > { %4614 = vrot.lane.b32.xlu0 %v4523_v51, %s5552_s22 }
 0x70e   : > { %4593 = vrot.lane.b32.xlu1 %v4502_v56, %s5549_s21 }
 0x710   : > { %4675 = vrot.lane.b32.xlu0 %v4502_v56, %s5554_s27 }
 0x712   : > { %4654 = vrot.lane.b32.xlu1 %v4481_v61, %s5553_s26 }
 0x714   : > { %4423 = vrot.lane.b32.xlu0 %v4414_v36, %s5542_s14 }
 0x716   : > { %4398 = vrot.lane.b32.xlu1 %v4389_v58, %s5543_s15 }
 0x718   : > { %4488 = vrot.lane.b32.xlu0 %v4389_v58, %s5546_s18 }
 0x71a   : > { %4448 = vrot.lane.b32.xlu1 %v4439_v4, %s5545_s17 }
 0x71c   : > { %4530 = vrot.lane.b32.xlu0 %v4439_v4, %s5548_s20 }
 0x71e   : > { %4509 = vrot.lane.b32.xlu1 %v4414_v36, %s5547_s19 }
 0x720   : > { %4591 = vrot.lane.b32.xlu0 %v4414_v36, %s5549_s21 }
 0x722   : > { %4570 = vrot.lane.b32.xlu1 %v4389_v58, %s5550_s23  ;;  %v4462_v5 = vpop.permute.xlu0 %4461 }
 0x724   : > { %v4418_v37 = vpop.permute.xlu1 %4417  ;;  %4652 = vrot.lane.b32.xlu0 %v4389_v58, %s5553_s26 }
 0x726   : > { %4612 = vrot.lane.b32.xlu1 %v4439_v4, %s5552_s22  ;;  %v4393_v40 = vpop.permute.xlu0 %4392 }
 0x727   : > { %v4406_v38 = vadd.f32 %v6917_v49, %v4393_v40 }
 0x728   : > { %v4483_v41 = vpop.permute.xlu1 %4482  ;;  %4637 = vrot.lane.b32.xlu0 %v6952_v19, %s5551_s24 }
 0x729   : > { %v4431_v18 = vadd.f32 %v4418_v37, %v4406_v38 }
 0x72a   : > { %4673 = vrot.lane.b32.xlu1 %v4414_v36, %s5554_s27  ;;  %v4443_v44 = vpop.permute.xlu0 %4442 }
 0x72b   : > { %v4456_v45 = vadd.f32 %v4443_v44, %v4431_v18 }
 0x72c   : > { %v4525_v13 = vpop.permute.xlu1 %4524  ;;  %4553 = vrot.lane.b32.xlu0 %v6956_v50, %s5540_s25 }
 0x72e   : > { %4635 = vrot.lane.b32.xlu1 %v6956_v50, %s5551_s24  ;;  %v4504_v9 = vpop.permute.xlu0 %4503 }
 0x730   : > { %v4391_v17 = vpop.permute.xlu1 %4390  ;;  %4679 = vrot.lane.b32.xlu0 %v4670_v16, %s5554_s27 }
 0x731   : > { %v4405_v15 = vadd.f32 %v4391_v17, %v6919_v24 }
 0x732   : > { %4658 = vrot.lane.b32.xlu1 %v4649_v48, %s5553_s26  ;;  %v4416_v20 = vpop.permute.xlu0 %4415 }
 0x733   : > { %v4430_v22 = vadd.f32 %v4416_v20, %v4405_v15 }
 0x734   : > { %v4441_v1 = vpop.permute.xlu1 %4440  ;;  %4595 = vrot.lane.b32.xlu0 %v4586_v57, %s5549_s21 }
 0x735   : > { %v4455_v32 = vadd.f32 %v4441_v1, %v4430_v22 }
 0x736   : > { %4574 = vrot.lane.b32.xlu1 %v4565_v21, %s5550_s23  ;;  %v4466_v49 = vpop.permute.xlu0 %4465 }
 0x738   : > { %v4548_v52 = vpop.permute.xlu1 %4547  ;;  %4694 = vrot.lane.b32.xlu0 %v4439_v4, %s5555_s28 }
 0x73a   : > { %4696 = vrot.lane.b32.xlu1 %v4523_v51, %s5555_s28  ;;  %v4630_v3 = vpop.permute.xlu0 %4629 }
 0x73c   : > { %v4464_v12 = vpop.permute.xlu1 %4463  ;;  %4656 = vrot.lane.b32.xlu0 %v4565_v21, %s5553_s26 }
 0x73d   : > { %v4477_v8 = vadd.f32 %v4464_v12, %v4456_v45 }
 0x73e   : > { %4616 = vrot.lane.b32.xlu1 %v4607_v42, %s5552_s22  ;;  %v4546_v63 = vpop.permute.xlu0 %4545 }
 0x740   : > { %v4422_v59 = vpop.permute.xlu1 %4421  ;;  %4698 = vrot.lane.b32.xlu0 %v4607_v42, %s5555_s28 }
 0x742   : > { %4677 = vrot.lane.b32.xlu1 %v4586_v57, %s5554_s27  ;;  %v4397_v30 = vpop.permute.xlu0 %4396 }
 0x743   : > { %v4408_v35 = vadd.f32 %v6929_v26, %v4397_v30  ;;  %v4476_v26 = vadd.f32 %v4462_v5, %v4455_v32 }
 0x744   : > { %v4487_v11 = vpop.permute.xlu1 %4486 }
 0x745   : > { %v4433_v33 = vadd.f32 %v4422_v59, %v4408_v35  ;;  %v4497_v55 = vadd.f32 %v4483_v41, %v4476_v26 }
 0x746   : > { %4700 = vrot.lane.b32.xlu1 %v4691_v60, %s5555_s28  ;;  %v4447_v29 = vpop.permute.xlu0 %4446 }
 0x747   : > { %v7046_v31 = vadd.f32 %v4447_v29, %v4433_v33  ;;  %v4518_v50 = vadd.f32 %v4504_v9, %v4497_v55 }
 0x748   : > { %v4529_v0 = vpop.permute.xlu1 %4528 }
 0x749   : > { %v4539_v25 = vadd.f32 %v4525_v13, %v4518_v50 }
 0x74a   : > { %v4508_v28 = vpop.permute.xlu0 %4507 }
 0x74b   : > { %v4560_v58 = vadd.f32 %v4546_v63, %v4539_v25 }
 0x74c   : > { %v4590_v23 = vpop.permute.xlu1 %4589 }
 0x74e   : > { %v4569_v62 = vpop.permute.xlu0 %4568 }
 0x750   : > { %v4651_v2 = vpop.permute.xlu1 %4650 }
 0x752   : > { %v4611_v6 = vpop.permute.xlu0 %4610 }
 0x754   : > { %v4693_v34 = vpop.permute.xlu1 %4692 }
 0x756   : > { %v4672_v7 = vpop.permute.xlu0 %4671 }
 0x758   : > { %v4395_v53 = vpop.permute.xlu1 %4394 }
 0x759   : > { %v4407_v47 = vadd.f32 %v4395_v53, %v6932_v39 }
 0x75a   : > { %v4420_v19 = vpop.permute.xlu0 %4419 }
 0x75b   : > { %v4432_v24 = vadd.f32 %v4420_v19, %v4407_v47 }
 0x75c   : > { %v4445_v46 = vpop.permute.xlu1 %4444 }
 0x75d   : > { %v4457_v10 = vadd.f32 %v4445_v46, %v4432_v24 }
 0x75e   : > { %v4485_v54 = vpop.permute.xlu0 %4484 }
 0x75f   : > { %v4478_v14 = vadd.f32 %v4466_v49, %v4457_v10  ;;  %v4498_v27 = vadd.f32 %v4485_v54, %v4477_v8 }
 0x760   : > { %v4506_v56 = vpop.permute.xlu1 %4505 }
 0x761   : > { %v4499_v61 = vadd.f32 %v4487_v11, %v4478_v14  ;;  %v4519_v51 = vadd.f32 %v4506_v56, %v4498_v27 }
 0x762   : > { %v4527_v36 = vpop.permute.xlu0 %4526 }
 0x763   : > { %v4540_v4 = vadd.f32 %v4527_v36, %v4519_v51  ;;  %v4520_v5 = vadd.f32 %v4508_v28, %v4499_v61 }
 0x764   : > { %v4567_v37 = vpop.permute.xlu1 %4566 }
 0x765   : > { %v4561_v40 = vadd.f32 %v4548_v52, %v4540_v4  ;;  %v4581_v38 = vadd.f32 %v4567_v37, %v4560_v58  ;;  %v4541_v39 = vadd.f32 %v4529_v0, %v4520_v5 }
 0x766   : > { %v4588_v41 = vpop.permute.xlu0 %4587 }
 0x767   : > { %v4582_v18 = vadd.f32 %v4569_v62, %v4561_v40  ;;  %v4602_v44 = vadd.f32 %v4588_v41, %v4581_v38 }
 0x768   : > { %v4609_v45 = vpop.permute.xlu1 %4608 }
 0x769   : > { %v4623_v16 = vadd.f32 %v4609_v45, %v4602_v44  ;;  %v4603_v13 = vadd.f32 %v4590_v23, %v4582_v18 }
 0x76a   : > { %v4470_v9 = vpop.permute.xlu0 %4469 }
 0x76b   : > { %v4644_v48 = vadd.f32 %v4630_v3, %v4623_v16  ;;  %v4624_v17 = vadd.f32 %v4611_v6, %v4603_v13 }
 0x76c   : > { %v4552_v57 = vpop.permute.xlu1 %4551 }
 0x76d   : > { %v4665_v20 = vadd.f32 %v4651_v2, %v4644_v48 }
 0x76e   : > { %v4634_v21 = vpop.permute.xlu0 %4633 }
 0x76f   : > { %v4686_v1 = vadd.f32 %v4672_v7, %v4665_v20 }
 0x770   : > { %v4468_v49 = vpop.permute.xlu1 %4467 }
 0x771   : > { %v4707_v42 = vadd.f32 %v4693_v34, %v4686_v1  ;;  %v4479_v34 = vadd.f32 %v4468_v49, %v7046_v31 }
 0x772   : > { %v4550_v12 = vpop.permute.xlu0 %4549 }
 0x773   : > { %4718 = vst.msk [vmem:[%s6899_s13 + $0x28] sm:$0x1f] %vm4712_vm11, %v4707_v42  ;;  %v4562_v6 = vadd.f32 %v4550_v12, %v4541_v39 }
 0x774   : > { %v4632_v52 = vpop.permute.xlu1 %4631 }
 0x775   : > { %v4645_v31 = vadd.f32 %v4632_v52, %v4624_v17 }
 0x776   : > { %v4512_v8 = vpop.permute.xlu0 %4511 }
 0x778   : > { %v4491_v63 = vpop.permute.xlu1 %4490 }
 0x77a   : > { %v4573_v59 = vpop.permute.xlu0 %4572 }
 0x77c   : > { %v4533_v30 = vpop.permute.xlu1 %4532 }
 0x77e   : > { %v4615_v35 = vpop.permute.xlu0 %4614 }
 0x780   : > { %v4594_v60 = vpop.permute.xlu1 %4593 }
 0x782   : > { %v4676_v11 = vpop.permute.xlu0 %4675 }
 0x784   : > { %v4655_v33 = vpop.permute.xlu1 %4654 }
 0x786   : > { %v4424_v3 = vpop.permute.xlu0 %4423 }
 0x788   : > { %v4399_v29 = vpop.permute.xlu1 %4398 }
 0x789   : > { %v4409_v22 = vadd.f32 %v4399_v29, %v6943_v43 }
 0x78a   : > { %v4489_v15 = vpop.permute.xlu0 %4488 }
 0x78b   : > { %v4434_v32 = vadd.f32 %v4424_v3, %v4409_v22  ;;  %v4500_v47 = vadd.f32 %v4489_v15, %v4479_v34 }
 0x78c   : > { %v4449_v0 = vpop.permute.xlu1 %4448 }
 0x78d   : > { %v4459_v7 = vadd.f32 %v4449_v0, %v4434_v32 }
 0x78e   : > { %v4531_v28 = vpop.permute.xlu0 %4530 }
 0x78f   : > { %v4480_v50 = vadd.f32 %v4470_v9, %v4459_v7 }
 0x790   : > { %v4510_v23 = vpop.permute.xlu1 %4509 }
 0x791   : > { %v4521_v24 = vadd.f32 %v4510_v23, %v4500_v47  ;;  %v4501_v25 = vadd.f32 %v4491_v63, %v4480_v50 }
 0x792   : > { %v4592_v62 = vpop.permute.xlu0 %4591 }
 0x793   : > { %v4542_v43 = vadd.f32 %v4531_v28, %v4521_v24  ;;  %v4522_v36 = vadd.f32 %v4512_v8, %v4501_v25 }
 0x794   : > { %v4571_v2 = vpop.permute.xlu1 %4570 }
 0x795   : > { %v4583_v55 = vadd.f32 %v4571_v2, %v4562_v6  ;;  %v4563_v61 = vadd.f32 %v4552_v57, %v4542_v43  ;;  %v4543_v37 = vadd.f32 %v4533_v30, %v4522_v36 }
 0x796   : > { %v4653_v26 = vpop.permute.xlu0 %4652 }
 0x797   : > { %v4604_v46 = vadd.f32 %v4592_v62, %v4583_v55  ;;  %v4666_v5 = vadd.f32 %v4653_v26, %v4645_v31  ;;  %v4584_v40 = vadd.f32 %v4573_v59, %v4563_v61 }
 0x798   : > { %v4613_v53 = vpop.permute.xlu1 %4612 }
 0x799   : > { %v4625_v14 = vadd.f32 %v4613_v53, %v4604_v46  ;;  %v4605_v45 = vadd.f32 %v4594_v60, %v4584_v40 }
 0x79a   : > { %v4638_v19 = vpop.permute.xlu0 %4637 }
 0x79b   : > { %v4646_v51 = vadd.f32 %v4634_v21, %v4625_v14  ;;  %v4626_v20 = vadd.f32 %v4615_v35, %v4605_v45 }
 0x79c   : > { %v4674_v10 = vpop.permute.xlu1 %4673 }
 0x79d   : > { %v4667_v38 = vadd.f32 %v4655_v33, %v4646_v51  ;;  %v4687_v41 = vadd.f32 %v4674_v10, %v4666_v5 }
 0x79e   : > { %v4554_v54 = vpop.permute.xlu0 %4553 }
 0x79f   : > { %v4564_v18 = vadd.f32 %v4554_v54, %v4543_v37  ;;  %v4688_v9 = vadd.f32 %v4676_v11, %v4667_v38 }
 0x7a0   : > { %v4636_v27 = vpop.permute.xlu1 %4635 }
 0x7a1   : > { %v4647_v49 = vadd.f32 %v4636_v27, %v4626_v20 }
 0x7a2   : > { %v4680_v56 = vpop.permute.xlu0 %4679 }
 0x7a4   : > { %v4659_v58 = vpop.permute.xlu1 %4658 }
 0x7a6   : > { %v4596_v4 = vpop.permute.xlu0 %4595 }
 0x7a8   : > { %v4575_v39 = vpop.permute.xlu1 %4574 }
 0x7a9   : > { %v4585_v16 = vadd.f32 %v4575_v39, %v4564_v18 }
 0x7aa   : > { %v4695_v44 = vpop.permute.xlu0 %4694 }
 0x7ab   : > { %v4708_v13 = vadd.f32 %v4695_v44, %v4687_v41  ;;  %v4606_v17 = vadd.f32 %v4596_v4, %v4585_v16 }
 0x7ac   : > { %v4697_v48 = vpop.permute.xlu1 %4696 }
 0x7ad   : > { %4719 = vst.msk [vmem:[%s6899_s13 + $0x30] sm:$0x1f] %vm4712_vm11, %v4708_v13  ;;  %v4709_v57 = vadd.f32 %v4697_v48, %v4688_v9 }
 0x7ae   : > { %v4657_v21 = vpop.permute.xlu0 %4656 }
 0x7af   : > { %4720 = vst.msk [vmem:[%s6899_s13 + $0x38] sm:$0x1f] %vm4712_vm11, %v4709_v57  ;;  %v4668_v12 = vadd.f32 %v4657_v21, %v4647_v49 }
 0x7b0   : > { %v4617_v1 = vpop.permute.xlu1 %4616 }
 0x7b1   : > { %v4627_v42 = vadd.f32 %v4617_v1, %v4606_v17 }
 0x7b2   : > { %v4699_v30 = vpop.permute.xlu0 %4698 }
 0x7b3   : > { %v4648_v52 = vadd.f32 %v4638_v19, %v4627_v42 }
 0x7b4   : > { %v4678_v8 = vpop.permute.xlu1 %4677 }
 0x7b5   : > { %v4689_v63 = vadd.f32 %v4678_v8, %v4668_v12  ;;  %v4669_v59 = vadd.f32 %v4659_v58, %v4648_v52 }
 0x7b7   : > { %v4710_v60 = vadd.f32 %v4699_v30, %v4689_v63  ;;  %v4690_v11 = vadd.f32 %v4680_v56, %v4669_v59 }
 0x7b8   : > { %v4701_v33 = vpop.permute.xlu1 %4700 }
 0x7b9   : > { %4721 = vst.msk [vmem:[%s6899_s13 + $0x40] sm:$0x1f] %vm4712_vm11, %v4710_v60  ;;  %v4711_v35 = vadd.f32 %v4701_v33, %v4690_v11 }
 0x7bb   : > { %4722 = vst.msk [vmem:[%s6899_s13 + $0x48] sm:$0x1f] %vm4712_vm11, %v4711_v35 }
 0x7bc PF: > { %s20_s30 = sadd.s32 1, %s5520_s30  }
 0x7bd   : > { %p17_p3 = scmp.ge.s32.totalorder %s20_s30, 4  }
 0x7bf   :  { %19 = sbr.rel (!%p17_p3) target bundleno = 1 (0x1), region = 91 }
 0x7c6   :  { %4744 = vsyncpa [#allocation4], 1 }
 0x7c7   :  { %4746 = vsyncpa [#allocation4 + $0x1], 1 }

</bundles_post_ra>
